<compile_context>
chip_gen: v7x
topology: tpu7x:2x2x1
jax: 0.10.0
libtpu: 0.0.40
codegen_flags: <defaults>
</compile_context>

<pallas_src>
import math

import jax
import jax.numpy as jnp
from jax.experimental import pallas as pl
from jax.experimental.pallas import tpu as pltpu

_LANES = 128
_SUBLANES = 8
_MAX_BATCH_TILE = 256     # MXU row target (v6e/v7x 256-wide; also >= v5e's 128)


# ----------------------------------------------------------------------------
# Hex-grid helpers (deterministic, NumPy-free).  The repo's get_neighbor_tensor
# is not provided; we build a spiral-indexed circular hex grid neighbor table
# with -1 for out-of-grid taps (same (N, K) shape and -1 convention).
# ----------------------------------------------------------------------------
_HEX_DIRS = [(1, 0), (1, -1), (0, -1), (-1, 0), (-1, 1), (0, 1)]  # axial (q, r)


def calc_kernel_pixels(kernel_size: int) -> int:
    return 1 + sum(range(1, kernel_size + 1)) * 6


def _spiral_coords(rings: int):
    coords = [(0, 0)]
    for radius in range(1, rings + 1):
        q, r = _HEX_DIRS[4][0] * radius, _HEX_DIRS[4][1] * radius
        for d in range(6):
            for _ in range(radius):
                coords.append((q, r))
                q += _HEX_DIRS[d][0]
                r += _HEX_DIRS[d][1]
    return coords


def _rings_from_pixels(n_pixels: int) -> int:
    rings = 0
    while calc_kernel_pixels(rings) < n_pixels:
        rings += 1
    assert calc_kernel_pixels(rings) == n_pixels, "n_pixels must be 1 + 3*R*(R+1)"
    return rings


def get_neighbor_table(n_pixels: int, kernel_size: int):
    """Returns (N, K) python list-of-lists of neighbor indices, -1 = outside."""
    rings = _rings_from_pixels(n_pixels)
    coords = _spiral_coords(rings)
    coord_to_idx = {c: i for i, c in enumerate(coords)}
    offsets = _spiral_coords(kernel_size)
    table = []
    for (q, r) in coords:
        table.append([coord_to_idx.get((q + dq, r + dr), -1) for (dq, dr) in offsets])
    return table


def _round_up(x: int, m: int) -> int:
    return ((x + m - 1) // m) * m


def _choose_batch_tiling(batch: int):
    """Pick (b_tile, b_pad): fill the MXU rows first (target 256) and only
    split into multiple grid steps once each step still carries a full tile."""
    b_min = _round_up(max(batch, 1), _SUBLANES)
    if b_min <= _MAX_BATCH_TILE:
        return b_min, b_min                          # single step, full block
    return _MAX_BATCH_TILE, _round_up(batch, _MAX_BATCH_TILE)


# ----------------------------------------------------------------------------
# Pallas kernel: one deep matmul + bias add + lane-dense store.
# ----------------------------------------------------------------------------
def hex_circle_conv_kernel(x_ref, a_ref, b_ref, o_ref):
    # x_ref : (b_tile, Cin_pad*N_pad)       batch tile in MXU-LHS layout
    # a_ref : (Cin_pad*N_pad, Cout*N_pad)   folded gather+weight matrix (resident)
    # b_ref : (1, Cout*N_pad)               bias broadcast row (f32)
    # o_ref : (b_tile, Cout*N_pad)          lane-dense output slab (f32)
    acc = jnp.dot(x_ref[...], a_ref[...], preferred_element_type=jnp.float32)
    o_ref[...] = (acc + b_ref[...]).astype(o_ref.dtype)


def hex_circle_conv(x, weight, bias, neighbors, *, compute_dtype=jnp.float32):
    """x: (B, Cin, N) f32; weight: (Cout, Cin, K); bias: (Cout,) or None;
    neighbors: (N, K) int32 with -1 for out-of-grid taps."""
    B, Cin, N = x.shape
    Cout, Cin_w, K = weight.shape
    assert Cin == Cin_w and neighbors.shape == (N, K)

    n_pad = _round_up(N, _LANES)
    cin_pad = _round_up(Cin, _SUBLANES)
    b_tile, b_pad = _choose_batch_tiling(B)
    n_blocks = b_pad // b_tile

    # ---- offline folded selection+weight matrix (per weight/neighbor set) ----
    # A[(c, m), (o, n)] = sum_k W[o, c, k] * [neighbor(n, k) == m]; -1 (invalid
    # taps) and padded pixels never match any m -> zero contribution, i.e.
    # padding_mode='zeros'.  Built at HIGHEST precision so every entry is
    # exactly one weight value (or 0) — the fold itself is exact.
    nb = jnp.pad(neighbors.astype(jnp.int32), ((0, n_pad - N), (0, 0)),
                 constant_values=-1)                                    # (N_pad, K)
    onehot = (nb[:, :, None] ==
              jnp.arange(n_pad, dtype=jnp.int32)[None, None, :]
              ).astype(jnp.float32)                                     # (n, k, m)
    w_pad = jnp.pad(weight.astype(jnp.float32),
                    ((0, 0), (0, cin_pad - Cin), (0, 0)))               # (Cout, Cin_pad, K)
    a_mat = jnp.einsum('ock,nkm->cmon', w_pad, onehot,
                       precision=jax.lax.Precision.HIGHEST)
    a_mat = a_mat.reshape(cin_pad * n_pad, Cout * n_pad).astype(compute_dtype)

    # ---- input delivered in MXU-LHS layout: (b_pad, Cin_pad*N_pad) ----
    x_p = jnp.pad(x.astype(jnp.float32),
                  ((0, b_pad - B), (0, cin_pad - Cin), (0, n_pad - N)))
    x_p = x_p.reshape(b_pad, cin_pad * n_pad).astype(compute_dtype)

    if bias is None:
        bias = jnp.zeros((Cout,), jnp.float32)
    bias_row = jnp.repeat(bias.astype(jnp.float32), n_pad).reshape(1, Cout * n_pad)

    # ---- explicit VMEM budget: resident A (x2 pipeline buffers) + tiles ----
    # Note: A's index_map is constant so it is DMA'd once; we still budget for
    # its second pipeline buffer instead of relying on pl.Buffered(1).
    cbytes = jnp.dtype(compute_dtype).itemsize
    a_bytes = cin_pad * n_pad * Cout * n_pad * cbytes
    x_tile_bytes = b_tile * cin_pad * n_pad * cbytes
    o_tile_bytes = b_tile * Cout * n_pad * 4
    bias_bytes = Cout * n_pad * 4
    vmem_budget = 2 * (a_bytes + x_tile_bytes + o_tile_bytes + bias_bytes) + (4 << 20)
    vmem_budget = min(vmem_budget, 96 << 20)

    out = pl.pallas_call(
        hex_circle_conv_kernel,
        out_shape=jax.ShapeDtypeStruct((b_pad, Cout * n_pad), jnp.float32),
        grid=(n_blocks,),
        in_specs=[
            pl.BlockSpec((b_tile, cin_pad * n_pad), lambda i: (i, 0)),      # x tile
            pl.BlockSpec((cin_pad * n_pad, Cout * n_pad), lambda i: (0, 0)),  # A (resident)
            pl.BlockSpec((1, Cout * n_pad), lambda i: (0, 0)),              # bias row
        ],
        out_specs=pl.BlockSpec((b_tile, Cout * n_pad), lambda i: (i, 0)),
        compiler_params=pltpu.CompilerParams(
            dimension_semantics=("parallel",),
            vmem_limit_bytes=int(vmem_budget)),
    )(x_p, a_mat, bias_row)

    out = out.reshape(b_pad, Cout, n_pad)
    return out[:B, :, :N]


# ----------------------------------------------------------------------------
# Pure-JAX reference (mirrors the PyTorch forward, padding_mode='zeros')
# ----------------------------------------------------------------------------
def hex_circle_conv_ref(x, weight, bias, neighbors):
    valid = (neighbors != -1)
    safe = jnp.where(valid, neighbors, 0)
    nf = x[:, :, safe]                                   # (B, Cin, N, K) gather
    nf = nf * valid[None, None, :, :].astype(x.dtype)    # zero invalid taps
    out = jnp.einsum('oik,bink->bon', weight, nf,
                     precision=jax.lax.Precision.HIGHEST)
    return out + bias[None, :, None]


if __name__ == "__main__":
    # Small deterministic setup: 4-ring circular hex grid -> N = 61 pixels.
    kernel_size = 1
    in_channels = 4
    out_channels = 8
    rings = 4
    N = calc_kernel_pixels(rings)          # 61
    K = calc_kernel_pixels(kernel_size)    # 7
    B = 4

    key = jax.random.PRNGKey(0)
    kx, kw, kb = jax.random.split(key, 3)

    x = jax.random.normal(kx, (B, in_channels, N), dtype=jnp.float32)

    # Deterministic kaiming-uniform-style init (matches the nn.Module shapes).
    fan_in = in_channels * K
    gain = math.sqrt(2.0 / (1.0 + 5.0))                  # a = sqrt(5)
    w_bound = gain * math.sqrt(3.0 / fan_in)
    weight = jax.random.uniform(kw, (out_channels, in_channels, K),
                                minval=-w_bound, maxval=w_bound,
                                dtype=jnp.float32)
    b_bound = 1.0 / math.sqrt(fan_in)
    bias = jax.random.uniform(kb, (out_channels,),
                              minval=-b_bound, maxval=b_bound,
                              dtype=jnp.float32)

    neighbors = jnp.asarray(get_neighbor_table(N, kernel_size),
                            dtype=jnp.int32)             # (N, K)

    ref = hex_circle_conv_ref(x, weight, bias, neighbors)

    # f32 path (bit-faithful: Mosaic multi-pass f32 matmul) — tight tolerance.
    out_f32 = jax.block_until_ready(
        hex_circle_conv(x, weight, bias, neighbors, compute_dtype=jnp.float32))
    assert out_f32.shape == (B, out_channels, N), out_f32.shape
    if not jnp.allclose(out_f32, ref, rtol=1e-3, atol=1e-3):
        max_err = float(jnp.max(jnp.abs(out_f32 - ref)))
        raise AssertionError(f"f32 Pallas output mismatch vs reference, max abs err = {max_err}")

    # bf16 MXU-input fast path — x and the folded weights are rounded to bf16
    # once (f32 accumulation), so a documented looser tolerance applies.
    out_bf16 = jax.block_until_ready(
        hex_circle_conv(x, weight, bias, neighbors, compute_dtype=jnp.bfloat16))
    assert out_bf16.shape == (B, out_channels, N), out_bf16.shape
    if not jnp.allclose(out_bf16, ref, rtol=3e-2, atol=3e-2):
        max_err = float(jnp.max(jnp.abs(out_bf16 - ref)))
        raise AssertionError(f"bf16 Pallas output mismatch vs reference, max abs err = {max_err}")

    print("KERNEL_OK")
</pallas_src>

<mosaic_0001>
module attributes {stable_mosaic.version = 11 : i64} {
  func.func @hex_circle_conv_kernel(%arg0: i32, %arg1: memref<8x1024xf32, #tpu.memory_space<vmem>>, %arg2: memref<1024x1024xf32, #tpu.memory_space<vmem>>, %arg3: memref<1x1024xf32, #tpu.memory_space<vmem>>, %arg4: memref<8x1024xf32, #tpu.memory_space<vmem>>) attributes {dimension_semantics = [#tpu.dimension_semantics<parallel>], iteration_bounds = array<i64: 1>, scalar_prefetch = 0 : i64, scratch_operands = 0 : i64, tpu.core_type = #tpu.core_type<tc>, window_params = [{transform_indices = @transform_0, window_bounds = array<i64: 8, 1024>}, {pipeline_mode = #tpu.pipeline_mode<synchronous>, transform_indices = @transform_1, window_bounds = array<i64: 1024, 1024>}, {pipeline_mode = #tpu.pipeline_mode<synchronous>, transform_indices = @transform_2, window_bounds = array<i64: 1, 1024>}, {transform_indices = @transform_3, window_bounds = array<i64: 8, 1024>}]} {
    %c0 = arith.constant 0 : index
    %c0_0 = arith.constant 0 : index
    %0 = vector.load %arg1[%c0, %c0_0] : memref<8x1024xf32, #tpu.memory_space<vmem>>, vector<8x1024xf32>
    %c0_1 = arith.constant 0 : index
    %c0_2 = arith.constant 0 : index
    %1 = vector.load %arg2[%c0_1, %c0_2] : memref<1024x1024xf32, #tpu.memory_space<vmem>>, vector<1024x1024xf32>
    %cst = arith.constant dense<0.000000e+00> : vector<8x1024xf32>
    %2 = tpu.matmul %0, %1, %cst {dimension_numbers = #tpu.dot_dimension_numbers<[1], [0], [0], [1], [0, 0, 1, 1], [], []>} : vector<8x1024xf32>, vector<1024x1024xf32>, vector<8x1024xf32> -> vector<8x1024xf32>
    %c0_3 = arith.constant 0 : index
    %c0_4 = arith.constant 0 : index
    %3 = vector.load %arg3[%c0_3, %c0_4] : memref<1x1024xf32, #tpu.memory_space<vmem>>, vector<1x1024xf32>
    %4 = vector.broadcast %3 : vector<1x1024xf32> to vector<8x1024xf32>
    %5 = arith.addf %2, %4 : vector<8x1024xf32>
    %c0_5 = arith.constant 0 : index
    %c0_6 = arith.constant 0 : index
    %6 = vector.load %arg4[%c0_5, %c0_6] : memref<8x1024xf32, #tpu.memory_space<vmem>>, vector<8x1024xf32>
    tpu.vector_store %arg4[%c0_5, %c0_6], %5 {strides = array<i32>} : memref<8x1024xf32, #tpu.memory_space<vmem>>, vector<8x1024xf32>,
    return
  }
  func.func @transform_0(%arg0: i32) -> (i32, i32) {
    %c0_i32 = arith.constant 0 : i32
    %c0_i32_0 = arith.constant 0 : i32
    return %arg0, %c0_i32 : i32, i32
  }
  func.func @transform_1(%arg0: i32) -> (i32, i32) {
    %c0_i32 = arith.constant 0 : i32
    %c0_i32_0 = arith.constant 0 : i32
    %c0_i32_1 = arith.constant 0 : i32
    return %c0_i32, %c0_i32_0 : i32, i32
  }
  func.func @transform_2(%arg0: i32) -> (i32, i32) {
    %c0_i32 = arith.constant 0 : i32
    %c0_i32_0 = arith.constant 0 : i32
    %c0_i32_1 = arith.constant 0 : i32
    return %c0_i32, %c0_i32_0 : i32, i32
  }
  func.func @transform_3(%arg0: i32) -> (i32, i32) {
    %c0_i32 = arith.constant 0 : i32
    %c0_i32_0 = arith.constant 0 : i32
    return %arg0, %c0_i32 : i32, i32
  }
}

</mosaic_0001>

<bundles_post_ra>
// kernel: tpu_custom_call.1
= control target key start
LH: loop header
LB: loop body
LE: loop exit
PB: predicated region body
PF: predicated region fallthrough
CT: control target
= control target key end

     0   :  { %8 = vsyncpa [#allocation3], 0  ;;  %s3544_s0 = inlined_call_operand.hbm [shape: f32[8,1024], index: 0, kind: input, shape index: {}]   ;;  %s3545_s1 = inlined_call_operand.hbm [shape: f32[1024,1024], index: 1, kind: input, shape index: {}]   ;;  %s3546_s2 = inlined_call_operand.hbm [shape: f32[1,1024], index: 2, kind: input, shape index: {}]   ;;  %s3547_s3 = inlined_call_operand.hbm [shape: f32[8,1024], index: 3, kind: output, shape index: {}]  }
   0x1   :  { %9 = vsyncpa [#allocation6], 0 }
   0x2   :  { %10 = vsyncpa [#allocation4], 0  ;;  %s3450_s12 = smov [#allocation5]   ;;  %s3356_s16 = scalar_lea.hbm %s3545_s1, 131072 }
   0x3   :  { %s26_s13 = sshll.u32 %s3450_s12, 4  ;;  %p3357_p0 = scmp.ne.s32.totalorder %s3545_s1, %s3356_s16  ;;  %s27_s13 = int_to_ptr.vmem [resolvable:$true] %s26_s13 }
   0x4   :  { %p3360_p1 = scmp.lt.u32.totalorder %s3356_s16, %s3545_s1 }
   0x6   :  { %p3362_p2 = pnand %p3360_p1, %p3357_p0 }
   0x8   :  { %3365 = shalt.err (!%p3362_p2)
}
   0x9   :  { %s3366_s21 = scalar_lea.vmem %s27_s13, 131072  ;;  %p3371_p4 = scmp.lt.s32.totalorder %s27_s13, %s27_s13 }
   0xa   :  { %p3367_p3 = scmp.ne.s32.totalorder %s27_s13, %s3366_s21  ;;  %p3372_p5 = scmp.lt.s32.totalorder %s3366_s21, %s3366_s21 }
   0xc   :  { %p3373_p6 = por %p3372_p5, %p3371_p4 }
   0xe   :  { %p3374_p7 = pnand %p3373_p6, %p3367_p3 }
  0x10   :  { %3377 = shalt.err (!%p3374_p7)
}
  0x11   :  { %s3451_s22 = smov 1024   ;;  %s3452_s23 = smov 64  }
  0x12   :  { %32 = dma.hbm_to_vmem [thread:$0]  %s3545_s1, 131072, %s27_s13, [#allocation6], %s3451_s22, %s3451_s22, %s3452_s23  }
  0x13   :  { %s3453_s26 = smov [#allocation2]   ;;  %s3454_s28 = smov [#allocation7]  }
  0x14   :  { %s17_s27 = sshll.u32 %s3453_s26, 4  ;;  %s39_s29 = sshll.u32 %s3454_s28, 4  ;;  %s18_s27 = int_to_ptr.vmem [resolvable:$true] %s17_s27  ;;  %s40_s29 = int_to_ptr.vmem [resolvable:$true] %s39_s29 }
  0x15   :  { %s3378_s5 = scalar_lea.hbm %s3544_s0, 1024 }
  0x16   :  { %p3379_p8 = scmp.ne.s32.totalorder %s3544_s0, %s3378_s5  ;;  %p3382_p9 = scmp.lt.u32.totalorder %s3378_s5, %s3544_s0 }
  0x18   :  { %p3384_p10 = pnand %p3382_p9, %p3379_p8 }
  0x1a   :  { %3387 = shalt.err (!%p3384_p10)
}
  0x1b   :  { %s3388_s1 = scalar_lea.vmem %s18_s27, 1024  ;;  %p3393_p12 = scmp.lt.s32.totalorder %s18_s27, %s18_s27 }
  0x1c   :  { %p3389_p11 = scmp.ne.s32.totalorder %s18_s27, %s3388_s1  ;;  %p3394_p13 = scmp.lt.s32.totalorder %s3388_s1, %s3388_s1 }
  0x1e   :  { %p3395_p0 = por %p3394_p13, %p3393_p12 }
  0x20   :  { %p3396_p1 = pnand %p3395_p0, %p3389_p11 }
  0x22   :  { %3399 = shalt.err (!%p3396_p1)
}
  0x23   :  { %20 = dma.hbm_to_vmem [thread:$0]  %s3544_s0, 1024, %s18_s27, [#allocation3]  }
  0x24   :  { %s3400_s14 = scalar_lea.hbm %s3546_s2, 128 }
  0x25   :  { %p3401_p2 = scmp.ne.s32.totalorder %s3546_s2, %s3400_s14  ;;  %p3404_p3 = scmp.lt.u32.totalorder %s3400_s14, %s3546_s2 }
  0x27   :  { %p3406_p4 = pnand %p3404_p3, %p3401_p2 }
  0x29   :  { %3409 = shalt.err (!%p3406_p4)
}
  0x2a   :  { %s3410_s19 = scalar_lea.vmem %s40_s29, 128  ;;  %p3415_p6 = scmp.lt.s32.totalorder %s40_s29, %s40_s29 }
  0x2b   :  { %p3411_p5 = scmp.ne.s32.totalorder %s40_s29, %s3410_s19  ;;  %p3416_p7 = scmp.lt.s32.totalorder %s3410_s19, %s3410_s19 }
  0x2d   :  { %p3417_p8 = por %p3416_p7, %p3415_p6 }
  0x2f   :  { %p3418_p9 = pnand %p3417_p8, %p3411_p5 }
  0x31   :  { %3421 = shalt.err (!%p3418_p9)
}
  0x32   :  { %42 = dma.hbm_to_vmem [thread:$0]  %s3546_s2, 128, %s40_s29, [#allocation6]  }
  0x33   :  { %3444 = dma.done.wait [#allocation3], 1024  }
  0x34   :  { %3445 = vsyncadd [#allocation3], 4294966272 }
  0x35   :  { %3446 = dma.done.wait [#allocation6], 131200  }
  0x36   :  { %3447 = vsyncadd [#allocation6], 4294836096  ;;  %v61_v0 = vld [vmem:[#allocation5 + $0x8] sm:$0xff]  ;;  %v63_v2 = vld [vmem:[#allocation5 + $0x18] sm:$0xff]  ;;  %s3455_s2 = smov [#allocation8]  }
  0x37   :  { %v69_v1 = vld [vmem:[#allocation5 + $0x48] sm:$0xff]  ;;  %v71_v4 = vld [vmem:[#allocation5 + $0x58] sm:$0xff]  ;;  %v60_v5 = vld [vmem:[#allocation5] sm:$0xff]  ;;  %s2276_s21 = sshll.u32 %s3455_s2, 4  ;;  %s2277_s21 = int_to_ptr.vmem [resolvable:$true] %s2276_s21 }
  0x38   :  { %v2286_v3 = vpack.c.bf16 %v69_v1, %v61_v0  ;;  %v68_v6 = vld [vmem:[#allocation5 + $0x40] sm:$0xff]  ;;  %v2542_v7 = vpack.c.bf16 %v71_v4, %v63_v2  ;;  %v62_v9 = vld [vmem:[#allocation5 + $0x10] sm:$0xff]  ;;  %v77_v11 = vld [vmem:[#allocation5 + $0x88] sm:$0xff]  ;;  %s3422_s22 = scalar_lea.vmem %s2277_s21, 1024  ;;  %p3427_p11 = scmp.lt.s32.totalorder %s2277_s21, %s2277_s21 }
  0x39   :  { %v2288_v8 = vpack.c.bf16 %v68_v6, %v60_v5  ;;  %v70_v10 = vld [vmem:[#allocation5 + $0x50] sm:$0xff]  ;;  %v85_v13 = vld [vmem:[#allocation5 + $0xc8] sm:$0xff]  ;;  %v79_v14 = vld [vmem:[#allocation5 + $0x98] sm:$0xff]  ;;  %p3423_p10 = scmp.ne.s32.totalorder %s2277_s21, %s3422_s22  ;;  %p3428_p12 = scmp.lt.s32.totalorder %s3422_s22, %s3422_s22 }
  0x3a   :  { %2287 = vmatprep.subr.bf16.mxu0 %v2286_v3  ;;  %v2544_v12 = vpack.c.bf16 %v70_v10, %v62_v9  ;;  %v87_v15 = vld [vmem:[#allocation5 + $0xd8] sm:$0xff]  ;;  %2543 = vmatprep.subr.bf16.mxu1 %v2542_v7  ;;  %v2290_v16 = vpack.c.bf16 %v85_v13, %v77_v11  ;;  %v76_v18 = vld [vmem:[#allocation5 + $0x80] sm:$0xff]  ;;  %v78_v20 = vld [vmem:[#allocation5 + $0x90] sm:$0xff] }
  0x3b   :  { %2289 = vmatpush1.bf16.msra.mxu0 %v2288_v8  ;;  %v2546_v17 = vpack.c.bf16 %v87_v15, %v79_v14  ;;  %v84_v19 = vld [vmem:[#allocation5 + $0xc0] sm:$0xff]  ;;  %v86_v22 = vld [vmem:[#allocation5 + $0xd0] sm:$0xff]  ;;  %v93_v23 = vld [vmem:[#allocation5 + $0x108] sm:$0xff]  ;;  %p3429_p13 = por %p3428_p12, %p3427_p11 }
  0x3c   :  { %2545 = vmatpush1.bf16.msra.mxu1 %v2544_v12  ;;  %v2292_v21 = vpack.c.bf16 %v84_v19, %v76_v18  ;;  %v101_v24 = vld [vmem:[#allocation5 + $0x148] sm:$0xff]  ;;  %2291 = vmatprep.subr.bf16.mxu0 %v2290_v16  ;;  %v2548_v25 = vpack.c.bf16 %v86_v22, %v78_v20  ;;  %v95_v27 = vld [vmem:[#allocation5 + $0x118] sm:$0xff]  ;;  %v92_v29 = vld [vmem:[#allocation5 + $0x100] sm:$0xff] }
  0x3d   :  { %2547 = vmatprep.subr.bf16.mxu1 %v2546_v17  ;;  %v2294_v26 = vpack.c.bf16 %v101_v24, %v93_v23  ;;  %v103_v28 = vld [vmem:[#allocation5 + $0x158] sm:$0xff]  ;;  %v100_v31 = vld [vmem:[#allocation5 + $0x140] sm:$0xff]  ;;  %v94_v32 = vld [vmem:[#allocation5 + $0x110] sm:$0xff]  ;;  %p3430_p0 = pnand %p3429_p13, %p3423_p10 }
  0x3e   :  { %v2550_v30 = vpack.c.bf16 %v103_v28, %v95_v27  ;;  %v102_v33 = vld [vmem:[#allocation5 + $0x150] sm:$0xff]  ;;  %v2296_v34 = vpack.c.bf16 %v100_v31, %v92_v29  ;;  %v109_v35 = vld [vmem:[#allocation5 + $0x188] sm:$0xff]  ;;  %v111_v37 = vld [vmem:[#allocation5 + $0x198] sm:$0xff] }
  0x3f   :  { %2293 = vmatpush1.bf16.msra.mxu0 %v2292_v21  ;;  %v117_v36 = vld [vmem:[#allocation5 + $0x1c8] sm:$0xff]  ;;  %v2552_v38 = vpack.c.bf16 %v102_v33, %v94_v32  ;;  %v119_v40 = vld [vmem:[#allocation5 + $0x1d8] sm:$0xff]  ;;  %v108_v41 = vld [vmem:[#allocation5 + $0x180] sm:$0xff] }
  0x40   :  { %2549 = vmatpush1.bf16.msra.mxu1 %v2548_v25  ;;  %2295 = vmatprep.subr.bf16.mxu0 %v2294_v26  ;;  %v2298_v39 = vpack.c.bf16 %v117_v36, %v109_v35  ;;  %v116_v42 = vld [vmem:[#allocation5 + $0x1c0] sm:$0xff]  ;;  %v2554_v43 = vpack.c.bf16 %v119_v40, %v111_v37  ;;  %v110_v44 = vld [vmem:[#allocation5 + $0x190] sm:$0xff]  ;;  %v125_v46 = vld [vmem:[#allocation5 + $0x208] sm:$0xff] }
  0x41   :  { %2551 = vmatprep.subr.bf16.mxu1 %v2550_v30  ;;  %v118_v45 = vld [vmem:[#allocation5 + $0x1d0] sm:$0xff]  ;;  %v133_v47 = vld [vmem:[#allocation5 + $0x248] sm:$0xff]  ;;  %v127_v48 = vld [vmem:[#allocation5 + $0x218] sm:$0xff]  ;;  %v2300_v50 = vpack.c.bf16 %v116_v42, %v108_v41 }
  0x42   :  { %v135_v49 = vld [vmem:[#allocation5 + $0x258] sm:$0xff]  ;;  %v2556_v51 = vpack.c.bf16 %v118_v45, %v110_v44  ;;  %v2302_v52 = vpack.c.bf16 %v133_v47, %v125_v46  ;;  %v124_v53 = vld [vmem:[#allocation5 + $0x200] sm:$0xff]  ;;  %v126_v55 = vld [vmem:[#allocation5 + $0x210] sm:$0xff] }
  0x43   :  { %2297 = vmatpush1.bf16.msra.mxu0 %v2296_v34  ;;  %v132_v54 = vld [vmem:[#allocation5 + $0x240] sm:$0xff]  ;;  %v2558_v56 = vpack.c.bf16 %v135_v49, %v127_v48  ;;  %v134_v57 = vld [vmem:[#allocation5 + $0x250] sm:$0xff]  ;;  %v141_v58 = vld [vmem:[#allocation5 + $0x288] sm:$0xff] }
  0x44   :  { %2553 = vmatpush1.bf16.msra.mxu1 %v2552_v38  ;;  %2299 = vmatprep.subr.bf16.mxu0 %v2298_v39  ;;  %v149_v59 = vld [vmem:[#allocation5 + $0x2c8] sm:$0xff]  ;;  %v143_v60 = vld [vmem:[#allocation5 + $0x298] sm:$0xff]  ;;  %v2304_v62 = vpack.c.bf16 %v132_v54, %v124_v53  ;;  %v2560_v63 = vpack.c.bf16 %v134_v57, %v126_v55  ;;  %v140_v1 = vld [vmem:[#allocation5 + $0x280] sm:$0xff] }
  0x45   :  { %2555 = vmatprep.subr.bf16.mxu1 %v2554_v43  ;;  %v151_v61 = vld [vmem:[#allocation5 + $0x2d8] sm:$0xff]  ;;  %v2306_v0 = vpack.c.bf16 %v149_v59, %v141_v58  ;;  %v148_v2 = vld [vmem:[#allocation5 + $0x2c0] sm:$0xff]  ;;  %v142_v3 = vld [vmem:[#allocation5 + $0x290] sm:$0xff] }
  0x46   :  { %v2562_v4 = vpack.c.bf16 %v151_v61, %v143_v60  ;;  %v150_v5 = vld [vmem:[#allocation5 + $0x2d0] sm:$0xff]  ;;  %v157_v6 = vld [vmem:[#allocation5 + $0x308] sm:$0xff]  ;;  %v159_v8 = vld [vmem:[#allocation5 + $0x318] sm:$0xff]  ;;  %v2308_v10 = vpack.c.bf16 %v148_v2, %v140_v1 }
  0x47   :  { %2301 = vmatpush1.bf16.msra.mxu0 %v2300_v50  ;;  %v165_v7 = vld [vmem:[#allocation5 + $0x348] sm:$0xff]  ;;  %v167_v9 = vld [vmem:[#allocation5 + $0x358] sm:$0xff]  ;;  %v2564_v11 = vpack.c.bf16 %v150_v5, %v142_v3  ;;  %v156_v13 = vld [vmem:[#allocation5 + $0x300] sm:$0xff] }
  0x48   :  { %2557 = vmatpush1.bf16.msra.mxu1 %v2556_v51  ;;  %2303 = vmatprep.subr.bf16.mxu0 %v2302_v52  ;;  %v2310_v12 = vpack.c.bf16 %v165_v7, %v157_v6  ;;  %v164_v14 = vld [vmem:[#allocation5 + $0x340] sm:$0xff]  ;;  %v158_v15 = vld [vmem:[#allocation5 + $0x310] sm:$0xff]  ;;  %v2566_v16 = vpack.c.bf16 %v167_v9, %v159_v8  ;;  %v173_v18 = vld [vmem:[#allocation5 + $0x388] sm:$0xff] }
  0x49   :  { %2559 = vmatprep.subr.bf16.mxu1 %v2558_v56  ;;  %v166_v17 = vld [vmem:[#allocation5 + $0x350] sm:$0xff]  ;;  %v181_v19 = vld [vmem:[#allocation5 + $0x3c8] sm:$0xff]  ;;  %v175_v20 = vld [vmem:[#allocation5 + $0x398] sm:$0xff]  ;;  %v2312_v22 = vpack.c.bf16 %v164_v14, %v156_v13 }
  0x4a   :  { %v183_v21 = vld [vmem:[#allocation5 + $0x3d8] sm:$0xff]  ;;  %v2568_v23 = vpack.c.bf16 %v166_v17, %v158_v15  ;;  %v2314_v24 = vpack.c.bf16 %v181_v19, %v173_v18  ;;  %v172_v25 = vld [vmem:[#allocation5 + $0x380] sm:$0xff]  ;;  %v174_v27 = vld [vmem:[#allocation5 + $0x390] sm:$0xff] }
  0x4b   :  { %2305 = vmatpush1.bf16.msra.mxu0 %v2304_v62  ;;  %v180_v26 = vld [vmem:[#allocation5 + $0x3c0] sm:$0xff]  ;;  %v2570_v28 = vpack.c.bf16 %v183_v21, %v175_v20  ;;  %v182_v29 = vld [vmem:[#allocation5 + $0x3d0] sm:$0xff]  ;;  %v189_v30 = vld [vmem:[#allocation5 + $0x408] sm:$0xff] }
  0x4c   :  { %2561 = vmatpush1.bf16.msra.mxu1 %v2560_v63  ;;  %2307 = vmatprep.subr.bf16.mxu0 %v2306_v0  ;;  %v197_v31 = vld [vmem:[#allocation5 + $0x448] sm:$0xff]  ;;  %v191_v32 = vld [vmem:[#allocation5 + $0x418] sm:$0xff]  ;;  %v2316_v34 = vpack.c.bf16 %v180_v26, %v172_v25  ;;  %v2572_v35 = vpack.c.bf16 %v182_v29, %v174_v27  ;;  %v188_v37 = vld [vmem:[#allocation5 + $0x400] sm:$0xff] }
  0x4d   :  { %2563 = vmatprep.subr.bf16.mxu1 %v2562_v4  ;;  %v199_v33 = vld [vmem:[#allocation5 + $0x458] sm:$0xff]  ;;  %v2318_v36 = vpack.c.bf16 %v197_v31, %v189_v30  ;;  %v196_v38 = vld [vmem:[#allocation5 + $0x440] sm:$0xff]  ;;  %v190_v39 = vld [vmem:[#allocation5 + $0x410] sm:$0xff] }
  0x4e   :  { %v2574_v40 = vpack.c.bf16 %v199_v33, %v191_v32  ;;  %v198_v41 = vld [vmem:[#allocation5 + $0x450] sm:$0xff]  ;;  %v205_v42 = vld [vmem:[#allocation5 + $0x488] sm:$0xff]  ;;  %v207_v44 = vld [vmem:[#allocation5 + $0x498] sm:$0xff]  ;;  %v2320_v46 = vpack.c.bf16 %v196_v38, %v188_v37 }
  0x4f   :  { %2309 = vmatpush1.bf16.msra.mxu0 %v2308_v10  ;;  %v213_v43 = vld [vmem:[#allocation5 + $0x4c8] sm:$0xff]  ;;  %v215_v45 = vld [vmem:[#allocation5 + $0x4d8] sm:$0xff]  ;;  %v2576_v47 = vpack.c.bf16 %v198_v41, %v190_v39  ;;  %v204_v49 = vld [vmem:[#allocation5 + $0x480] sm:$0xff] }
  0x50   :  { %2565 = vmatpush1.bf16.msra.mxu1 %v2564_v11  ;;  %2311 = vmatprep.subr.bf16.mxu0 %v2310_v12  ;;  %v2322_v48 = vpack.c.bf16 %v213_v43, %v205_v42  ;;  %v212_v50 = vld [vmem:[#allocation5 + $0x4c0] sm:$0xff]  ;;  %v206_v51 = vld [vmem:[#allocation5 + $0x490] sm:$0xff]  ;;  %v2578_v52 = vpack.c.bf16 %v215_v45, %v207_v44  ;;  %v221_v54 = vld [vmem:[#allocation5 + $0x508] sm:$0xff] }
  0x51   :  { %2567 = vmatprep.subr.bf16.mxu1 %v2566_v16  ;;  %v214_v53 = vld [vmem:[#allocation5 + $0x4d0] sm:$0xff]  ;;  %v229_v55 = vld [vmem:[#allocation5 + $0x548] sm:$0xff]  ;;  %v223_v56 = vld [vmem:[#allocation5 + $0x518] sm:$0xff]  ;;  %v2324_v58 = vpack.c.bf16 %v212_v50, %v204_v49 }
  0x52   :  { %v231_v57 = vld [vmem:[#allocation5 + $0x558] sm:$0xff]  ;;  %v2580_v59 = vpack.c.bf16 %v214_v53, %v206_v51  ;;  %v2326_v60 = vpack.c.bf16 %v229_v55, %v221_v54  ;;  %v220_v61 = vld [vmem:[#allocation5 + $0x500] sm:$0xff]  ;;  %v222_v63 = vld [vmem:[#allocation5 + $0x510] sm:$0xff] }
  0x53   :  { %2313 = vmatpush1.bf16.msra.mxu0 %v2312_v22  ;;  %v228_v62 = vld [vmem:[#allocation5 + $0x540] sm:$0xff]  ;;  %v2582_v0 = vpack.c.bf16 %v231_v57, %v223_v56  ;;  %v230_v1 = vld [vmem:[#allocation5 + $0x550] sm:$0xff]  ;;  %v237_v2 = vld [vmem:[#allocation5 + $0x588] sm:$0xff] }
  0x54   :  { %2569 = vmatpush1.bf16.msra.mxu1 %v2568_v23  ;;  %2315 = vmatprep.subr.bf16.mxu0 %v2314_v24  ;;  %v245_v3 = vld [vmem:[#allocation5 + $0x5c8] sm:$0xff]  ;;  %v239_v4 = vld [vmem:[#allocation5 + $0x598] sm:$0xff]  ;;  %v2328_v6 = vpack.c.bf16 %v228_v62, %v220_v61  ;;  %v236_v7 = vld [vmem:[#allocation5 + $0x580] sm:$0xff]  ;;  %v2584_v8 = vpack.c.bf16 %v230_v1, %v222_v63 }
  0x55   :  { %2571 = vmatprep.subr.bf16.mxu1 %v2570_v28  ;;  %v247_v5 = vld [vmem:[#allocation5 + $0x5d8] sm:$0xff]  ;;  %v2330_v9 = vpack.c.bf16 %v245_v3, %v237_v2  ;;  %v244_v10 = vld [vmem:[#allocation5 + $0x5c0] sm:$0xff]  ;;  %v238_v11 = vld [vmem:[#allocation5 + $0x590] sm:$0xff] }
  0x56   :  { %v246_v12 = vld [vmem:[#allocation5 + $0x5d0] sm:$0xff]  ;;  %v2586_v13 = vpack.c.bf16 %v247_v5, %v239_v4  ;;  %v253_v14 = vld [vmem:[#allocation5 + $0x608] sm:$0xff]  ;;  %v255_v17 = vld [vmem:[#allocation5 + $0x618] sm:$0xff]  ;;  %v2332_v19 = vpack.c.bf16 %v244_v10, %v236_v7 }
  0x57   :  { %2317 = vmatpush1.bf16.msra.mxu0 %v2316_v34  ;;  %v261_v15 = vld [vmem:[#allocation5 + $0x648] sm:$0xff]  ;;  %v263_v18 = vld [vmem:[#allocation5 + $0x658] sm:$0xff]  ;;  %v2588_v20 = vpack.c.bf16 %v246_v12, %v238_v11  ;;  %v252_v22 = vld [vmem:[#allocation5 + $0x600] sm:$0xff] }
  0x58   :  { %2573 = vmatpush1.bf16.msra.mxu1 %v2572_v35  ;;  %2319 = vmatprep.subr.bf16.mxu0 %v2318_v36  ;;  %v53_v16 = vld [vmem:[#allocation2 + $0x8] sm:$0xff]  ;;  %v2334_v21 = vpack.c.bf16 %v261_v15, %v253_v14  ;;  %v260_v23 = vld [vmem:[#allocation5 + $0x640] sm:$0xff]  ;;  %v254_v24 = vld [vmem:[#allocation5 + $0x610] sm:$0xff]  ;;  %v2590_v25 = vpack.c.bf16 %v263_v18, %v255_v17 }
  0x59   :  { %2575 = vmatprep.subr.bf16.mxu1 %v2574_v40  ;;  %1190 = vmatprep.mubr.f32.mxu0 %v53_v16  ;;  %v262_v26 = vld [vmem:[#allocation5 + $0x650] sm:$0xff]  ;;  %v269_v27 = vld [vmem:[#allocation5 + $0x688] sm:$0xff]  ;;  %v271_v29 = vld [vmem:[#allocation5 + $0x698] sm:$0xff]  ;;  %v2336_v31 = vpack.c.bf16 %v260_v23, %v252_v22 }
  0x5a   :  { %1474 = vmatprep.mubr.f32.mxu1 %v53_v16  ;;  %v277_v28 = vld [vmem:[#allocation5 + $0x6c8] sm:$0xff]  ;;  %v279_v30 = vld [vmem:[#allocation5 + $0x6d8] sm:$0xff]  ;;  %v2592_v32 = vpack.c.bf16 %v262_v26, %v254_v24  ;;  %v268_v34 = vld [vmem:[#allocation5 + $0x680] sm:$0xff] }
  0x5b   :  { %2321 = vmatpush1.bf16.msra.mxu0 %v2320_v46  ;;  %v2338_v33 = vpack.c.bf16 %v277_v28, %v269_v27  ;;  %v276_v35 = vld [vmem:[#allocation5 + $0x6c0] sm:$0xff]  ;;  %v270_v36 = vld [vmem:[#allocation5 + $0x690] sm:$0xff]  ;;  %v2594_v37 = vpack.c.bf16 %v279_v30, %v271_v29  ;;  %v285_v39 = vld [vmem:[#allocation5 + $0x708] sm:$0xff] }
  0x5c   :  { %2577 = vmatpush1.bf16.msra.mxu1 %v2576_v47  ;;  %2323 = vmatprep.subr.bf16.mxu0 %v2322_v48  ;;  %v278_v38 = vld [vmem:[#allocation5 + $0x6d0] sm:$0xff]  ;;  %v293_v40 = vld [vmem:[#allocation5 + $0x748] sm:$0xff]  ;;  %v287_v41 = vld [vmem:[#allocation5 + $0x718] sm:$0xff]  ;;  %v2340_v43 = vpack.c.bf16 %v276_v35, %v268_v34 }
  0x5d   :  { %2579 = vmatprep.subr.bf16.mxu1 %v2578_v52  ;;  %v295_v42 = vld [vmem:[#allocation5 + $0x758] sm:$0xff]  ;;  %v2596_v44 = vpack.c.bf16 %v278_v38, %v270_v36  ;;  %v2342_v45 = vpack.c.bf16 %v293_v40, %v285_v39  ;;  %v284_v46 = vld [vmem:[#allocation5 + $0x700] sm:$0xff]  ;;  %v286_v48 = vld [vmem:[#allocation5 + $0x710] sm:$0xff] }
  0x5e   :  { %v292_v47 = vld [vmem:[#allocation5 + $0x740] sm:$0xff]  ;;  %v2598_v49 = vpack.c.bf16 %v295_v42, %v287_v41  ;;  %v294_v50 = vld [vmem:[#allocation5 + $0x750] sm:$0xff]  ;;  %v301_v51 = vld [vmem:[#allocation5 + $0x788] sm:$0xff] }
  0x5f   :  { %2325 = vmatpush1.bf16.msra.mxu0 %v2324_v58  ;;  %v309_v52 = vld [vmem:[#allocation5 + $0x7c8] sm:$0xff]  ;;  %v303_v53 = vld [vmem:[#allocation5 + $0x798] sm:$0xff]  ;;  %v2344_v55 = vpack.c.bf16 %v292_v47, %v284_v46  ;;  %v2600_v56 = vpack.c.bf16 %v294_v50, %v286_v48  ;;  %v300_v58 = vld [vmem:[#allocation5 + $0x780] sm:$0xff] }
  0x60   :  { %2581 = vmatpush1.bf16.msra.mxu1 %v2580_v59  ;;  %2327 = vmatprep.subr.bf16.mxu0 %v2326_v60  ;;  %v311_v54 = vld [vmem:[#allocation5 + $0x7d8] sm:$0xff]  ;;  %v2346_v57 = vpack.c.bf16 %v309_v52, %v301_v51  ;;  %v308_v59 = vld [vmem:[#allocation5 + $0x7c0] sm:$0xff]  ;;  %v302_v60 = vld [vmem:[#allocation5 + $0x790] sm:$0xff] }
  0x61   :  { %2583 = vmatprep.subr.bf16.mxu1 %v2582_v0  ;;  %v2602_v61 = vpack.c.bf16 %v311_v54, %v303_v53  ;;  %v310_v62 = vld [vmem:[#allocation5 + $0x7d0] sm:$0xff]  ;;  %v317_v63 = vld [vmem:[#allocation5 + $0x808] sm:$0xff]  ;;  %v319_v1 = vld [vmem:[#allocation5 + $0x818] sm:$0xff]  ;;  %v2348_v3 = vpack.c.bf16 %v308_v59, %v300_v58 }
  0x62   :  { %v325_v0 = vld [vmem:[#allocation5 + $0x848] sm:$0xff]  ;;  %v327_v2 = vld [vmem:[#allocation5 + $0x858] sm:$0xff]  ;;  %v2604_v4 = vpack.c.bf16 %v310_v62, %v302_v60  ;;  %v324_v7 = vld [vmem:[#allocation5 + $0x840] sm:$0xff] }
  0x63   :  { %2329 = vmatpush1.bf16.msra.mxu0 %v2328_v6  ;;  %v2350_v5 = vpack.c.bf16 %v325_v0, %v317_v63  ;;  %v316_v6 = vld [vmem:[#allocation5 + $0x800] sm:$0xff]  ;;  %v326_v10 = vld [vmem:[#allocation5 + $0x850] sm:$0xff]  ;;  %v333_v11 = vld [vmem:[#allocation5 + $0x888] sm:$0xff] }
  0x64   :  { %2585 = vmatpush1.bf16.msra.mxu1 %v2584_v8  ;;  %2331 = vmatprep.subr.bf16.mxu0 %v2330_v9  ;;  %v318_v8 = vld [vmem:[#allocation5 + $0x810] sm:$0xff]  ;;  %v2606_v9 = vpack.c.bf16 %v327_v2, %v319_v1  ;;  %v341_v12 = vld [vmem:[#allocation5 + $0x8c8] sm:$0xff]  ;;  %v343_v14 = vld [vmem:[#allocation5 + $0x8d8] sm:$0xff]  ;;  %v2352_v16 = vpack.c.bf16 %v324_v7, %v316_v6 }
  0x65   :  { %2587 = vmatprep.subr.bf16.mxu1 %v2586_v13  ;;  %v335_v13 = vld [vmem:[#allocation5 + $0x898] sm:$0xff]  ;;  %v52_v15 = vld [vmem:[#allocation2] sm:$0xff]  ;;  %v2608_v17 = vpack.c.bf16 %v326_v10, %v318_v8  ;;  %v2354_v18 = vpack.c.bf16 %v341_v12, %v333_v11  ;;  %v342_v23 = vld [vmem:[#allocation5 + $0x8d0] sm:$0xff] }
  0x66   :  { %v2610_v22 = vpack.c.bf16 %v343_v14, %v335_v13  ;;  %v349_v24 = vld [vmem:[#allocation5 + $0x908] sm:$0xff]  ;;  %v351_v26 = vld [vmem:[#allocation5 + $0x918] sm:$0xff]  ;;  %v358_v35 = vld [vmem:[#allocation5 + $0x950] sm:$0xff] }
  0x67   :  { %2333 = vmatpush1.bf16.msra.mxu0 %v2332_v19  ;;  %v332_v19 = vld [vmem:[#allocation5 + $0x880] sm:$0xff]  ;;  %v359_v27 = vld [vmem:[#allocation5 + $0x958] sm:$0xff]  ;;  %v365_v36 = vld [vmem:[#allocation5 + $0x988] sm:$0xff] }
  0x68   :  { %2589 = vmatpush1.bf16.msra.mxu1 %v2588_v20  ;;  %2335 = vmatprep.subr.bf16.mxu0 %v2334_v21  ;;  %v340_v20 = vld [vmem:[#allocation5 + $0x8c0] sm:$0xff]  ;;  %v334_v21 = vld [vmem:[#allocation5 + $0x890] sm:$0xff]  ;;  %v2614_v34 = vpack.c.bf16 %v359_v27, %v351_v26  ;;  %v367_v38 = vld [vmem:[#allocation5 + $0x998] sm:$0xff] }
  0x69   :  { %2591 = vmatprep.subr.bf16.mxu1 %v2590_v25  ;;  %v357_v25 = vld [vmem:[#allocation5 + $0x948] sm:$0xff]  ;;  %v2356_v28 = vpack.c.bf16 %v340_v20, %v332_v19  ;;  %v2612_v29 = vpack.c.bf16 %v342_v23, %v334_v21  ;;  %v375_v39 = vld [vmem:[#allocation5 + $0x9d8] sm:$0xff]  ;;  %v374_v47 = vld [vmem:[#allocation5 + $0x9d0] sm:$0xff] }
  0x6a   :  { %v2358_v30 = vpack.c.bf16 %v357_v25, %v349_v24  ;;  %v2618_v46 = vpack.c.bf16 %v375_v39, %v367_v38  ;;  %v381_v48 = vld [vmem:[#allocation5 + $0xa08] sm:$0xff]  ;;  %v383_v50 = vld [vmem:[#allocation5 + $0xa18] sm:$0xff]  ;;  %v390_v59 = vld [vmem:[#allocation5 + $0xa50] sm:$0xff] }
  0x6b   :  { %2337 = vmatpush1.bf16.msra.mxu0 %v2336_v31  ;;  %v348_v31 = vld [vmem:[#allocation5 + $0x900] sm:$0xff]  ;;  %v391_v51 = vld [vmem:[#allocation5 + $0xa58] sm:$0xff]  ;;  %v397_v60 = vld [vmem:[#allocation5 + $0xa88] sm:$0xff] }
  0x6c   :  { %2593 = vmatpush1.bf16.msra.mxu1 %v2592_v32  ;;  %2339 = vmatprep.subr.bf16.mxu0 %v2338_v33  ;;  %v356_v32 = vld [vmem:[#allocation5 + $0x940] sm:$0xff]  ;;  %v350_v33 = vld [vmem:[#allocation5 + $0x910] sm:$0xff]  ;;  %v2622_v58 = vpack.c.bf16 %v391_v51, %v383_v50  ;;  %v399_v62 = vld [vmem:[#allocation5 + $0xa98] sm:$0xff] }
  0x6d   :  { %2595 = vmatprep.subr.bf16.mxu1 %v2594_v37  ;;  %v373_v37 = vld [vmem:[#allocation5 + $0x9c8] sm:$0xff]  ;;  %v2360_v40 = vpack.c.bf16 %v356_v32, %v348_v31  ;;  %v2616_v41 = vpack.c.bf16 %v358_v35, %v350_v33  ;;  %v407_v63 = vld [vmem:[#allocation5 + $0xad8] sm:$0xff]  ;;  %v406_v7 = vld [vmem:[#allocation5 + $0xad0] sm:$0xff] }
  0x6e   :  { %v2362_v42 = vpack.c.bf16 %v373_v37, %v365_v36  ;;  %v2626_v6 = vpack.c.bf16 %v407_v63, %v399_v62  ;;  %v413_v8 = vld [vmem:[#allocation5 + $0xb08] sm:$0xff]  ;;  %v415_v10 = vld [vmem:[#allocation5 + $0xb18] sm:$0xff]  ;;  %v412_v13 = vld [vmem:[#allocation5 + $0xb00] sm:$0xff] }
  0x6f   :  { %2341 = vmatpush1.bf16.msra.mxu0 %v2340_v43  ;;  %v364_v43 = vld [vmem:[#allocation5 + $0x980] sm:$0xff]  ;;  %v423_v11 = vld [vmem:[#allocation5 + $0xb58] sm:$0xff]  ;;  %v429_v20 = vld [vmem:[#allocation5 + $0xb88] sm:$0xff] }
  0x70   :  { %2597 = vmatpush1.bf16.msra.mxu1 %v2596_v44  ;;  %2343 = vmatprep.subr.bf16.mxu0 %v2342_v45  ;;  %v372_v44 = vld [vmem:[#allocation5 + $0x9c0] sm:$0xff]  ;;  %v366_v45 = vld [vmem:[#allocation5 + $0x990] sm:$0xff]  ;;  %v2630_v19 = vpack.c.bf16 %v423_v11, %v415_v10  ;;  %v437_v21 = vld [vmem:[#allocation5 + $0xbc8] sm:$0xff] }
  0x71   :  { %2599 = vmatprep.subr.bf16.mxu1 %v2598_v49  ;;  %v389_v49 = vld [vmem:[#allocation5 + $0xa48] sm:$0xff]  ;;  %v2364_v52 = vpack.c.bf16 %v372_v44, %v364_v43  ;;  %v2620_v53 = vpack.c.bf16 %v374_v47, %v366_v45  ;;  %v431_v23 = vld [vmem:[#allocation5 + $0xb98] sm:$0xff]  ;;  %v2378_v27 = vpack.c.bf16 %v437_v21, %v429_v20  ;;  %v438_v32 = vld [vmem:[#allocation5 + $0xbd0] sm:$0xff] }
  0x72   :  { %v2366_v54 = vpack.c.bf16 %v389_v49, %v381_v48  ;;  %v439_v24 = vld [vmem:[#allocation5 + $0xbd8] sm:$0xff]  ;;  %v445_v33 = vld [vmem:[#allocation5 + $0xc08] sm:$0xff]  ;;  %v454_v44 = vld [vmem:[#allocation5 + $0xc50] sm:$0xff] }
  0x73   :  { %2345 = vmatpush1.bf16.msra.mxu0 %v2344_v55  ;;  %v380_v55 = vld [vmem:[#allocation5 + $0xa00] sm:$0xff]  ;;  %v2634_v31 = vpack.c.bf16 %v439_v24, %v431_v23  ;;  %v447_v35 = vld [vmem:[#allocation5 + $0xc18] sm:$0xff]  ;;  %v461_v45 = vld [vmem:[#allocation5 + $0xc88] sm:$0xff] }
  0x74   :  { %2601 = vmatpush1.bf16.msra.mxu1 %v2600_v56  ;;  %2347 = vmatprep.subr.bf16.mxu0 %v2346_v57  ;;  %v388_v56 = vld [vmem:[#allocation5 + $0xa40] sm:$0xff]  ;;  %v382_v57 = vld [vmem:[#allocation5 + $0xa10] sm:$0xff]  ;;  %v455_v36 = vld [vmem:[#allocation5 + $0xc58] sm:$0xff] }
  0x75   :  { %2603 = vmatprep.subr.bf16.mxu1 %v2602_v61  ;;  %v405_v61 = vld [vmem:[#allocation5 + $0xac8] sm:$0xff]  ;;  %v2368_v0 = vpack.c.bf16 %v388_v56, %v380_v55  ;;  %v2624_v1 = vpack.c.bf16 %v390_v59, %v382_v57  ;;  %v2638_v43 = vpack.c.bf16 %v455_v36, %v447_v35  ;;  %v463_v47 = vld [vmem:[#allocation5 + $0xc98] sm:$0xff]  ;;  %v470_v56 = vld [vmem:[#allocation5 + $0xcd0] sm:$0xff] }
  0x76   :  { %v2370_v2 = vpack.c.bf16 %v405_v61, %v397_v60  ;;  %v471_v48 = vld [vmem:[#allocation5 + $0xcd8] sm:$0xff]  ;;  %v477_v57 = vld [vmem:[#allocation5 + $0xd08] sm:$0xff]  ;;  %v508_v24 = vld [vmem:[#allocation5 + $0xe00] sm:$0xff] }
  0x77   :  { %2349 = vmatpush1.bf16.msra.mxu0 %v2348_v3  ;;  %v396_v3 = vld [vmem:[#allocation5 + $0xa80] sm:$0xff]  ;;  %v2642_v55 = vpack.c.bf16 %v471_v48, %v463_v47  ;;  %v479_v59 = vld [vmem:[#allocation5 + $0xd18] sm:$0xff] }
  0x78   :  { %2605 = vmatpush1.bf16.msra.mxu1 %v2604_v4  ;;  %2351 = vmatprep.subr.bf16.mxu0 %v2350_v5  ;;  %v404_v4 = vld [vmem:[#allocation5 + $0xac0] sm:$0xff]  ;;  %v398_v5 = vld [vmem:[#allocation5 + $0xa90] sm:$0xff]  ;;  %v487_v60 = vld [vmem:[#allocation5 + $0xd58] sm:$0xff] }
  0x79   :  { %2607 = vmatprep.subr.bf16.mxu1 %v2606_v9  ;;  %v421_v9 = vld [vmem:[#allocation5 + $0xb48] sm:$0xff]  ;;  %v2372_v12 = vpack.c.bf16 %v404_v4, %v396_v3  ;;  %v2628_v14 = vpack.c.bf16 %v406_v7, %v398_v5  ;;  %v2646_v3 = vpack.c.bf16 %v487_v60, %v479_v59  ;;  %v486_v4 = vld [vmem:[#allocation5 + $0xd50] sm:$0xff]  ;;  %v495_v7 = vld [vmem:[#allocation5 + $0xd98] sm:$0xff] }
  0x7a   :  { %1191 = vmatmul.mubr.f32.vlgmr.msra.gmra.mrb[0].mxu0 %v52_v15  ;;  %v493_v5 = vld [vmem:[#allocation5 + $0xd88] sm:$0xff]  ;;  %v519_v20 = vld [vmem:[#allocation5 + $0xe58] sm:$0xff]  ;;  %v524_v36 = vld [vmem:[#allocation5 + $0xe80] sm:$0xff] }
  0x7b   :  { %2353 = vmatpush1.bf16.msra.mxu0 %v2352_v16  ;;  %1475 = vmatmul.mubr.f32.vlgmr.msra.gmra.mrb[0].mxu1 %v52_v15  ;;  %v2374_v15 = vpack.c.bf16 %v421_v9, %v413_v8  ;;  %v420_v16 = vld [vmem:[#allocation5 + $0xb40] sm:$0xff]  ;;  %v503_v8 = vld [vmem:[#allocation5 + $0xdd8] sm:$0xff] }
  0x7c   :  { %2609 = vmatpush1.bf16.msra.mxu1 %v2608_v17  ;;  %2355 = vmatprep.subr.bf16.mxu0 %v2354_v18  ;;  %v414_v17 = vld [vmem:[#allocation5 + $0xb10] sm:$0xff]  ;;  %v2376_v25 = vpack.c.bf16 %v420_v16, %v412_v13  ;;  %v500_v13 = vld [vmem:[#allocation5 + $0xdc0] sm:$0xff] }
  0x7d   :  { %2611 = vmatprep.subr.bf16.mxu1 %v2610_v22  ;;  %v422_v18 = vld [vmem:[#allocation5 + $0xb50] sm:$0xff]  ;;  %v55_v22 = vld [vmem:[#allocation2 + $0x18] sm:$0xff]  ;;  %v540_v48 = vld [vmem:[#allocation5 + $0xf00] sm:$0xff] }
  0x7e   :  { %1261 = vmatprep.mubr.f32.mxu0 %v55_v22  ;;  %1545 = vmatprep.mubr.f32.mxu1 %v55_v22  ;;  %v2632_v26 = vpack.c.bf16 %v422_v18, %v414_v17  ;;  %v502_v16 = vld [vmem:[#allocation5 + $0xdd0] sm:$0xff]  ;;  %v509_v17 = vld [vmem:[#allocation5 + $0xe08] sm:$0xff]  ;;  %v556_v60 = vld [vmem:[#allocation5 + $0xf80] sm:$0xff] }
  0x7f   :  { %2357 = vmatpush1.bf16.msra.mxu0 %v2356_v28  ;;  %v428_v28 = vld [vmem:[#allocation5 + $0xb80] sm:$0xff]  ;;  %v517_v18 = vld [vmem:[#allocation5 + $0xe48] sm:$0xff] }
  0x80   :  { %2613 = vmatpush1.bf16.msra.mxu1 %v2612_v29  ;;  %2359 = vmatprep.subr.bf16.mxu0 %v2358_v30  ;;  %v436_v29 = vld [vmem:[#allocation5 + $0xbc0] sm:$0xff]  ;;  %v430_v30 = vld [vmem:[#allocation5 + $0xb90] sm:$0xff]  ;;  %v2398_v23 = vpack.c.bf16 %v517_v18, %v509_v17 }
  0x81   :  { %2615 = vmatprep.subr.bf16.mxu1 %v2614_v34  ;;  %v453_v34 = vld [vmem:[#allocation5 + $0xc48] sm:$0xff]  ;;  %v2380_v37 = vpack.c.bf16 %v436_v29, %v428_v28  ;;  %v2636_v38 = vpack.c.bf16 %v438_v32, %v430_v30  ;;  %v518_v28 = vld [vmem:[#allocation5 + $0xe50] sm:$0xff]  ;;  %v535_v32 = vld [vmem:[#allocation5 + $0xed8] sm:$0xff] }
  0x82   :  { %v2382_v39 = vpack.c.bf16 %v453_v34, %v445_v33  ;;  %v525_v29 = vld [vmem:[#allocation5 + $0xe88] sm:$0xff]  ;;  %v54_v17 = vld [vmem:[#allocation2 + $0x10] sm:$0xff] }
  0x83   :  { %2361 = vmatpush1.bf16.msra.mxu0 %v2360_v40  ;;  %v444_v40 = vld [vmem:[#allocation5 + $0xc00] sm:$0xff]  ;;  %v533_v30 = vld [vmem:[#allocation5 + $0xec8] sm:$0xff] }
  0x84   :  { %2617 = vmatpush1.bf16.msra.mxu1 %v2616_v41  ;;  %2363 = vmatprep.subr.bf16.mxu0 %v2362_v42  ;;  %v452_v41 = vld [vmem:[#allocation5 + $0xc40] sm:$0xff]  ;;  %v446_v42 = vld [vmem:[#allocation5 + $0xc10] sm:$0xff]  ;;  %v2402_v35 = vpack.c.bf16 %v533_v30, %v525_v29  ;;  %v615_v29 = vld [vmem:[#allocation5 + $0x1158] sm:$0xff] }
  0x85   :  { %2619 = vmatprep.subr.bf16.mxu1 %v2618_v46  ;;  %v469_v46 = vld [vmem:[#allocation5 + $0xcc8] sm:$0xff]  ;;  %v2384_v49 = vpack.c.bf16 %v452_v41, %v444_v40  ;;  %v2640_v50 = vpack.c.bf16 %v454_v44, %v446_v42  ;;  %v534_v40 = vld [vmem:[#allocation5 + $0xed0] sm:$0xff]  ;;  %v551_v44 = vld [vmem:[#allocation5 + $0xf58] sm:$0xff] }
  0x86   :  { %v2386_v51 = vpack.c.bf16 %v469_v46, %v461_v45  ;;  %v541_v41 = vld [vmem:[#allocation5 + $0xf08] sm:$0xff] }
  0x87   :  { %2365 = vmatpush1.bf16.msra.mxu0 %v2364_v52  ;;  %v460_v52 = vld [vmem:[#allocation5 + $0xc80] sm:$0xff]  ;;  %v549_v42 = vld [vmem:[#allocation5 + $0xf48] sm:$0xff] }
  0x88   :  { %2621 = vmatpush1.bf16.msra.mxu1 %v2620_v53  ;;  %2367 = vmatprep.subr.bf16.mxu0 %v2366_v54  ;;  %v468_v53 = vld [vmem:[#allocation5 + $0xcc0] sm:$0xff]  ;;  %v462_v54 = vld [vmem:[#allocation5 + $0xc90] sm:$0xff]  ;;  %v2406_v47 = vpack.c.bf16 %v549_v42, %v541_v41  ;;  %v57_v30 = vld [vmem:[#allocation2 + $0x28] sm:$0xff] }
  0x89   :  { %2623 = vmatprep.subr.bf16.mxu1 %v2622_v58  ;;  %v485_v58 = vld [vmem:[#allocation5 + $0xd48] sm:$0xff]  ;;  %v2388_v61 = vpack.c.bf16 %v468_v53, %v460_v52  ;;  %v2644_v62 = vpack.c.bf16 %v470_v56, %v462_v54  ;;  %v550_v52 = vld [vmem:[#allocation5 + $0xf50] sm:$0xff]  ;;  %v567_v56 = vld [vmem:[#allocation5 + $0xfd8] sm:$0xff] }
  0x8a   :  { %v2390_v63 = vpack.c.bf16 %v485_v58, %v477_v57  ;;  %v557_v53 = vld [vmem:[#allocation5 + $0xf88] sm:$0xff]  ;;  %v623_v41 = vld [vmem:[#allocation5 + $0x1198] sm:$0xff] }
  0x8b   :  { %2369 = vmatpush1.bf16.msra.mxu0 %v2368_v0  ;;  %v476_v0 = vld [vmem:[#allocation5 + $0xd00] sm:$0xff]  ;;  %v565_v54 = vld [vmem:[#allocation5 + $0xfc8] sm:$0xff]  ;;  %v631_v42 = vld [vmem:[#allocation5 + $0x11d8] sm:$0xff] }
  0x8c   :  { %2625 = vmatpush1.bf16.msra.mxu1 %v2624_v1  ;;  %2371 = vmatprep.subr.bf16.mxu0 %v2370_v2  ;;  %v484_v1 = vld [vmem:[#allocation5 + $0xd40] sm:$0xff]  ;;  %v478_v2 = vld [vmem:[#allocation5 + $0xd10] sm:$0xff]  ;;  %v2410_v59 = vpack.c.bf16 %v565_v54, %v557_v53  ;;  %v639_v53 = vld [vmem:[#allocation5 + $0x1218] sm:$0xff] }
  0x8d   :  { %2627 = vmatprep.subr.bf16.mxu1 %v2626_v6  ;;  %v501_v6 = vld [vmem:[#allocation5 + $0xdc8] sm:$0xff]  ;;  %v2392_v9 = vpack.c.bf16 %v484_v1, %v476_v0  ;;  %v2648_v10 = vpack.c.bf16 %v486_v4, %v478_v2  ;;  %v566_v0 = vld [vmem:[#allocation5 + $0xfd0] sm:$0xff]  ;;  %v583_v4 = vld [vmem:[#allocation5 + $0x1058] sm:$0xff] }
  0x8e   :  { %v2394_v11 = vpack.c.bf16 %v501_v6, %v493_v5  ;;  %v573_v1 = vld [vmem:[#allocation5 + $0x1008] sm:$0xff]  ;;  %v647_v54 = vld [vmem:[#allocation5 + $0x1258] sm:$0xff] }
  0x8f   :  { %2373 = vmatpush1.bf16.msra.mxu0 %v2372_v12  ;;  %v492_v12 = vld [vmem:[#allocation5 + $0xd80] sm:$0xff]  ;;  %v581_v2 = vld [vmem:[#allocation5 + $0x1048] sm:$0xff] }
  0x90   :  { %2629 = vmatpush1.bf16.msra.mxu1 %v2628_v14  ;;  %2375 = vmatprep.subr.bf16.mxu0 %v2374_v15  ;;  %v494_v14 = vld [vmem:[#allocation5 + $0xd90] sm:$0xff]  ;;  %v2650_v15 = vpack.c.bf16 %v503_v8, %v495_v7  ;;  %v2396_v21 = vpack.c.bf16 %v500_v13, %v492_v12  ;;  %v2414_v7 = vpack.c.bf16 %v581_v2, %v573_v1  ;;  %v572_v8 = vld [vmem:[#allocation5 + $0x1000] sm:$0xff]  ;;  %v589_v13 = vld [vmem:[#allocation5 + $0x1088] sm:$0xff] }
  0x91   :  { %2631 = vmatprep.subr.bf16.mxu1 %v2630_v19  ;;  %v511_v19 = vld [vmem:[#allocation5 + $0xe18] sm:$0xff]  ;;  %v2652_v22 = vpack.c.bf16 %v502_v16, %v494_v14  ;;  %v582_v12 = vld [vmem:[#allocation5 + $0x1050] sm:$0xff]  ;;  %v597_v14 = vld [vmem:[#allocation5 + $0x10c8] sm:$0xff] }
  0x92   :  { %v599_v16 = vld [vmem:[#allocation5 + $0x10d8] sm:$0xff] }
  0x93   :  { %2377 = vmatpush1.bf16.msra.mxu0 %v2376_v25  ;;  %v516_v25 = vld [vmem:[#allocation5 + $0xe40] sm:$0xff]  ;;  %v655_v1 = vld [vmem:[#allocation5 + $0x1298] sm:$0xff] }
  0x94   :  { %2633 = vmatpush1.bf16.msra.mxu1 %v2632_v26  ;;  %2379 = vmatprep.subr.bf16.mxu0 %v2378_v27  ;;  %v510_v26 = vld [vmem:[#allocation5 + $0xe10] sm:$0xff]  ;;  %v2654_v27 = vpack.c.bf16 %v519_v20, %v511_v19  ;;  %v2400_v33 = vpack.c.bf16 %v516_v25, %v508_v24  ;;  %v2418_v20 = vpack.c.bf16 %v597_v14, %v589_v13  ;;  %v663_v2 = vld [vmem:[#allocation5 + $0x12d8] sm:$0xff] }
  0x95   :  { %2635 = vmatprep.subr.bf16.mxu1 %v2634_v31  ;;  %v527_v31 = vld [vmem:[#allocation5 + $0xe98] sm:$0xff]  ;;  %v2656_v34 = vpack.c.bf16 %v518_v28, %v510_v26  ;;  %v598_v25 = vld [vmem:[#allocation5 + $0x10d0] sm:$0xff]  ;;  %v605_v26 = vld [vmem:[#allocation5 + $0x1108] sm:$0xff] }
  0x96   :  { %v607_v28 = vld [vmem:[#allocation5 + $0x1118] sm:$0xff] }
  0x97   :  { %2381 = vmatpush1.bf16.msra.mxu0 %v2380_v37  ;;  %v532_v37 = vld [vmem:[#allocation5 + $0xec0] sm:$0xff]  ;;  %v671_v13 = vld [vmem:[#allocation5 + $0x1318] sm:$0xff] }
  0x98   :  { %2637 = vmatpush1.bf16.msra.mxu1 %v2636_v38  ;;  %2383 = vmatprep.subr.bf16.mxu0 %v2382_v39  ;;  %v526_v38 = vld [vmem:[#allocation5 + $0xe90] sm:$0xff]  ;;  %v2658_v39 = vpack.c.bf16 %v535_v32, %v527_v31  ;;  %v2404_v45 = vpack.c.bf16 %v532_v37, %v524_v36  ;;  %v2678_v37 = vpack.c.bf16 %v615_v29, %v607_v28  ;;  %v679_v14 = vld [vmem:[#allocation5 + $0x1358] sm:$0xff] }
  0x99   :  { %2639 = vmatprep.subr.bf16.mxu1 %v2638_v43  ;;  %v543_v43 = vld [vmem:[#allocation5 + $0xf18] sm:$0xff]  ;;  %v2660_v46 = vpack.c.bf16 %v534_v40, %v526_v38  ;;  %v606_v36 = vld [vmem:[#allocation5 + $0x1110] sm:$0xff]  ;;  %v629_v40 = vld [vmem:[#allocation5 + $0x11c8] sm:$0xff] }
  0x9a   :  { %v614_v38 = vld [vmem:[#allocation5 + $0x1150] sm:$0xff] }
  0x9b   :  { %2385 = vmatpush1.bf16.msra.mxu0 %v2384_v49  ;;  %v548_v49 = vld [vmem:[#allocation5 + $0xf40] sm:$0xff] }
  0x9c   :  { %2641 = vmatpush1.bf16.msra.mxu1 %v2640_v50  ;;  %2387 = vmatprep.subr.bf16.mxu0 %v2386_v51  ;;  %v542_v50 = vld [vmem:[#allocation5 + $0xf10] sm:$0xff]  ;;  %v2662_v51 = vpack.c.bf16 %v551_v44, %v543_v43  ;;  %v2408_v57 = vpack.c.bf16 %v548_v49, %v540_v48  ;;  %v2680_v44 = vpack.c.bf16 %v614_v38, %v606_v36  ;;  %v709_v36 = vld [vmem:[#allocation5 + $0x1448] sm:$0xff]  ;;  %v711_v38 = vld [vmem:[#allocation5 + $0x1458] sm:$0xff] }
  0x9d   :  { %2643 = vmatprep.subr.bf16.mxu1 %v2642_v55  ;;  %v559_v55 = vld [vmem:[#allocation5 + $0xf98] sm:$0xff]  ;;  %v2664_v58 = vpack.c.bf16 %v550_v52, %v542_v50  ;;  %v622_v48 = vld [vmem:[#allocation5 + $0x1190] sm:$0xff]  ;;  %v2682_v49 = vpack.c.bf16 %v631_v42, %v623_v41  ;;  %v645_v52 = vld [vmem:[#allocation5 + $0x1248] sm:$0xff] }
  0x9e   :  { %v630_v50 = vld [vmem:[#allocation5 + $0x11d0] sm:$0xff]  ;;  %v700_v42 = vld [vmem:[#allocation5 + $0x1400] sm:$0xff] }
  0x9f   :  { %2389 = vmatpush1.bf16.msra.mxu0 %v2388_v61  ;;  %v564_v61 = vld [vmem:[#allocation5 + $0xfc0] sm:$0xff] }
  0xa0   :  { %2645 = vmatpush1.bf16.msra.mxu1 %v2644_v62  ;;  %2391 = vmatprep.subr.bf16.mxu0 %v2390_v63  ;;  %v558_v62 = vld [vmem:[#allocation5 + $0xf90] sm:$0xff]  ;;  %v2666_v63 = vpack.c.bf16 %v567_v56, %v559_v55  ;;  %v2412_v5 = vpack.c.bf16 %v564_v61, %v556_v60  ;;  %v2684_v56 = vpack.c.bf16 %v630_v50, %v622_v48  ;;  %v725_v48 = vld [vmem:[#allocation5 + $0x14c8] sm:$0xff]  ;;  %v727_v50 = vld [vmem:[#allocation5 + $0x14d8] sm:$0xff] }
  0xa1   :  { %2647 = vmatprep.subr.bf16.mxu1 %v2646_v3  ;;  %v575_v3 = vld [vmem:[#allocation5 + $0x1018] sm:$0xff]  ;;  %v2668_v6 = vpack.c.bf16 %v566_v0, %v558_v62  ;;  %v638_v60 = vld [vmem:[#allocation5 + $0x1210] sm:$0xff]  ;;  %v2686_v61 = vpack.c.bf16 %v647_v54, %v639_v53  ;;  %v661_v0 = vld [vmem:[#allocation5 + $0x12c8] sm:$0xff] }
  0xa2   :  { %v646_v62 = vld [vmem:[#allocation5 + $0x1250] sm:$0xff]  ;;  %v716_v54 = vld [vmem:[#allocation5 + $0x1480] sm:$0xff] }
  0xa3   :  { %2393 = vmatpush1.bf16.msra.mxu0 %v2392_v9  ;;  %v580_v9 = vld [vmem:[#allocation5 + $0x1040] sm:$0xff] }
  0xa4   :  { %2649 = vmatpush1.bf16.msra.mxu1 %v2648_v10  ;;  %2395 = vmatprep.subr.bf16.mxu0 %v2394_v11  ;;  %v574_v10 = vld [vmem:[#allocation5 + $0x1010] sm:$0xff]  ;;  %v2670_v11 = vpack.c.bf16 %v583_v4, %v575_v3  ;;  %v2416_v18 = vpack.c.bf16 %v580_v9, %v572_v8  ;;  %v2688_v4 = vpack.c.bf16 %v646_v62, %v638_v60  ;;  %v741_v60 = vld [vmem:[#allocation5 + $0x1548] sm:$0xff]  ;;  %v743_v62 = vld [vmem:[#allocation5 + $0x1558] sm:$0xff] }
  0xa5   :  { %2651 = vmatprep.subr.bf16.mxu1 %v2650_v15  ;;  %v591_v15 = vld [vmem:[#allocation5 + $0x1098] sm:$0xff]  ;;  %v2672_v19 = vpack.c.bf16 %v582_v12, %v574_v10  ;;  %v654_v8 = vld [vmem:[#allocation5 + $0x1290] sm:$0xff]  ;;  %v2690_v9 = vpack.c.bf16 %v663_v2, %v655_v1  ;;  %v677_v12 = vld [vmem:[#allocation5 + $0x1348] sm:$0xff] }
  0xa6   :  { %v2674_v24 = vpack.c.bf16 %v599_v16, %v591_v15  ;;  %v662_v10 = vld [vmem:[#allocation5 + $0x12d0] sm:$0xff]  ;;  %v732_v2 = vld [vmem:[#allocation5 + $0x1500] sm:$0xff] }
  0xa7   :  { %2397 = vmatpush1.bf16.msra.mxu0 %v2396_v21  ;;  %v588_v21 = vld [vmem:[#allocation5 + $0x1080] sm:$0xff]  ;;  %v2692_v16 = vpack.c.bf16 %v662_v10, %v654_v8  ;;  %v757_v8 = vld [vmem:[#allocation5 + $0x15c8] sm:$0xff]  ;;  %v759_v10 = vld [vmem:[#allocation5 + $0x15d8] sm:$0xff] }
  0xa8   :  { %2653 = vmatpush1.bf16.msra.mxu1 %v2652_v22  ;;  %2399 = vmatprep.subr.bf16.mxu0 %v2398_v23  ;;  %v596_v22 = vld [vmem:[#allocation5 + $0x10c0] sm:$0xff]  ;;  %v590_v23 = vld [vmem:[#allocation5 + $0x1090] sm:$0xff] }
  0xa9   :  { %2655 = vmatprep.subr.bf16.mxu1 %v2654_v27  ;;  %v613_v27 = vld [vmem:[#allocation5 + $0x1148] sm:$0xff]  ;;  %v2420_v31 = vpack.c.bf16 %v596_v22, %v588_v21  ;;  %v2676_v32 = vpack.c.bf16 %v598_v25, %v590_v23  ;;  %v2694_v21 = vpack.c.bf16 %v679_v14, %v671_v13  ;;  %v678_v22 = vld [vmem:[#allocation5 + $0x1350] sm:$0xff]  ;;  %v687_v25 = vld [vmem:[#allocation5 + $0x1398] sm:$0xff] }
  0xaa   :  { %v685_v23 = vld [vmem:[#allocation5 + $0x1388] sm:$0xff]  ;;  %v748_v14 = vld [vmem:[#allocation5 + $0x1580] sm:$0xff] }
  0xab   :  { %2401 = vmatpush1.bf16.msra.mxu0 %v2400_v33  ;;  %v2422_v33 = vpack.c.bf16 %v613_v27, %v605_v26  ;;  %v695_v26 = vld [vmem:[#allocation5 + $0x13d8] sm:$0xff] }
  0xac   :  { %2657 = vmatpush1.bf16.msra.mxu1 %v2656_v34  ;;  %2403 = vmatprep.subr.bf16.mxu0 %v2402_v35  ;;  %v604_v34 = vld [vmem:[#allocation5 + $0x1100] sm:$0xff] }
  0xad   :  { %2659 = vmatprep.subr.bf16.mxu1 %v2658_v39  ;;  %v612_v35 = vld [vmem:[#allocation5 + $0x1140] sm:$0xff]  ;;  %v621_v39 = vld [vmem:[#allocation5 + $0x1188] sm:$0xff] }
  0xae   :  { %v2424_v43 = vpack.c.bf16 %v612_v35, %v604_v34  ;;  %v694_v34 = vld [vmem:[#allocation5 + $0x13d0] sm:$0xff]  ;;  %v701_v35 = vld [vmem:[#allocation5 + $0x1408] sm:$0xff] }
  0xaf   :  { %2405 = vmatpush1.bf16.msra.mxu0 %v2404_v45  ;;  %v2426_v45 = vpack.c.bf16 %v629_v40, %v621_v39  ;;  %v2446_v41 = vpack.c.bf16 %v709_v36, %v701_v35 }
  0xb0   :  { %2661 = vmatpush1.bf16.msra.mxu1 %v2660_v46  ;;  %2407 = vmatprep.subr.bf16.mxu0 %v2406_v47  ;;  %v620_v46 = vld [vmem:[#allocation5 + $0x1180] sm:$0xff] }
  0xb1   :  { %2663 = vmatprep.subr.bf16.mxu1 %v2662_v51  ;;  %v628_v47 = vld [vmem:[#allocation5 + $0x11c0] sm:$0xff]  ;;  %v637_v51 = vld [vmem:[#allocation5 + $0x1208] sm:$0xff] }
  0xb2   :  { %v2428_v55 = vpack.c.bf16 %v628_v47, %v620_v46  ;;  %v710_v46 = vld [vmem:[#allocation5 + $0x1450] sm:$0xff]  ;;  %v717_v47 = vld [vmem:[#allocation5 + $0x1488] sm:$0xff] }
  0xb3   :  { %2409 = vmatpush1.bf16.msra.mxu0 %v2408_v57  ;;  %v2430_v57 = vpack.c.bf16 %v645_v52, %v637_v51  ;;  %v2450_v53 = vpack.c.bf16 %v725_v48, %v717_v47 }
  0xb4   :  { %2665 = vmatpush1.bf16.msra.mxu1 %v2664_v58  ;;  %2411 = vmatprep.subr.bf16.mxu0 %v2410_v59  ;;  %v636_v58 = vld [vmem:[#allocation5 + $0x1200] sm:$0xff] }
  0xb5   :  { %2667 = vmatprep.subr.bf16.mxu1 %v2666_v63  ;;  %v644_v59 = vld [vmem:[#allocation5 + $0x1240] sm:$0xff]  ;;  %v653_v63 = vld [vmem:[#allocation5 + $0x1288] sm:$0xff] }
  0xb6   :  { %v2432_v3 = vpack.c.bf16 %v644_v59, %v636_v58  ;;  %v726_v58 = vld [vmem:[#allocation5 + $0x14d0] sm:$0xff]  ;;  %v733_v59 = vld [vmem:[#allocation5 + $0x1508] sm:$0xff] }
  0xb7   :  { %2413 = vmatpush1.bf16.msra.mxu0 %v2412_v5  ;;  %v2434_v5 = vpack.c.bf16 %v661_v0, %v653_v63  ;;  %v2454_v1 = vpack.c.bf16 %v741_v60, %v733_v59 }
  0xb8   :  { %2669 = vmatpush1.bf16.msra.mxu1 %v2668_v6  ;;  %2415 = vmatprep.subr.bf16.mxu0 %v2414_v7  ;;  %v652_v6 = vld [vmem:[#allocation5 + $0x1280] sm:$0xff] }
  0xb9   :  { %2671 = vmatprep.subr.bf16.mxu1 %v2670_v11  ;;  %v660_v7 = vld [vmem:[#allocation5 + $0x12c0] sm:$0xff]  ;;  %v669_v11 = vld [vmem:[#allocation5 + $0x1308] sm:$0xff] }
  0xba   :  { %1262 = vmatmul.mubr.f32.vlgmr.msra.gmra.mrb[0].mxu0 %v54_v17  ;;  %v2436_v15 = vpack.c.bf16 %v660_v7, %v652_v6  ;;  %v742_v6 = vld [vmem:[#allocation5 + $0x1550] sm:$0xff]  ;;  %v749_v7 = vld [vmem:[#allocation5 + $0x1588] sm:$0xff] }
  0xbb   :  { %2417 = vmatpush1.bf16.msra.mxu0 %v2416_v18  ;;  %1546 = vmatmul.mubr.f32.vlgmr.msra.gmra.mrb[0].mxu1 %v54_v17  ;;  %v2438_v17 = vpack.c.bf16 %v677_v12, %v669_v11  ;;  %v668_v18 = vld [vmem:[#allocation5 + $0x1300] sm:$0xff]  ;;  %v2458_v13 = vpack.c.bf16 %v757_v8, %v749_v7 }
  0xbc   :  { %2673 = vmatpush1.bf16.msra.mxu1 %v2672_v19  ;;  %2419 = vmatprep.subr.bf16.mxu0 %v2418_v20  ;;  %v676_v19 = vld [vmem:[#allocation5 + $0x1340] sm:$0xff]  ;;  %v670_v20 = vld [vmem:[#allocation5 + $0x1310] sm:$0xff] }
  0xbd   :  { %2675 = vmatprep.subr.bf16.mxu1 %v2674_v24  ;;  %1332 = vmatprep.mubr.f32.mxu0 %v57_v30  ;;  %v693_v24 = vld [vmem:[#allocation5 + $0x13c8] sm:$0xff]  ;;  %v2440_v27 = vpack.c.bf16 %v676_v19, %v668_v18  ;;  %v2696_v28 = vpack.c.bf16 %v678_v22, %v670_v20  ;;  %v758_v18 = vld [vmem:[#allocation5 + $0x15d0] sm:$0xff]  ;;  %v775_v22 = vld [vmem:[#allocation5 + $0x1658] sm:$0xff] }
  0xbe   :  { %1616 = vmatprep.mubr.f32.mxu1 %v57_v30  ;;  %v2442_v29 = vpack.c.bf16 %v693_v24, %v685_v23  ;;  %v684_v30 = vld [vmem:[#allocation5 + $0x1380] sm:$0xff]  ;;  %v765_v19 = vld [vmem:[#allocation5 + $0x1608] sm:$0xff] }
  0xbf   :  { %2421 = vmatpush1.bf16.msra.mxu0 %v2420_v31  ;;  %v692_v31 = vld [vmem:[#allocation5 + $0x13c0] sm:$0xff]  ;;  %v773_v20 = vld [vmem:[#allocation5 + $0x1648] sm:$0xff] }
  0xc0   :  { %2677 = vmatpush1.bf16.msra.mxu1 %v2676_v32  ;;  %2423 = vmatprep.subr.bf16.mxu0 %v2422_v33  ;;  %v686_v32 = vld [vmem:[#allocation5 + $0x1390] sm:$0xff]  ;;  %v2698_v33 = vpack.c.bf16 %v695_v26, %v687_v25  ;;  %v2444_v39 = vpack.c.bf16 %v692_v31, %v684_v30  ;;  %v2462_v25 = vpack.c.bf16 %v773_v20, %v765_v19  ;;  %v764_v26 = vld [vmem:[#allocation5 + $0x1600] sm:$0xff]  ;;  %v781_v31 = vld [vmem:[#allocation5 + $0x1688] sm:$0xff] }
  0xc1   :  { %2679 = vmatprep.subr.bf16.mxu1 %v2678_v37  ;;  %v703_v37 = vld [vmem:[#allocation5 + $0x1418] sm:$0xff]  ;;  %v2700_v40 = vpack.c.bf16 %v694_v34, %v686_v32  ;;  %v774_v30 = vld [vmem:[#allocation5 + $0x1650] sm:$0xff]  ;;  %v789_v32 = vld [vmem:[#allocation5 + $0x16c8] sm:$0xff] }
  0xc2   :  { %v791_v34 = vld [vmem:[#allocation5 + $0x16d8] sm:$0xff]  ;;  %v56_v19 = vld [vmem:[#allocation2 + $0x20] sm:$0xff] }
  0xc3   :  { %2425 = vmatpush1.bf16.msra.mxu0 %v2424_v43  ;;  %v708_v43 = vld [vmem:[#allocation5 + $0x1440] sm:$0xff] }
  0xc4   :  { %2681 = vmatpush1.bf16.msra.mxu1 %v2680_v44  ;;  %2427 = vmatprep.subr.bf16.mxu0 %v2426_v45  ;;  %v702_v44 = vld [vmem:[#allocation5 + $0x1410] sm:$0xff]  ;;  %v2702_v45 = vpack.c.bf16 %v711_v38, %v703_v37  ;;  %v2448_v51 = vpack.c.bf16 %v708_v43, %v700_v42  ;;  %v2466_v37 = vpack.c.bf16 %v789_v32, %v781_v31  ;;  %v780_v38 = vld [vmem:[#allocation5 + $0x1680] sm:$0xff]  ;;  %v797_v43 = vld [vmem:[#allocation5 + $0x1708] sm:$0xff] }
  0xc5   :  { %2683 = vmatprep.subr.bf16.mxu1 %v2682_v49  ;;  %v719_v49 = vld [vmem:[#allocation5 + $0x1498] sm:$0xff]  ;;  %v2704_v52 = vpack.c.bf16 %v710_v46, %v702_v44  ;;  %v790_v42 = vld [vmem:[#allocation5 + $0x16d0] sm:$0xff]  ;;  %v805_v44 = vld [vmem:[#allocation5 + $0x1748] sm:$0xff] }
  0xc6   :  { %v807_v46 = vld [vmem:[#allocation5 + $0x1758] sm:$0xff] }
  0xc7   :  { %2429 = vmatpush1.bf16.msra.mxu0 %v2428_v55  ;;  %v724_v55 = vld [vmem:[#allocation5 + $0x14c0] sm:$0xff]  ;;  %v871_v31 = vld [vmem:[#allocation5 + $0x1958] sm:$0xff] }
  0xc8   :  { %2685 = vmatpush1.bf16.msra.mxu1 %v2684_v56  ;;  %2431 = vmatprep.subr.bf16.mxu0 %v2430_v57  ;;  %v718_v56 = vld [vmem:[#allocation5 + $0x1490] sm:$0xff]  ;;  %v2706_v57 = vpack.c.bf16 %v727_v50, %v719_v49  ;;  %v2452_v63 = vpack.c.bf16 %v724_v55, %v716_v54  ;;  %v2470_v49 = vpack.c.bf16 %v805_v44, %v797_v43  ;;  %v796_v50 = vld [vmem:[#allocation5 + $0x1700] sm:$0xff]  ;;  %v813_v55 = vld [vmem:[#allocation5 + $0x1788] sm:$0xff] }
  0xc9   :  { %2687 = vmatprep.subr.bf16.mxu1 %v2686_v61  ;;  %v735_v61 = vld [vmem:[#allocation5 + $0x1518] sm:$0xff]  ;;  %v2708_v0 = vpack.c.bf16 %v726_v58, %v718_v56  ;;  %v806_v54 = vld [vmem:[#allocation5 + $0x1750] sm:$0xff]  ;;  %v821_v56 = vld [vmem:[#allocation5 + $0x17c8] sm:$0xff] }
  0xca   :  { %v823_v58 = vld [vmem:[#allocation5 + $0x17d8] sm:$0xff] }
  0xcb   :  { %2433 = vmatpush1.bf16.msra.mxu0 %v2432_v3  ;;  %v740_v3 = vld [vmem:[#allocation5 + $0x1540] sm:$0xff]  ;;  %v59_v32 = vld [vmem:[#allocation2 + $0x38] sm:$0xff] }
  0xcc   :  { %2689 = vmatpush1.bf16.msra.mxu1 %v2688_v4  ;;  %2435 = vmatprep.subr.bf16.mxu0 %v2434_v5  ;;  %v734_v4 = vld [vmem:[#allocation5 + $0x1510] sm:$0xff]  ;;  %v2710_v5 = vpack.c.bf16 %v743_v62, %v735_v61  ;;  %v2456_v11 = vpack.c.bf16 %v740_v3, %v732_v2  ;;  %v2474_v61 = vpack.c.bf16 %v821_v56, %v813_v55  ;;  %v812_v62 = vld [vmem:[#allocation5 + $0x1780] sm:$0xff]  ;;  %v829_v3 = vld [vmem:[#allocation5 + $0x1808] sm:$0xff] }
  0xcd   :  { %2691 = vmatprep.subr.bf16.mxu1 %v2690_v9  ;;  %v751_v9 = vld [vmem:[#allocation5 + $0x1598] sm:$0xff]  ;;  %v2712_v12 = vpack.c.bf16 %v742_v6, %v734_v4  ;;  %v822_v2 = vld [vmem:[#allocation5 + $0x17d0] sm:$0xff]  ;;  %v837_v4 = vld [vmem:[#allocation5 + $0x1848] sm:$0xff] }
  0xce   :  { %v839_v6 = vld [vmem:[#allocation5 + $0x1858] sm:$0xff] }
  0xcf   :  { %2437 = vmatpush1.bf16.msra.mxu0 %v2436_v15  ;;  %v756_v15 = vld [vmem:[#allocation5 + $0x15c0] sm:$0xff]  ;;  %v879_v43 = vld [vmem:[#allocation5 + $0x1998] sm:$0xff] }
  0xd0   :  { %2693 = vmatpush1.bf16.msra.mxu1 %v2692_v16  ;;  %2439 = vmatprep.subr.bf16.mxu0 %v2438_v17  ;;  %v750_v16 = vld [vmem:[#allocation5 + $0x1590] sm:$0xff]  ;;  %v2714_v17 = vpack.c.bf16 %v759_v10, %v751_v9  ;;  %v2460_v23 = vpack.c.bf16 %v756_v15, %v748_v14  ;;  %v2478_v9 = vpack.c.bf16 %v837_v4, %v829_v3  ;;  %v828_v10 = vld [vmem:[#allocation5 + $0x1800] sm:$0xff]  ;;  %v845_v15 = vld [vmem:[#allocation5 + $0x1888] sm:$0xff] }
  0xd1   :  { %2695 = vmatprep.subr.bf16.mxu1 %v2694_v21  ;;  %v767_v21 = vld [vmem:[#allocation5 + $0x1618] sm:$0xff]  ;;  %v2716_v24 = vpack.c.bf16 %v758_v18, %v750_v16  ;;  %v838_v14 = vld [vmem:[#allocation5 + $0x1850] sm:$0xff]  ;;  %v853_v16 = vld [vmem:[#allocation5 + $0x18c8] sm:$0xff] }
  0xd2   :  { %v855_v18 = vld [vmem:[#allocation5 + $0x18d8] sm:$0xff] }
  0xd3   :  { %2441 = vmatpush1.bf16.msra.mxu0 %v2440_v27  ;;  %v772_v27 = vld [vmem:[#allocation5 + $0x1640] sm:$0xff]  ;;  %v887_v44 = vld [vmem:[#allocation5 + $0x19d8] sm:$0xff] }
  0xd4   :  { %2697 = vmatpush1.bf16.msra.mxu1 %v2696_v28  ;;  %2443 = vmatprep.subr.bf16.mxu0 %v2442_v29  ;;  %v766_v28 = vld [vmem:[#allocation5 + $0x1610] sm:$0xff]  ;;  %v2718_v29 = vpack.c.bf16 %v775_v22, %v767_v21  ;;  %v2464_v35 = vpack.c.bf16 %v772_v27, %v764_v26  ;;  %v2482_v22 = vpack.c.bf16 %v853_v16, %v845_v15  ;;  %v895_v55 = vld [vmem:[#allocation5 + $0x1a18] sm:$0xff] }
  0xd5   :  { %2699 = vmatprep.subr.bf16.mxu1 %v2698_v33  ;;  %v783_v33 = vld [vmem:[#allocation5 + $0x1698] sm:$0xff]  ;;  %v2720_v36 = vpack.c.bf16 %v774_v30, %v766_v28  ;;  %v854_v27 = vld [vmem:[#allocation5 + $0x18d0] sm:$0xff]  ;;  %v861_v28 = vld [vmem:[#allocation5 + $0x1908] sm:$0xff] }
  0xd6   :  { %v863_v30 = vld [vmem:[#allocation5 + $0x1918] sm:$0xff] }
  0xd7   :  { %2445 = vmatpush1.bf16.msra.mxu0 %v2444_v39  ;;  %v788_v39 = vld [vmem:[#allocation5 + $0x16c0] sm:$0xff]  ;;  %v903_v56 = vld [vmem:[#allocation5 + $0x1a58] sm:$0xff] }
  0xd8   :  { %2701 = vmatpush1.bf16.msra.mxu1 %v2700_v40  ;;  %2447 = vmatprep.subr.bf16.mxu0 %v2446_v41  ;;  %v782_v40 = vld [vmem:[#allocation5 + $0x1690] sm:$0xff]  ;;  %v2722_v41 = vpack.c.bf16 %v791_v34, %v783_v33  ;;  %v2468_v47 = vpack.c.bf16 %v788_v39, %v780_v38  ;;  %v2742_v39 = vpack.c.bf16 %v871_v31, %v863_v30  ;;  %v911_v3 = vld [vmem:[#allocation5 + $0x1a98] sm:$0xff] }
  0xd9   :  { %2703 = vmatprep.subr.bf16.mxu1 %v2702_v45  ;;  %v799_v45 = vld [vmem:[#allocation5 + $0x1718] sm:$0xff]  ;;  %v2724_v48 = vpack.c.bf16 %v790_v42, %v782_v40  ;;  %v862_v38 = vld [vmem:[#allocation5 + $0x1910] sm:$0xff]  ;;  %v885_v42 = vld [vmem:[#allocation5 + $0x19c8] sm:$0xff] }
  0xda   :  { %v870_v40 = vld [vmem:[#allocation5 + $0x1950] sm:$0xff]  ;;  %v919_v4 = vld [vmem:[#allocation5 + $0x1ad8] sm:$0xff] }
  0xdb   :  { %2449 = vmatpush1.bf16.msra.mxu0 %v2448_v51  ;;  %v804_v51 = vld [vmem:[#allocation5 + $0x1740] sm:$0xff]  ;;  %v927_v15 = vld [vmem:[#allocation5 + $0x1b18] sm:$0xff] }
  0xdc   :  { %2705 = vmatpush1.bf16.msra.mxu1 %v2704_v52  ;;  %2451 = vmatprep.subr.bf16.mxu0 %v2450_v53  ;;  %v798_v52 = vld [vmem:[#allocation5 + $0x1710] sm:$0xff]  ;;  %v2726_v53 = vpack.c.bf16 %v807_v46, %v799_v45  ;;  %v2472_v59 = vpack.c.bf16 %v804_v51, %v796_v50  ;;  %v2744_v46 = vpack.c.bf16 %v870_v40, %v862_v38  ;;  %v935_v16 = vld [vmem:[#allocation5 + $0x1b58] sm:$0xff]  ;;  %v965_v38 = vld [vmem:[#allocation5 + $0x1c48] sm:$0xff] }
  0xdd   :  { %2707 = vmatprep.subr.bf16.mxu1 %v2706_v57  ;;  %v815_v57 = vld [vmem:[#allocation5 + $0x1798] sm:$0xff]  ;;  %v2728_v60 = vpack.c.bf16 %v806_v54, %v798_v52  ;;  %v878_v50 = vld [vmem:[#allocation5 + $0x1990] sm:$0xff]  ;;  %v2746_v51 = vpack.c.bf16 %v887_v44, %v879_v43  ;;  %v901_v54 = vld [vmem:[#allocation5 + $0x1a48] sm:$0xff] }
  0xde   :  { %v886_v52 = vld [vmem:[#allocation5 + $0x19d0] sm:$0xff]  ;;  %v967_v40 = vld [vmem:[#allocation5 + $0x1c58] sm:$0xff]  ;;  %v956_v44 = vld [vmem:[#allocation5 + $0x1c00] sm:$0xff] }
  0xdf   :  { %2453 = vmatpush1.bf16.msra.mxu0 %v2452_v63  ;;  %v820_v63 = vld [vmem:[#allocation5 + $0x17c0] sm:$0xff] }
  0xe0   :  { %2709 = vmatpush1.bf16.msra.mxu1 %v2708_v0  ;;  %2455 = vmatprep.subr.bf16.mxu0 %v2454_v1  ;;  %v814_v0 = vld [vmem:[#allocation5 + $0x1790] sm:$0xff]  ;;  %v2730_v1 = vpack.c.bf16 %v823_v58, %v815_v57  ;;  %v2476_v7 = vpack.c.bf16 %v820_v63, %v812_v62  ;;  %v2748_v58 = vpack.c.bf16 %v886_v52, %v878_v50  ;;  %v981_v50 = vld [vmem:[#allocation5 + $0x1cc8] sm:$0xff]  ;;  %v983_v52 = vld [vmem:[#allocation5 + $0x1cd8] sm:$0xff] }
  0xe1   :  { %2711 = vmatprep.subr.bf16.mxu1 %v2710_v5  ;;  %v831_v5 = vld [vmem:[#allocation5 + $0x1818] sm:$0xff]  ;;  %v2732_v8 = vpack.c.bf16 %v822_v2, %v814_v0  ;;  %v894_v62 = vld [vmem:[#allocation5 + $0x1a10] sm:$0xff]  ;;  %v2750_v63 = vpack.c.bf16 %v903_v56, %v895_v55  ;;  %v917_v2 = vld [vmem:[#allocation5 + $0x1ac8] sm:$0xff] }
  0xe2   :  { %v902_v0 = vld [vmem:[#allocation5 + $0x1a50] sm:$0xff]  ;;  %v972_v56 = vld [vmem:[#allocation5 + $0x1c80] sm:$0xff] }
  0xe3   :  { %2457 = vmatpush1.bf16.msra.mxu0 %v2456_v11  ;;  %v836_v11 = vld [vmem:[#allocation5 + $0x1840] sm:$0xff] }
  0xe4   :  { %2713 = vmatpush1.bf16.msra.mxu1 %v2712_v12  ;;  %2459 = vmatprep.subr.bf16.mxu0 %v2458_v13  ;;  %v830_v12 = vld [vmem:[#allocation5 + $0x1810] sm:$0xff]  ;;  %v2734_v13 = vpack.c.bf16 %v839_v6, %v831_v5  ;;  %v2480_v20 = vpack.c.bf16 %v836_v11, %v828_v10  ;;  %v2752_v6 = vpack.c.bf16 %v902_v0, %v894_v62  ;;  %v997_v62 = vld [vmem:[#allocation5 + $0x1d48] sm:$0xff]  ;;  %v999_v0 = vld [vmem:[#allocation5 + $0x1d58] sm:$0xff] }
  0xe5   :  { %2715 = vmatprep.subr.bf16.mxu1 %v2714_v17  ;;  %v847_v17 = vld [vmem:[#allocation5 + $0x1898] sm:$0xff]  ;;  %v2736_v21 = vpack.c.bf16 %v838_v14, %v830_v12  ;;  %v910_v10 = vld [vmem:[#allocation5 + $0x1a90] sm:$0xff]  ;;  %v2754_v11 = vpack.c.bf16 %v919_v4, %v911_v3  ;;  %v933_v14 = vld [vmem:[#allocation5 + $0x1b48] sm:$0xff] }
  0xe6   :  { %v2738_v26 = vpack.c.bf16 %v855_v18, %v847_v17  ;;  %v918_v12 = vld [vmem:[#allocation5 + $0x1ad0] sm:$0xff]  ;;  %v988_v4 = vld [vmem:[#allocation5 + $0x1d00] sm:$0xff] }
  0xe7   :  { %2461 = vmatpush1.bf16.msra.mxu0 %v2460_v23  ;;  %v844_v23 = vld [vmem:[#allocation5 + $0x1880] sm:$0xff]  ;;  %v2756_v18 = vpack.c.bf16 %v918_v12, %v910_v10  ;;  %v1013_v10 = vld [vmem:[#allocation5 + $0x1dc8] sm:$0xff]  ;;  %v1015_v12 = vld [vmem:[#allocation5 + $0x1dd8] sm:$0xff] }
  0xe8   :  { %2717 = vmatpush1.bf16.msra.mxu1 %v2716_v24  ;;  %2463 = vmatprep.subr.bf16.mxu0 %v2462_v25  ;;  %v852_v24 = vld [vmem:[#allocation5 + $0x18c0] sm:$0xff]  ;;  %v846_v25 = vld [vmem:[#allocation5 + $0x1890] sm:$0xff] }
  0xe9   :  { %2719 = vmatprep.subr.bf16.mxu1 %v2718_v29  ;;  %v869_v29 = vld [vmem:[#allocation5 + $0x1948] sm:$0xff]  ;;  %v2484_v33 = vpack.c.bf16 %v852_v24, %v844_v23  ;;  %v2740_v34 = vpack.c.bf16 %v854_v27, %v846_v25  ;;  %v2758_v23 = vpack.c.bf16 %v935_v16, %v927_v15  ;;  %v934_v24 = vld [vmem:[#allocation5 + $0x1b50] sm:$0xff]  ;;  %v943_v27 = vld [vmem:[#allocation5 + $0x1b98] sm:$0xff] }
  0xea   :  { %v941_v25 = vld [vmem:[#allocation5 + $0x1b88] sm:$0xff]  ;;  %v1004_v16 = vld [vmem:[#allocation5 + $0x1d80] sm:$0xff] }
  0xeb   :  { %2465 = vmatpush1.bf16.msra.mxu0 %v2464_v35  ;;  %v2486_v35 = vpack.c.bf16 %v869_v29, %v861_v28  ;;  %v951_v28 = vld [vmem:[#allocation5 + $0x1bd8] sm:$0xff] }
  0xec   :  { %2721 = vmatpush1.bf16.msra.mxu1 %v2720_v36  ;;  %2467 = vmatprep.subr.bf16.mxu0 %v2466_v37  ;;  %v860_v36 = vld [vmem:[#allocation5 + $0x1900] sm:$0xff] }
  0xed   :  { %2723 = vmatprep.subr.bf16.mxu1 %v2722_v41  ;;  %v868_v37 = vld [vmem:[#allocation5 + $0x1940] sm:$0xff]  ;;  %v877_v41 = vld [vmem:[#allocation5 + $0x1988] sm:$0xff] }
  0xee   :  { %v2488_v45 = vpack.c.bf16 %v868_v37, %v860_v36  ;;  %v950_v36 = vld [vmem:[#allocation5 + $0x1bd0] sm:$0xff]  ;;  %v957_v37 = vld [vmem:[#allocation5 + $0x1c08] sm:$0xff] }
  0xef   :  { %2469 = vmatpush1.bf16.msra.mxu0 %v2468_v47  ;;  %v2490_v47 = vpack.c.bf16 %v885_v42, %v877_v41  ;;  %v2510_v43 = vpack.c.bf16 %v965_v38, %v957_v37 }
  0xf0   :  { %2725 = vmatpush1.bf16.msra.mxu1 %v2724_v48  ;;  %2471 = vmatprep.subr.bf16.mxu0 %v2470_v49  ;;  %v876_v48 = vld [vmem:[#allocation5 + $0x1980] sm:$0xff] }
  0xf1   :  { %2727 = vmatprep.subr.bf16.mxu1 %v2726_v53  ;;  %v884_v49 = vld [vmem:[#allocation5 + $0x19c0] sm:$0xff]  ;;  %v893_v53 = vld [vmem:[#allocation5 + $0x1a08] sm:$0xff] }
  0xf2   :  { %v2492_v57 = vpack.c.bf16 %v884_v49, %v876_v48  ;;  %v966_v48 = vld [vmem:[#allocation5 + $0x1c50] sm:$0xff]  ;;  %v973_v49 = vld [vmem:[#allocation5 + $0x1c88] sm:$0xff] }
  0xf3   :  { %2473 = vmatpush1.bf16.msra.mxu0 %v2472_v59  ;;  %v2494_v59 = vpack.c.bf16 %v901_v54, %v893_v53  ;;  %v2514_v55 = vpack.c.bf16 %v981_v50, %v973_v49 }
  0xf4   :  { %2729 = vmatpush1.bf16.msra.mxu1 %v2728_v60  ;;  %2475 = vmatprep.subr.bf16.mxu0 %v2474_v61  ;;  %v892_v60 = vld [vmem:[#allocation5 + $0x1a00] sm:$0xff] }
  0xf5   :  { %2731 = vmatprep.subr.bf16.mxu1 %v2730_v1  ;;  %v900_v61 = vld [vmem:[#allocation5 + $0x1a40] sm:$0xff]  ;;  %v909_v1 = vld [vmem:[#allocation5 + $0x1a88] sm:$0xff] }
  0xf6   :  { %v2496_v5 = vpack.c.bf16 %v900_v61, %v892_v60  ;;  %v982_v60 = vld [vmem:[#allocation5 + $0x1cd0] sm:$0xff]  ;;  %v989_v61 = vld [vmem:[#allocation5 + $0x1d08] sm:$0xff] }
  0xf7   :  { %2477 = vmatpush1.bf16.msra.mxu0 %v2476_v7  ;;  %v2498_v7 = vpack.c.bf16 %v917_v2, %v909_v1  ;;  %v2518_v3 = vpack.c.bf16 %v997_v62, %v989_v61 }
  0xf8   :  { %2733 = vmatpush1.bf16.msra.mxu1 %v2732_v8  ;;  %2479 = vmatprep.subr.bf16.mxu0 %v2478_v9  ;;  %v908_v8 = vld [vmem:[#allocation5 + $0x1a80] sm:$0xff] }
  0xf9   :  { %2735 = vmatprep.subr.bf16.mxu1 %v2734_v13  ;;  %v916_v9 = vld [vmem:[#allocation5 + $0x1ac0] sm:$0xff]  ;;  %v925_v13 = vld [vmem:[#allocation5 + $0x1b08] sm:$0xff] }
  0xfa   :  { %1333 = vmatmul.mubr.f32.vlgmr.msra.gmra.mrb[0].mxu0 %v56_v19  ;;  %v2500_v17 = vpack.c.bf16 %v916_v9, %v908_v8  ;;  %v998_v8 = vld [vmem:[#allocation5 + $0x1d50] sm:$0xff]  ;;  %v1005_v9 = vld [vmem:[#allocation5 + $0x1d88] sm:$0xff] }
  0xfb   :  { %2481 = vmatpush1.bf16.msra.mxu0 %v2480_v20  ;;  %1617 = vmatmul.mubr.f32.vlgmr.msra.gmra.mrb[0].mxu1 %v56_v19  ;;  %v2502_v19 = vpack.c.bf16 %v933_v14, %v925_v13  ;;  %v924_v20 = vld [vmem:[#allocation5 + $0x1b00] sm:$0xff]  ;;  %v2522_v15 = vpack.c.bf16 %v1013_v10, %v1005_v9 }
  0xfc   :  { %2737 = vmatpush1.bf16.msra.mxu1 %v2736_v21  ;;  %2483 = vmatprep.subr.bf16.mxu0 %v2482_v22  ;;  %v932_v21 = vld [vmem:[#allocation5 + $0x1b40] sm:$0xff]  ;;  %v926_v22 = vld [vmem:[#allocation5 + $0x1b10] sm:$0xff] }
  0xfd   :  { %2739 = vmatprep.subr.bf16.mxu1 %v2738_v26  ;;  %1403 = vmatprep.mubr.f32.mxu0 %v59_v32  ;;  %v949_v26 = vld [vmem:[#allocation5 + $0x1bc8] sm:$0xff]  ;;  %v2504_v29 = vpack.c.bf16 %v932_v21, %v924_v20  ;;  %v2760_v30 = vpack.c.bf16 %v934_v24, %v926_v22  ;;  %v1014_v20 = vld [vmem:[#allocation5 + $0x1dd0] sm:$0xff]  ;;  %v1031_v24 = vld [vmem:[#allocation5 + $0x1e58] sm:$0xff] }
  0xfe   :  { %1687 = vmatprep.mubr.f32.mxu1 %v59_v32  ;;  %v2506_v31 = vpack.c.bf16 %v949_v26, %v941_v25  ;;  %v940_v32 = vld [vmem:[#allocation5 + $0x1b80] sm:$0xff]  ;;  %v1021_v21 = vld [vmem:[#allocation5 + $0x1e08] sm:$0xff] }
  0xff   :  { %2485 = vmatpush1.bf16.msra.mxu0 %v2484_v33  ;;  %v948_v33 = vld [vmem:[#allocation5 + $0x1bc0] sm:$0xff]  ;;  %v1029_v22 = vld [vmem:[#allocation5 + $0x1e48] sm:$0xff] }
 0x100   :  { %2741 = vmatpush1.bf16.msra.mxu1 %v2740_v34  ;;  %2487 = vmatprep.subr.bf16.mxu0 %v2486_v35  ;;  %v942_v34 = vld [vmem:[#allocation5 + $0x1b90] sm:$0xff]  ;;  %v2762_v35 = vpack.c.bf16 %v951_v28, %v943_v27  ;;  %v2508_v41 = vpack.c.bf16 %v948_v33, %v940_v32  ;;  %v2526_v27 = vpack.c.bf16 %v1029_v22, %v1021_v21  ;;  %v1020_v28 = vld [vmem:[#allocation5 + $0x1e00] sm:$0xff]  ;;  %v1037_v33 = vld [vmem:[#allocation5 + $0x1e88] sm:$0xff] }
 0x101   :  { %2743 = vmatprep.subr.bf16.mxu1 %v2742_v39  ;;  %v959_v39 = vld [vmem:[#allocation5 + $0x1c18] sm:$0xff]  ;;  %v2764_v42 = vpack.c.bf16 %v950_v36, %v942_v34  ;;  %v1030_v32 = vld [vmem:[#allocation5 + $0x1e50] sm:$0xff]  ;;  %v1045_v34 = vld [vmem:[#allocation5 + $0x1ec8] sm:$0xff] }
 0x102   :  { %v1047_v36 = vld [vmem:[#allocation5 + $0x1ed8] sm:$0xff]  ;;  %v58_v21 = vld [vmem:[#allocation2 + $0x30] sm:$0xff] }
 0x103   :  { %2489 = vmatpush1.bf16.msra.mxu0 %v2488_v45  ;;  %v964_v45 = vld [vmem:[#allocation5 + $0x1c40] sm:$0xff] }
 0x104   :  { %2745 = vmatpush1.bf16.msra.mxu1 %v2744_v46  ;;  %2491 = vmatprep.subr.bf16.mxu0 %v2490_v47  ;;  %v958_v46 = vld [vmem:[#allocation5 + $0x1c10] sm:$0xff]  ;;  %v2766_v47 = vpack.c.bf16 %v967_v40, %v959_v39  ;;  %v2512_v53 = vpack.c.bf16 %v964_v45, %v956_v44  ;;  %v2530_v39 = vpack.c.bf16 %v1045_v34, %v1037_v33  ;;  %v1036_v40 = vld [vmem:[#allocation5 + $0x1e80] sm:$0xff]  ;;  %v1053_v45 = vld [vmem:[#allocation5 + $0x1f08] sm:$0xff] }
 0x105   :  { %2747 = vmatprep.subr.bf16.mxu1 %v2746_v51  ;;  %v975_v51 = vld [vmem:[#allocation5 + $0x1c98] sm:$0xff]  ;;  %v2768_v54 = vpack.c.bf16 %v966_v48, %v958_v46  ;;  %v1046_v44 = vld [vmem:[#allocation5 + $0x1ed0] sm:$0xff]  ;;  %v1061_v46 = vld [vmem:[#allocation5 + $0x1f48] sm:$0xff] }
 0x106   :  { %v1063_v48 = vld [vmem:[#allocation5 + $0x1f58] sm:$0xff] }
 0x107   :  { %2493 = vmatpush1.bf16.msra.mxu0 %v2492_v57  ;;  %v980_v57 = vld [vmem:[#allocation5 + $0x1cc0] sm:$0xff]  ;;  %v107_v33 = vld [vmem:[#allocation5 + $0x178] sm:$0xff] }
 0x108   :  { %2749 = vmatpush1.bf16.msra.mxu1 %v2748_v58  ;;  %2495 = vmatprep.subr.bf16.mxu0 %v2494_v59  ;;  %v974_v58 = vld [vmem:[#allocation5 + $0x1c90] sm:$0xff]  ;;  %v2770_v59 = vpack.c.bf16 %v983_v52, %v975_v51  ;;  %v2516_v1 = vpack.c.bf16 %v980_v57, %v972_v56  ;;  %v2534_v51 = vpack.c.bf16 %v1061_v46, %v1053_v45  ;;  %v1052_v52 = vld [vmem:[#allocation5 + $0x1f00] sm:$0xff]  ;;  %v1069_v57 = vld [vmem:[#allocation5 + $0x1f88] sm:$0xff] }
 0x109   :  { %2751 = vmatprep.subr.bf16.mxu1 %v2750_v63  ;;  %v991_v63 = vld [vmem:[#allocation5 + $0x1d18] sm:$0xff]  ;;  %v2772_v2 = vpack.c.bf16 %v982_v60, %v974_v58  ;;  %v1062_v56 = vld [vmem:[#allocation5 + $0x1f50] sm:$0xff]  ;;  %v1077_v58 = vld [vmem:[#allocation5 + $0x1fc8] sm:$0xff] }
 0x10a   :  { %v1079_v60 = vld [vmem:[#allocation5 + $0x1fd8] sm:$0xff] }
 0x10b   :  { %2497 = vmatpush1.bf16.msra.mxu0 %v2496_v5  ;;  %v996_v5 = vld [vmem:[#allocation5 + $0x1d40] sm:$0xff]  ;;  %v115_v45 = vld [vmem:[#allocation5 + $0x1b8] sm:$0xff] }
 0x10c   :  { %2753 = vmatpush1.bf16.msra.mxu1 %v2752_v6  ;;  %2499 = vmatprep.subr.bf16.mxu0 %v2498_v7  ;;  %v990_v6 = vld [vmem:[#allocation5 + $0x1d10] sm:$0xff]  ;;  %v2774_v7 = vpack.c.bf16 %v999_v0, %v991_v63  ;;  %v2520_v13 = vpack.c.bf16 %v996_v5, %v988_v4  ;;  %v2538_v63 = vpack.c.bf16 %v1077_v58, %v1069_v57  ;;  %v1068_v0 = vld [vmem:[#allocation5 + $0x1f80] sm:$0xff]  ;;  %v65_v5 = vld [vmem:[#allocation5 + $0x28] sm:$0xff] }
 0x10d   :  { %2755 = vmatprep.subr.bf16.mxu1 %v2754_v11  ;;  %v1007_v11 = vld [vmem:[#allocation5 + $0x1d98] sm:$0xff]  ;;  %v2776_v14 = vpack.c.bf16 %v998_v8, %v990_v6  ;;  %v1078_v4 = vld [vmem:[#allocation5 + $0x1fd0] sm:$0xff]  ;;  %v73_v6 = vld [vmem:[#allocation5 + $0x68] sm:$0xff] }
 0x10e   :  { %v75_v8 = vld [vmem:[#allocation5 + $0x78] sm:$0xff] }
 0x10f   :  { %2501 = vmatpush1.bf16.msra.mxu0 %v2500_v17  ;;  %v1012_v17 = vld [vmem:[#allocation5 + $0x1dc0] sm:$0xff]  ;;  %v123_v46 = vld [vmem:[#allocation5 + $0x1f8] sm:$0xff] }
 0x110   :  { %2757 = vmatpush1.bf16.msra.mxu1 %v2756_v18  ;;  %2503 = vmatprep.subr.bf16.mxu0 %v2502_v19  ;;  %v1006_v18 = vld [vmem:[#allocation5 + $0x1d90] sm:$0xff]  ;;  %v2778_v19 = vpack.c.bf16 %v1015_v12, %v1007_v11  ;;  %v2524_v25 = vpack.c.bf16 %v1012_v17, %v1004_v16  ;;  %v2798_v11 = vpack.c.bf16 %v73_v6, %v65_v5  ;;  %v64_v12 = vld [vmem:[#allocation5 + $0x20] sm:$0xff]  ;;  %v81_v17 = vld [vmem:[#allocation5 + $0xa8] sm:$0xff] }
 0x111   :  { %2759 = vmatprep.subr.bf16.mxu1 %v2758_v23  ;;  %v1023_v23 = vld [vmem:[#allocation5 + $0x1e18] sm:$0xff]  ;;  %v2780_v26 = vpack.c.bf16 %v1014_v20, %v1006_v18  ;;  %v74_v16 = vld [vmem:[#allocation5 + $0x70] sm:$0xff]  ;;  %v89_v18 = vld [vmem:[#allocation5 + $0xe8] sm:$0xff] }
 0x112   :  { %v91_v20 = vld [vmem:[#allocation5 + $0xf8] sm:$0xff] }
 0x113   :  { %2505 = vmatpush1.bf16.msra.mxu0 %v2504_v29  ;;  %v1028_v29 = vld [vmem:[#allocation5 + $0x1e40] sm:$0xff]  ;;  %v131_v57 = vld [vmem:[#allocation5 + $0x238] sm:$0xff] }
 0x114   :  { %2761 = vmatpush1.bf16.msra.mxu1 %v2760_v30  ;;  %2507 = vmatprep.subr.bf16.mxu0 %v2506_v31  ;;  %v1022_v30 = vld [vmem:[#allocation5 + $0x1e10] sm:$0xff]  ;;  %v2782_v31 = vpack.c.bf16 %v1031_v24, %v1023_v23  ;;  %v2528_v37 = vpack.c.bf16 %v1028_v29, %v1020_v28  ;;  %v2802_v24 = vpack.c.bf16 %v89_v18, %v81_v17  ;;  %v139_v58 = vld [vmem:[#allocation5 + $0x278] sm:$0xff] }
 0x115   :  { %2763 = vmatprep.subr.bf16.mxu1 %v2762_v35  ;;  %v1039_v35 = vld [vmem:[#allocation5 + $0x1e98] sm:$0xff]  ;;  %v2784_v38 = vpack.c.bf16 %v1030_v32, %v1022_v30  ;;  %v90_v29 = vld [vmem:[#allocation5 + $0xf0] sm:$0xff]  ;;  %v97_v30 = vld [vmem:[#allocation5 + $0x128] sm:$0xff] }
 0x116   :  { %v99_v32 = vld [vmem:[#allocation5 + $0x138] sm:$0xff] }
 0x117   :  { %2509 = vmatpush1.bf16.msra.mxu0 %v2508_v41  ;;  %v1044_v41 = vld [vmem:[#allocation5 + $0x1ec0] sm:$0xff]  ;;  %v147_v5 = vld [vmem:[#allocation5 + $0x2b8] sm:$0xff] }
 0x118   :  { %2765 = vmatpush1.bf16.msra.mxu1 %v2764_v42  ;;  %2511 = vmatprep.subr.bf16.mxu0 %v2510_v43  ;;  %v1038_v42 = vld [vmem:[#allocation5 + $0x1e90] sm:$0xff]  ;;  %v2786_v43 = vpack.c.bf16 %v1047_v36, %v1039_v35  ;;  %v2532_v49 = vpack.c.bf16 %v1044_v41, %v1036_v40  ;;  %v3062_v40 = vpack.c.bf16 %v107_v33, %v99_v32  ;;  %v155_v6 = vld [vmem:[#allocation5 + $0x2f8] sm:$0xff] }
 0x119   :  { %2767 = vmatprep.subr.bf16.mxu1 %v2766_v47  ;;  %v1055_v47 = vld [vmem:[#allocation5 + $0x1f18] sm:$0xff]  ;;  %v2788_v50 = vpack.c.bf16 %v1046_v44, %v1038_v42  ;;  %v106_v41 = vld [vmem:[#allocation5 + $0x170] sm:$0xff]  ;;  %v113_v42 = vld [vmem:[#allocation5 + $0x1a8] sm:$0xff] }
 0x11a   :  { %v3348_v44 = vld [vmem:[#allocation2 + $0x8] sm:$0xff]  ;;  %v163_v17 = vld [vmem:[#allocation5 + $0x338] sm:$0xff] }
 0x11b   :  { %2513 = vmatpush1.bf16.msra.mxu0 %v2512_v53  ;;  %v1060_v53 = vld [vmem:[#allocation5 + $0x1f40] sm:$0xff]  ;;  %v171_v18 = vld [vmem:[#allocation5 + $0x378] sm:$0xff] }
 0x11c   :  { %2769 = vmatpush1.bf16.msra.mxu1 %v2768_v54  ;;  %2515 = vmatprep.subr.bf16.mxu0 %v2514_v55  ;;  %v1054_v54 = vld [vmem:[#allocation5 + $0x1f10] sm:$0xff]  ;;  %v2790_v55 = vpack.c.bf16 %v1063_v48, %v1055_v47  ;;  %v2536_v61 = vpack.c.bf16 %v1060_v53, %v1052_v52  ;;  %v3066_v53 = vpack.c.bf16 %v123_v46, %v115_v45  ;;  %v192_v46 = vld [vmem:[#allocation5 + $0x420] sm:$0xff] }
 0x11d   :  { %2771 = vmatprep.subr.bf16.mxu1 %v2770_v59  ;;  %v1071_v59 = vld [vmem:[#allocation5 + $0x1f98] sm:$0xff]  ;;  %v2792_v62 = vpack.c.bf16 %v1062_v56, %v1054_v54  ;;  %v114_v52 = vld [vmem:[#allocation5 + $0x1b0] sm:$0xff]  ;;  %v137_v56 = vld [vmem:[#allocation5 + $0x268] sm:$0xff] }
 0x11e   :  { %v122_v54 = vld [vmem:[#allocation5 + $0x1f0] sm:$0xff] }
 0x11f   :  { %2517 = vmatpush1.bf16.msra.mxu0 %v2516_v1  ;;  %v1076_v1 = vld [vmem:[#allocation5 + $0x1fc0] sm:$0xff] }
 0x120   :  { %2773 = vmatpush1.bf16.msra.mxu1 %v2772_v2  ;;  %2519 = vmatprep.subr.bf16.mxu0 %v2518_v3  ;;  %v1070_v2 = vld [vmem:[#allocation5 + $0x1f90] sm:$0xff]  ;;  %v2794_v3 = vpack.c.bf16 %v1079_v60, %v1071_v59  ;;  %v2540_v9 = vpack.c.bf16 %v1076_v1, %v1068_v0  ;;  %v3068_v60 = vpack.c.bf16 %v122_v54, %v114_v52  ;;  %v217_v52 = vld [vmem:[#allocation5 + $0x4e8] sm:$0xff]  ;;  %v219_v54 = vld [vmem:[#allocation5 + $0x4f8] sm:$0xff] }
 0x121   :  { %2775 = vmatprep.subr.bf16.mxu1 %v2774_v7  ;;  %v67_v7 = vld [vmem:[#allocation5 + $0x38] sm:$0xff]  ;;  %v2796_v10 = vpack.c.bf16 %v1078_v4, %v1070_v2  ;;  %v130_v0 = vld [vmem:[#allocation5 + $0x230] sm:$0xff]  ;;  %v3070_v1 = vpack.c.bf16 %v139_v58, %v131_v57  ;;  %v153_v4 = vld [vmem:[#allocation5 + $0x2e8] sm:$0xff] }
 0x122   :  { %v138_v2 = vld [vmem:[#allocation5 + $0x270] sm:$0xff]  ;;  %v208_v58 = vld [vmem:[#allocation5 + $0x4a0] sm:$0xff] }
 0x123   :  { %2521 = vmatpush1.bf16.msra.mxu0 %v2520_v13  ;;  %v72_v13 = vld [vmem:[#allocation5 + $0x60] sm:$0xff] }
 0x124   :  { %2777 = vmatpush1.bf16.msra.mxu1 %v2776_v14  ;;  %2523 = vmatprep.subr.bf16.mxu0 %v2522_v15  ;;  %v66_v14 = vld [vmem:[#allocation5 + $0x30] sm:$0xff]  ;;  %v3054_v15 = vpack.c.bf16 %v75_v8, %v67_v7  ;;  %v2800_v22 = vpack.c.bf16 %v72_v13, %v64_v12  ;;  %v3072_v8 = vpack.c.bf16 %v138_v2, %v130_v0  ;;  %v233_v0 = vld [vmem:[#allocation5 + $0x568] sm:$0xff]  ;;  %v235_v2 = vld [vmem:[#allocation5 + $0x578] sm:$0xff] }
 0x125   :  { %2779 = vmatprep.subr.bf16.mxu1 %v2778_v19  ;;  %v83_v19 = vld [vmem:[#allocation5 + $0xb8] sm:$0xff]  ;;  %v3056_v23 = vpack.c.bf16 %v74_v16, %v66_v14  ;;  %v146_v12 = vld [vmem:[#allocation5 + $0x2b0] sm:$0xff]  ;;  %v3074_v13 = vpack.c.bf16 %v155_v6, %v147_v5  ;;  %v169_v16 = vld [vmem:[#allocation5 + $0x368] sm:$0xff] }
 0x126   :  { %v3058_v28 = vpack.c.bf16 %v91_v20, %v83_v19  ;;  %v154_v14 = vld [vmem:[#allocation5 + $0x2f0] sm:$0xff]  ;;  %v224_v6 = vld [vmem:[#allocation5 + $0x520] sm:$0xff] }
 0x127   :  { %2525 = vmatpush1.bf16.msra.mxu0 %v2524_v25  ;;  %v80_v25 = vld [vmem:[#allocation5 + $0xa0] sm:$0xff]  ;;  %v3076_v20 = vpack.c.bf16 %v154_v14, %v146_v12  ;;  %v249_v12 = vld [vmem:[#allocation5 + $0x5e8] sm:$0xff]  ;;  %v251_v14 = vld [vmem:[#allocation5 + $0x5f8] sm:$0xff] }
 0x128   :  { %2781 = vmatpush1.bf16.msra.mxu1 %v2780_v26  ;;  %2527 = vmatprep.subr.bf16.mxu0 %v2526_v27  ;;  %v88_v26 = vld [vmem:[#allocation5 + $0xe0] sm:$0xff]  ;;  %v82_v27 = vld [vmem:[#allocation5 + $0xb0] sm:$0xff] }
 0x129   :  { %2783 = vmatprep.subr.bf16.mxu1 %v2782_v31  ;;  %v105_v31 = vld [vmem:[#allocation5 + $0x168] sm:$0xff]  ;;  %v2804_v34 = vpack.c.bf16 %v88_v26, %v80_v25  ;;  %v3060_v35 = vpack.c.bf16 %v90_v29, %v82_v27  ;;  %v3078_v25 = vpack.c.bf16 %v171_v18, %v163_v17  ;;  %v170_v26 = vld [vmem:[#allocation5 + $0x370] sm:$0xff]  ;;  %v179_v29 = vld [vmem:[#allocation5 + $0x3b8] sm:$0xff] }
 0x12a   :  { %v2806_v36 = vpack.c.bf16 %v105_v31, %v97_v30  ;;  %v177_v27 = vld [vmem:[#allocation5 + $0x3a8] sm:$0xff]  ;;  %v187_v30 = vld [vmem:[#allocation5 + $0x3f8] sm:$0xff]  ;;  %v240_v18 = vld [vmem:[#allocation5 + $0x5a0] sm:$0xff] }
 0x12b   :  { %2529 = vmatpush1.bf16.msra.mxu0 %v2528_v37  ;;  %v96_v37 = vld [vmem:[#allocation5 + $0x120] sm:$0xff] }
 0x12c   :  { %2785 = vmatpush1.bf16.msra.mxu1 %v2784_v38  ;;  %2531 = vmatprep.subr.bf16.mxu0 %v2530_v39  ;;  %v104_v38 = vld [vmem:[#allocation5 + $0x160] sm:$0xff]  ;;  %v98_v39 = vld [vmem:[#allocation5 + $0x130] sm:$0xff] }
 0x12d   :  { %2787 = vmatprep.subr.bf16.mxu1 %v2786_v43  ;;  %v121_v43 = vld [vmem:[#allocation5 + $0x1e8] sm:$0xff]  ;;  %v2808_v47 = vpack.c.bf16 %v104_v38, %v96_v37  ;;  %v3064_v48 = vpack.c.bf16 %v106_v41, %v98_v39  ;;  %v3082_v37 = vpack.c.bf16 %v187_v30, %v179_v29  ;;  %v186_v38 = vld [vmem:[#allocation5 + $0x3f0] sm:$0xff]  ;;  %v195_v41 = vld [vmem:[#allocation5 + $0x438] sm:$0xff] }
 0x12e   :  { %v193_v39 = vld [vmem:[#allocation5 + $0x428] sm:$0xff]  ;;  %v256_v30 = vld [vmem:[#allocation5 + $0x620] sm:$0xff] }
 0x12f   :  { %2533 = vmatpush1.bf16.msra.mxu0 %v2532_v49  ;;  %v2810_v49 = vpack.c.bf16 %v121_v43, %v113_v42  ;;  %v203_v42 = vld [vmem:[#allocation5 + $0x478] sm:$0xff] }
 0x130   :  { %2789 = vmatpush1.bf16.msra.mxu1 %v2788_v50  ;;  %2535 = vmatprep.subr.bf16.mxu0 %v2534_v51  ;;  %v112_v50 = vld [vmem:[#allocation5 + $0x1a0] sm:$0xff] }
 0x131   :  { %2791 = vmatprep.subr.bf16.mxu1 %v2790_v55  ;;  %v120_v51 = vld [vmem:[#allocation5 + $0x1e0] sm:$0xff]  ;;  %v129_v55 = vld [vmem:[#allocation5 + $0x228] sm:$0xff] }
 0x132   :  { %v2812_v59 = vpack.c.bf16 %v120_v51, %v112_v50  ;;  %v202_v50 = vld [vmem:[#allocation5 + $0x470] sm:$0xff]  ;;  %v209_v51 = vld [vmem:[#allocation5 + $0x4a8] sm:$0xff] }
 0x133   :  { %2537 = vmatpush1.bf16.msra.mxu0 %v2536_v61  ;;  %v2814_v61 = vpack.c.bf16 %v137_v56, %v129_v55  ;;  %v2834_v57 = vpack.c.bf16 %v217_v52, %v209_v51 }
 0x134   :  { %2793 = vmatpush1.bf16.msra.mxu1 %v2792_v62  ;;  %2539 = vmatprep.subr.bf16.mxu0 %v2538_v63  ;;  %v128_v62 = vld [vmem:[#allocation5 + $0x220] sm:$0xff] }
 0x135   :  { %2795 = vmatprep.subr.bf16.mxu1 %v2794_v3  ;;  %v136_v63 = vld [vmem:[#allocation5 + $0x260] sm:$0xff]  ;;  %v145_v3 = vld [vmem:[#allocation5 + $0x2a8] sm:$0xff] }
 0x136   :  { %v2816_v7 = vpack.c.bf16 %v136_v63, %v128_v62  ;;  %v218_v62 = vld [vmem:[#allocation5 + $0x4f0] sm:$0xff]  ;;  %v225_v63 = vld [vmem:[#allocation5 + $0x528] sm:$0xff] }
 0x137   :  { %2541 = vmatpush1.bf16.msra.mxu0 %v2540_v9  ;;  %v2818_v9 = vpack.c.bf16 %v153_v4, %v145_v3  ;;  %v2838_v5 = vpack.c.bf16 %v233_v0, %v225_v63 }
 0x138   :  { %2797 = vmatpush1.bf16.msra.mxu1 %v2796_v10  ;;  %2799 = vmatprep.subr.bf16.mxu0 %v2798_v11  ;;  %v144_v10 = vld [vmem:[#allocation5 + $0x2a0] sm:$0xff] }
 0x139   :  { %3055 = vmatprep.subr.bf16.mxu1 %v3054_v15  ;;  %v152_v11 = vld [vmem:[#allocation5 + $0x2e0] sm:$0xff]  ;;  %v161_v15 = vld [vmem:[#allocation5 + $0x328] sm:$0xff] }
 0x13a   :  { %1404 = vmatmul.mubr.f32.vlgmr.msra.gmra.mrb[0].mxu0 %v58_v21  ;;  %v2820_v19 = vpack.c.bf16 %v152_v11, %v144_v10  ;;  %v234_v10 = vld [vmem:[#allocation5 + $0x570] sm:$0xff]  ;;  %v241_v11 = vld [vmem:[#allocation5 + $0x5a8] sm:$0xff] }
 0x13b   :  { %1688 = vmatmul.mubr.f32.vlgmr.msra.gmra.mrb[0].mxu1 %v58_v21  ;;  %2801 = vmatpush1.bf16.msra.mxu0 %v2800_v22  ;;  %v2822_v21 = vpack.c.bf16 %v169_v16, %v161_v15  ;;  %v160_v22 = vld [vmem:[#allocation5 + $0x320] sm:$0xff]  ;;  %v2842_v17 = vpack.c.bf16 %v249_v12, %v241_v11 }
 0x13c   :  { %3057 = vmatpush1.bf16.msra.mxu1 %v3056_v23  ;;  %2803 = vmatprep.subr.bf16.mxu0 %v2802_v24  ;;  %v168_v23 = vld [vmem:[#allocation5 + $0x360] sm:$0xff]  ;;  %v162_v24 = vld [vmem:[#allocation5 + $0x330] sm:$0xff] }
 0x13d   :  { %3059 = vmatprep.subr.bf16.mxu1 %v3058_v28  ;;  %1758 = vmatprep.mubr.f32.mxu0 %v3348_v44  ;;  %v185_v28 = vld [vmem:[#allocation5 + $0x3e8] sm:$0xff]  ;;  %v2824_v31 = vpack.c.bf16 %v168_v23, %v160_v22  ;;  %v3080_v32 = vpack.c.bf16 %v170_v26, %v162_v24  ;;  %v250_v22 = vld [vmem:[#allocation5 + $0x5f0] sm:$0xff]  ;;  %v267_v26 = vld [vmem:[#allocation5 + $0x678] sm:$0xff] }
 0x13e   :  { %2042 = vmatprep.mubr.f32.mxu1 %v3348_v44  ;;  %v2826_v33 = vpack.c.bf16 %v185_v28, %v177_v27  ;;  %v257_v23 = vld [vmem:[#allocation5 + $0x628] sm:$0xff] }
 0x13f   :  { %2805 = vmatpush1.bf16.msra.mxu0 %v2804_v34  ;;  %v176_v34 = vld [vmem:[#allocation5 + $0x3a0] sm:$0xff]  ;;  %v265_v24 = vld [vmem:[#allocation5 + $0x668] sm:$0xff] }
 0x140   :  { %3061 = vmatpush1.bf16.msra.mxu1 %v3060_v35  ;;  %2807 = vmatprep.subr.bf16.mxu0 %v2806_v36  ;;  %v184_v35 = vld [vmem:[#allocation5 + $0x3e0] sm:$0xff]  ;;  %v178_v36 = vld [vmem:[#allocation5 + $0x3b0] sm:$0xff]  ;;  %v2846_v29 = vpack.c.bf16 %v265_v24, %v257_v23 }
 0x141   :  { %3063 = vmatprep.subr.bf16.mxu1 %v3062_v40  ;;  %v201_v40 = vld [vmem:[#allocation5 + $0x468] sm:$0xff]  ;;  %v2828_v43 = vpack.c.bf16 %v184_v35, %v176_v34  ;;  %v3084_v44 = vpack.c.bf16 %v186_v38, %v178_v36  ;;  %v266_v34 = vld [vmem:[#allocation5 + $0x670] sm:$0xff]  ;;  %v283_v38 = vld [vmem:[#allocation5 + $0x6f8] sm:$0xff] }
 0x142   :  { %v2830_v45 = vpack.c.bf16 %v201_v40, %v193_v39  ;;  %v273_v35 = vld [vmem:[#allocation5 + $0x6a8] sm:$0xff] }
 0x143   :  { %2809 = vmatpush1.bf16.msra.mxu0 %v2808_v47  ;;  %v200_v47 = vld [vmem:[#allocation5 + $0x460] sm:$0xff]  ;;  %v281_v36 = vld [vmem:[#allocation5 + $0x6e8] sm:$0xff] }
 0x144   :  { %3065 = vmatpush1.bf16.msra.mxu1 %v3064_v48  ;;  %2811 = vmatprep.subr.bf16.mxu0 %v2810_v49  ;;  %v194_v48 = vld [vmem:[#allocation5 + $0x430] sm:$0xff]  ;;  %v3086_v49 = vpack.c.bf16 %v203_v42, %v195_v41  ;;  %v2832_v55 = vpack.c.bf16 %v200_v47, %v192_v46  ;;  %v2850_v41 = vpack.c.bf16 %v281_v36, %v273_v35  ;;  %v272_v42 = vld [vmem:[#allocation5 + $0x6a0] sm:$0xff]  ;;  %v289_v47 = vld [vmem:[#allocation5 + $0x728] sm:$0xff] }
 0x145   :  { %3067 = vmatprep.subr.bf16.mxu1 %v3066_v53  ;;  %v211_v53 = vld [vmem:[#allocation5 + $0x4b8] sm:$0xff]  ;;  %v3088_v56 = vpack.c.bf16 %v202_v50, %v194_v48  ;;  %v282_v46 = vld [vmem:[#allocation5 + $0x6f0] sm:$0xff]  ;;  %v297_v48 = vld [vmem:[#allocation5 + $0x768] sm:$0xff] }
 0x146   :  { %v299_v50 = vld [vmem:[#allocation5 + $0x778] sm:$0xff] }
 0x147   :  { %2813 = vmatpush1.bf16.msra.mxu0 %v2812_v59  ;;  %v216_v59 = vld [vmem:[#allocation5 + $0x4e0] sm:$0xff]  ;;  %v363_v35 = vld [vmem:[#allocation5 + $0x978] sm:$0xff] }
 0x148   :  { %3069 = vmatpush1.bf16.msra.mxu1 %v3068_v60  ;;  %2815 = vmatprep.subr.bf16.mxu0 %v2814_v61  ;;  %v210_v60 = vld [vmem:[#allocation5 + $0x4b0] sm:$0xff]  ;;  %v3090_v61 = vpack.c.bf16 %v219_v54, %v211_v53  ;;  %v2836_v3 = vpack.c.bf16 %v216_v59, %v208_v58  ;;  %v2854_v53 = vpack.c.bf16 %v297_v48, %v289_v47  ;;  %v288_v54 = vld [vmem:[#allocation5 + $0x720] sm:$0xff]  ;;  %v305_v59 = vld [vmem:[#allocation5 + $0x7a8] sm:$0xff] }
 0x149   :  { %3071 = vmatprep.subr.bf16.mxu1 %v3070_v1  ;;  %v227_v1 = vld [vmem:[#allocation5 + $0x538] sm:$0xff]  ;;  %v3092_v4 = vpack.c.bf16 %v218_v62, %v210_v60  ;;  %v298_v58 = vld [vmem:[#allocation5 + $0x770] sm:$0xff]  ;;  %v313_v60 = vld [vmem:[#allocation5 + $0x7e8] sm:$0xff] }
 0x14a   :  { %v315_v62 = vld [vmem:[#allocation5 + $0x7f8] sm:$0xff] }
 0x14b   :  { %2817 = vmatpush1.bf16.msra.mxu0 %v2816_v7  ;;  %v232_v7 = vld [vmem:[#allocation5 + $0x560] sm:$0xff]  ;;  %v371_v47 = vld [vmem:[#allocation5 + $0x9b8] sm:$0xff] }
 0x14c   :  { %3073 = vmatpush1.bf16.msra.mxu1 %v3072_v8  ;;  %2819 = vmatprep.subr.bf16.mxu0 %v2818_v9  ;;  %v226_v8 = vld [vmem:[#allocation5 + $0x530] sm:$0xff]  ;;  %v3094_v9 = vpack.c.bf16 %v235_v2, %v227_v1  ;;  %v2840_v15 = vpack.c.bf16 %v232_v7, %v224_v6  ;;  %v2858_v1 = vpack.c.bf16 %v313_v60, %v305_v59  ;;  %v304_v2 = vld [vmem:[#allocation5 + $0x7a0] sm:$0xff]  ;;  %v321_v7 = vld [vmem:[#allocation5 + $0x828] sm:$0xff] }
 0x14d   :  { %3075 = vmatprep.subr.bf16.mxu1 %v3074_v13  ;;  %v243_v13 = vld [vmem:[#allocation5 + $0x5b8] sm:$0xff]  ;;  %v3096_v16 = vpack.c.bf16 %v234_v10, %v226_v8  ;;  %v314_v6 = vld [vmem:[#allocation5 + $0x7f0] sm:$0xff]  ;;  %v329_v8 = vld [vmem:[#allocation5 + $0x868] sm:$0xff] }
 0x14e   :  { %v331_v10 = vld [vmem:[#allocation5 + $0x878] sm:$0xff] }
 0x14f   :  { %2821 = vmatpush1.bf16.msra.mxu0 %v2820_v19  ;;  %v248_v19 = vld [vmem:[#allocation5 + $0x5e0] sm:$0xff]  ;;  %v379_v48 = vld [vmem:[#allocation5 + $0x9f8] sm:$0xff] }
 0x150   :  { %3077 = vmatpush1.bf16.msra.mxu1 %v3076_v20  ;;  %2823 = vmatprep.subr.bf16.mxu0 %v2822_v21  ;;  %v242_v20 = vld [vmem:[#allocation5 + $0x5b0] sm:$0xff]  ;;  %v3098_v21 = vpack.c.bf16 %v251_v14, %v243_v13  ;;  %v2844_v27 = vpack.c.bf16 %v248_v19, %v240_v18  ;;  %v2862_v13 = vpack.c.bf16 %v329_v8, %v321_v7  ;;  %v320_v14 = vld [vmem:[#allocation5 + $0x820] sm:$0xff]  ;;  %v337_v19 = vld [vmem:[#allocation5 + $0x8a8] sm:$0xff] }
 0x151   :  { %3079 = vmatprep.subr.bf16.mxu1 %v3078_v25  ;;  %v259_v25 = vld [vmem:[#allocation5 + $0x638] sm:$0xff]  ;;  %v3100_v28 = vpack.c.bf16 %v250_v22, %v242_v20  ;;  %v330_v18 = vld [vmem:[#allocation5 + $0x870] sm:$0xff]  ;;  %v345_v20 = vld [vmem:[#allocation5 + $0x8e8] sm:$0xff] }
 0x152   :  { %v347_v22 = vld [vmem:[#allocation5 + $0x8f8] sm:$0xff] }
 0x153   :  { %2825 = vmatpush1.bf16.msra.mxu0 %v2824_v31  ;;  %v264_v31 = vld [vmem:[#allocation5 + $0x660] sm:$0xff]  ;;  %v387_v59 = vld [vmem:[#allocation5 + $0xa38] sm:$0xff] }
 0x154   :  { %3081 = vmatpush1.bf16.msra.mxu1 %v3080_v32  ;;  %2827 = vmatprep.subr.bf16.mxu0 %v2826_v33  ;;  %v258_v32 = vld [vmem:[#allocation5 + $0x630] sm:$0xff]  ;;  %v3102_v33 = vpack.c.bf16 %v267_v26, %v259_v25  ;;  %v2848_v39 = vpack.c.bf16 %v264_v31, %v256_v30  ;;  %v2866_v25 = vpack.c.bf16 %v345_v20, %v337_v19  ;;  %v336_v26 = vld [vmem:[#allocation5 + $0x8a0] sm:$0xff]  ;;  %v353_v31 = vld [vmem:[#allocation5 + $0x928] sm:$0xff] }
 0x155   :  { %3083 = vmatprep.subr.bf16.mxu1 %v3082_v37  ;;  %v275_v37 = vld [vmem:[#allocation5 + $0x6b8] sm:$0xff]  ;;  %v3104_v40 = vpack.c.bf16 %v266_v34, %v258_v32  ;;  %v346_v30 = vld [vmem:[#allocation5 + $0x8f0] sm:$0xff]  ;;  %v361_v32 = vld [vmem:[#allocation5 + $0x968] sm:$0xff] }
 0x156   :  { %v355_v34 = vld [vmem:[#allocation5 + $0x938] sm:$0xff] }
 0x157   :  { %2829 = vmatpush1.bf16.msra.mxu0 %v2828_v43  ;;  %v280_v43 = vld [vmem:[#allocation5 + $0x6e0] sm:$0xff]  ;;  %v395_v60 = vld [vmem:[#allocation5 + $0xa78] sm:$0xff] }
 0x158   :  { %3085 = vmatpush1.bf16.msra.mxu1 %v3084_v44  ;;  %2831 = vmatprep.subr.bf16.mxu0 %v2830_v45  ;;  %v274_v44 = vld [vmem:[#allocation5 + $0x6b0] sm:$0xff]  ;;  %v3106_v45 = vpack.c.bf16 %v283_v38, %v275_v37  ;;  %v2852_v51 = vpack.c.bf16 %v280_v43, %v272_v42  ;;  %v2870_v38 = vpack.c.bf16 %v361_v32, %v353_v31  ;;  %v403_v7 = vld [vmem:[#allocation5 + $0xab8] sm:$0xff] }
 0x159   :  { %3087 = vmatprep.subr.bf16.mxu1 %v3086_v49  ;;  %v291_v49 = vld [vmem:[#allocation5 + $0x738] sm:$0xff]  ;;  %v3108_v52 = vpack.c.bf16 %v282_v46, %v274_v44  ;;  %v3126_v42 = vpack.c.bf16 %v363_v35, %v355_v34  ;;  %v362_v43 = vld [vmem:[#allocation5 + $0x970] sm:$0xff]  ;;  %v369_v44 = vld [vmem:[#allocation5 + $0x9a8] sm:$0xff] }
 0x15a   :  { %v3350_v46 = vld [vmem:[#allocation2 + $0x18] sm:$0xff] }
 0x15b   :  { %2833 = vmatpush1.bf16.msra.mxu0 %v2832_v55  ;;  %v296_v55 = vld [vmem:[#allocation5 + $0x760] sm:$0xff]  ;;  %v411_v8 = vld [vmem:[#allocation5 + $0xaf8] sm:$0xff] }
 0x15c   :  { %3089 = vmatpush1.bf16.msra.mxu1 %v3088_v56  ;;  %2835 = vmatprep.subr.bf16.mxu0 %v2834_v57  ;;  %v290_v56 = vld [vmem:[#allocation5 + $0x730] sm:$0xff]  ;;  %v3110_v57 = vpack.c.bf16 %v299_v50, %v291_v49  ;;  %v2856_v63 = vpack.c.bf16 %v296_v55, %v288_v54  ;;  %v3130_v55 = vpack.c.bf16 %v379_v48, %v371_v47  ;;  %v419_v19 = vld [vmem:[#allocation5 + $0xb38] sm:$0xff]  ;;  %v448_v48 = vld [vmem:[#allocation5 + $0xc20] sm:$0xff] }
 0x15d   :  { %3091 = vmatprep.subr.bf16.mxu1 %v3090_v61  ;;  %v307_v61 = vld [vmem:[#allocation5 + $0x7b8] sm:$0xff]  ;;  %v3112_v0 = vpack.c.bf16 %v298_v58, %v290_v56  ;;  %v370_v54 = vld [vmem:[#allocation5 + $0x9b0] sm:$0xff]  ;;  %v393_v58 = vld [vmem:[#allocation5 + $0xa68] sm:$0xff] }
 0x15e   :  { %v378_v56 = vld [vmem:[#allocation5 + $0x9f0] sm:$0xff]  ;;  %v427_v20 = vld [vmem:[#allocation5 + $0xb78] sm:$0xff] }
 0x15f   :  { %2837 = vmatpush1.bf16.msra.mxu0 %v2836_v3  ;;  %v312_v3 = vld [vmem:[#allocation5 + $0x7e0] sm:$0xff]  ;;  %v435_v31 = vld [vmem:[#allocation5 + $0xbb8] sm:$0xff] }
 0x160   :  { %3093 = vmatpush1.bf16.msra.mxu1 %v3092_v4  ;;  %2839 = vmatprep.subr.bf16.mxu0 %v2838_v5  ;;  %v306_v4 = vld [vmem:[#allocation5 + $0x7b0] sm:$0xff]  ;;  %v3114_v5 = vpack.c.bf16 %v315_v62, %v307_v61  ;;  %v2860_v11 = vpack.c.bf16 %v312_v3, %v304_v2  ;;  %v3132_v62 = vpack.c.bf16 %v378_v56, %v370_v54  ;;  %v443_v32 = vld [vmem:[#allocation5 + $0xbf8] sm:$0xff]  ;;  %v473_v54 = vld [vmem:[#allocation5 + $0xce8] sm:$0xff] }
 0x161   :  { %3095 = vmatprep.subr.bf16.mxu1 %v3094_v9  ;;  %v323_v9 = vld [vmem:[#allocation5 + $0x838] sm:$0xff]  ;;  %v3116_v12 = vpack.c.bf16 %v314_v6, %v306_v4  ;;  %v386_v2 = vld [vmem:[#allocation5 + $0xa30] sm:$0xff]  ;;  %v3134_v3 = vpack.c.bf16 %v395_v60, %v387_v59  ;;  %v409_v6 = vld [vmem:[#allocation5 + $0xae8] sm:$0xff] }
 0x162   :  { %v394_v4 = vld [vmem:[#allocation5 + $0xa70] sm:$0xff]  ;;  %v475_v56 = vld [vmem:[#allocation5 + $0xcf8] sm:$0xff]  ;;  %v464_v60 = vld [vmem:[#allocation5 + $0xca0] sm:$0xff] }
 0x163   :  { %2841 = vmatpush1.bf16.msra.mxu0 %v2840_v15  ;;  %v328_v15 = vld [vmem:[#allocation5 + $0x860] sm:$0xff] }
 0x164   :  { %3097 = vmatpush1.bf16.msra.mxu1 %v3096_v16  ;;  %2843 = vmatprep.subr.bf16.mxu0 %v2842_v17  ;;  %v322_v16 = vld [vmem:[#allocation5 + $0x830] sm:$0xff]  ;;  %v3118_v17 = vpack.c.bf16 %v331_v10, %v323_v9  ;;  %v2864_v23 = vpack.c.bf16 %v328_v15, %v320_v14  ;;  %v3136_v10 = vpack.c.bf16 %v394_v4, %v386_v2  ;;  %v489_v2 = vld [vmem:[#allocation5 + $0xd68] sm:$0xff]  ;;  %v491_v4 = vld [vmem:[#allocation5 + $0xd78] sm:$0xff] }
 0x165   :  { %3099 = vmatprep.subr.bf16.mxu1 %v3098_v21  ;;  %v339_v21 = vld [vmem:[#allocation5 + $0x8b8] sm:$0xff]  ;;  %v3120_v24 = vpack.c.bf16 %v330_v18, %v322_v16  ;;  %v402_v14 = vld [vmem:[#allocation5 + $0xab0] sm:$0xff]  ;;  %v3138_v15 = vpack.c.bf16 %v411_v8, %v403_v7  ;;  %v425_v18 = vld [vmem:[#allocation5 + $0xb68] sm:$0xff] }
 0x166   :  { %v410_v16 = vld [vmem:[#allocation5 + $0xaf0] sm:$0xff]  ;;  %v480_v8 = vld [vmem:[#allocation5 + $0xd20] sm:$0xff] }
 0x167   :  { %2845 = vmatpush1.bf16.msra.mxu0 %v2844_v27  ;;  %v344_v27 = vld [vmem:[#allocation5 + $0x8e0] sm:$0xff] }
 0x168   :  { %3101 = vmatpush1.bf16.msra.mxu1 %v3100_v28  ;;  %2847 = vmatprep.subr.bf16.mxu0 %v2846_v29  ;;  %v338_v28 = vld [vmem:[#allocation5 + $0x8b0] sm:$0xff]  ;;  %v3122_v29 = vpack.c.bf16 %v347_v22, %v339_v21  ;;  %v2868_v36 = vpack.c.bf16 %v344_v27, %v336_v26  ;;  %v3140_v22 = vpack.c.bf16 %v410_v16, %v402_v14  ;;  %v505_v14 = vld [vmem:[#allocation5 + $0xde8] sm:$0xff]  ;;  %v507_v16 = vld [vmem:[#allocation5 + $0xdf8] sm:$0xff] }
 0x169   :  { %3103 = vmatprep.subr.bf16.mxu1 %v3102_v33  ;;  %v3349_v33 = vld [vmem:[#allocation2] sm:$0xff]  ;;  %v3124_v37 = vpack.c.bf16 %v346_v30, %v338_v28  ;;  %v418_v26 = vld [vmem:[#allocation5 + $0xb30] sm:$0xff]  ;;  %v3142_v27 = vpack.c.bf16 %v427_v20, %v419_v19  ;;  %v441_v30 = vld [vmem:[#allocation5 + $0xbe8] sm:$0xff] }
 0x16a   :  { %v426_v28 = vld [vmem:[#allocation5 + $0xb70] sm:$0xff]  ;;  %v496_v20 = vld [vmem:[#allocation5 + $0xda0] sm:$0xff] }
 0x16b   :  { %2849 = vmatpush1.bf16.msra.mxu0 %v2848_v39  ;;  %v352_v39 = vld [vmem:[#allocation5 + $0x920] sm:$0xff]  ;;  %v3144_v34 = vpack.c.bf16 %v426_v28, %v418_v26  ;;  %v521_v26 = vld [vmem:[#allocation5 + $0xe68] sm:$0xff]  ;;  %v523_v28 = vld [vmem:[#allocation5 + $0xe78] sm:$0xff] }
 0x16c   :  { %3105 = vmatpush1.bf16.msra.mxu1 %v3104_v40  ;;  %2851 = vmatprep.subr.bf16.mxu0 %v2850_v41  ;;  %v360_v40 = vld [vmem:[#allocation5 + $0x960] sm:$0xff]  ;;  %v354_v41 = vld [vmem:[#allocation5 + $0x930] sm:$0xff] }
 0x16d   :  { %3107 = vmatprep.subr.bf16.mxu1 %v3106_v45  ;;  %v377_v45 = vld [vmem:[#allocation5 + $0x9e8] sm:$0xff]  ;;  %v2872_v49 = vpack.c.bf16 %v360_v40, %v352_v39  ;;  %v3128_v50 = vpack.c.bf16 %v362_v43, %v354_v41  ;;  %v3146_v39 = vpack.c.bf16 %v443_v32, %v435_v31  ;;  %v442_v40 = vld [vmem:[#allocation5 + $0xbf0] sm:$0xff]  ;;  %v451_v43 = vld [vmem:[#allocation5 + $0xc38] sm:$0xff] }
 0x16e   :  { %v449_v41 = vld [vmem:[#allocation5 + $0xc28] sm:$0xff]  ;;  %v512_v32 = vld [vmem:[#allocation5 + $0xe20] sm:$0xff] }
 0x16f   :  { %2853 = vmatpush1.bf16.msra.mxu0 %v2852_v51  ;;  %v2874_v51 = vpack.c.bf16 %v377_v45, %v369_v44  ;;  %v459_v44 = vld [vmem:[#allocation5 + $0xc78] sm:$0xff] }
 0x170   :  { %3109 = vmatpush1.bf16.msra.mxu1 %v3108_v52  ;;  %2855 = vmatprep.subr.bf16.mxu0 %v2854_v53  ;;  %v368_v52 = vld [vmem:[#allocation5 + $0x9a0] sm:$0xff] }
 0x171   :  { %3111 = vmatprep.subr.bf16.mxu1 %v3110_v57  ;;  %v376_v53 = vld [vmem:[#allocation5 + $0x9e0] sm:$0xff]  ;;  %v385_v57 = vld [vmem:[#allocation5 + $0xa28] sm:$0xff] }
 0x172   :  { %v2876_v61 = vpack.c.bf16 %v376_v53, %v368_v52  ;;  %v458_v52 = vld [vmem:[#allocation5 + $0xc70] sm:$0xff]  ;;  %v465_v53 = vld [vmem:[#allocation5 + $0xca8] sm:$0xff] }
 0x173   :  { %2857 = vmatpush1.bf16.msra.mxu0 %v2856_v63  ;;  %v2878_v63 = vpack.c.bf16 %v393_v58, %v385_v57  ;;  %v2898_v59 = vpack.c.bf16 %v473_v54, %v465_v53 }
 0x174   :  { %3113 = vmatpush1.bf16.msra.mxu1 %v3112_v0  ;;  %2859 = vmatprep.subr.bf16.mxu0 %v2858_v1  ;;  %v384_v0 = vld [vmem:[#allocation5 + $0xa20] sm:$0xff] }
 0x175   :  { %3115 = vmatprep.subr.bf16.mxu1 %v3114_v5  ;;  %v392_v1 = vld [vmem:[#allocation5 + $0xa60] sm:$0xff]  ;;  %v401_v5 = vld [vmem:[#allocation5 + $0xaa8] sm:$0xff] }
 0x176   :  { %v2880_v9 = vpack.c.bf16 %v392_v1, %v384_v0  ;;  %v474_v0 = vld [vmem:[#allocation5 + $0xcf0] sm:$0xff]  ;;  %v481_v1 = vld [vmem:[#allocation5 + $0xd28] sm:$0xff] }
 0x177   :  { %2861 = vmatpush1.bf16.msra.mxu0 %v2860_v11  ;;  %v2882_v11 = vpack.c.bf16 %v409_v6, %v401_v5  ;;  %v2902_v7 = vpack.c.bf16 %v489_v2, %v481_v1 }
 0x178   :  { %3117 = vmatpush1.bf16.msra.mxu1 %v3116_v12  ;;  %2863 = vmatprep.subr.bf16.mxu0 %v2862_v13  ;;  %v400_v12 = vld [vmem:[#allocation5 + $0xaa0] sm:$0xff] }
 0x179   :  { %3119 = vmatprep.subr.bf16.mxu1 %v3118_v17  ;;  %v408_v13 = vld [vmem:[#allocation5 + $0xae0] sm:$0xff]  ;;  %v417_v17 = vld [vmem:[#allocation5 + $0xb28] sm:$0xff] }
 0x17a   :  { %1759 = vmatmul.mubr.f32.vlgmr.msra.gmra.mrb[2].mxu0 %v3349_v33  ;;  %v2884_v21 = vpack.c.bf16 %v408_v13, %v400_v12  ;;  %v490_v12 = vld [vmem:[#allocation5 + $0xd70] sm:$0xff]  ;;  %v497_v13 = vld [vmem:[#allocation5 + $0xda8] sm:$0xff] }
 0x17b   :  { %2865 = vmatpush1.bf16.msra.mxu0 %v2864_v23  ;;  %2043 = vmatmul.mubr.f32.vlgmr.msra.gmra.mrb[2].mxu1 %v3349_v33  ;;  %v2886_v23 = vpack.c.bf16 %v425_v18, %v417_v17  ;;  %v2906_v19 = vpack.c.bf16 %v505_v14, %v497_v13 }
 0x17c   :  { %3121 = vmatpush1.bf16.msra.mxu1 %v3120_v24  ;;  %2867 = vmatprep.subr.bf16.mxu0 %v2866_v25  ;;  %v416_v24 = vld [vmem:[#allocation5 + $0xb20] sm:$0xff] }
 0x17d   :  { %3123 = vmatprep.subr.bf16.mxu1 %v3122_v29  ;;  %1829 = vmatprep.mubr.f32.mxu0 %v3350_v46  ;;  %v424_v25 = vld [vmem:[#allocation5 + $0xb60] sm:$0xff]  ;;  %v433_v29 = vld [vmem:[#allocation5 + $0xba8] sm:$0xff] }
 0x17e   :  { %2113 = vmatprep.mubr.f32.mxu1 %v3350_v46  ;;  %v2888_v33 = vpack.c.bf16 %v424_v25, %v416_v24  ;;  %v2890_v35 = vpack.c.bf16 %v441_v30, %v433_v29  ;;  %v506_v24 = vld [vmem:[#allocation5 + $0xdf0] sm:$0xff]  ;;  %v513_v25 = vld [vmem:[#allocation5 + $0xe28] sm:$0xff] }
 0x17f   :  { %2869 = vmatpush1.bf16.msra.mxu0 %v2868_v36  ;;  %v432_v36 = vld [vmem:[#allocation5 + $0xba0] sm:$0xff]  ;;  %v2910_v31 = vpack.c.bf16 %v521_v26, %v513_v25 }
 0x180   :  { %3125 = vmatpush1.bf16.msra.mxu1 %v3124_v37  ;;  %2871 = vmatprep.subr.bf16.mxu0 %v2870_v38  ;;  %v440_v37 = vld [vmem:[#allocation5 + $0xbe0] sm:$0xff]  ;;  %v434_v38 = vld [vmem:[#allocation5 + $0xbb0] sm:$0xff] }
 0x181   :  { %3127 = vmatprep.subr.bf16.mxu1 %v3126_v42  ;;  %v457_v42 = vld [vmem:[#allocation5 + $0xc68] sm:$0xff]  ;;  %v2892_v45 = vpack.c.bf16 %v440_v37, %v432_v36  ;;  %v3148_v46 = vpack.c.bf16 %v442_v40, %v434_v38  ;;  %v522_v36 = vld [vmem:[#allocation5 + $0xe70] sm:$0xff]  ;;  %v539_v40 = vld [vmem:[#allocation5 + $0xef8] sm:$0xff] }
 0x182   :  { %v2894_v47 = vpack.c.bf16 %v457_v42, %v449_v41  ;;  %v529_v37 = vld [vmem:[#allocation5 + $0xea8] sm:$0xff] }
 0x183   :  { %2873 = vmatpush1.bf16.msra.mxu0 %v2872_v49  ;;  %v456_v49 = vld [vmem:[#allocation5 + $0xc60] sm:$0xff]  ;;  %v537_v38 = vld [vmem:[#allocation5 + $0xee8] sm:$0xff] }
 0x184   :  { %3129 = vmatpush1.bf16.msra.mxu1 %v3128_v50  ;;  %2875 = vmatprep.subr.bf16.mxu0 %v2874_v51  ;;  %v450_v50 = vld [vmem:[#allocation5 + $0xc30] sm:$0xff]  ;;  %v3150_v51 = vpack.c.bf16 %v459_v44, %v451_v43  ;;  %v2896_v57 = vpack.c.bf16 %v456_v49, %v448_v48  ;;  %v2914_v43 = vpack.c.bf16 %v537_v38, %v529_v37  ;;  %v528_v44 = vld [vmem:[#allocation5 + $0xea0] sm:$0xff]  ;;  %v545_v49 = vld [vmem:[#allocation5 + $0xf28] sm:$0xff] }
 0x185   :  { %3131 = vmatprep.subr.bf16.mxu1 %v3130_v55  ;;  %v467_v55 = vld [vmem:[#allocation5 + $0xcb8] sm:$0xff]  ;;  %v3152_v58 = vpack.c.bf16 %v458_v52, %v450_v50  ;;  %v538_v48 = vld [vmem:[#allocation5 + $0xef0] sm:$0xff]  ;;  %v553_v50 = vld [vmem:[#allocation5 + $0xf68] sm:$0xff] }
 0x186   :  { %v555_v52 = vld [vmem:[#allocation5 + $0xf78] sm:$0xff] }
 0x187   :  { %2877 = vmatpush1.bf16.msra.mxu0 %v2876_v61  ;;  %v472_v61 = vld [vmem:[#allocation5 + $0xce0] sm:$0xff]  ;;  %v619_v37 = vld [vmem:[#allocation5 + $0x1178] sm:$0xff] }
 0x188   :  { %3133 = vmatpush1.bf16.msra.mxu1 %v3132_v62  ;;  %2879 = vmatprep.subr.bf16.mxu0 %v2878_v63  ;;  %v466_v62 = vld [vmem:[#allocation5 + $0xcb0] sm:$0xff]  ;;  %v3154_v63 = vpack.c.bf16 %v475_v56, %v467_v55  ;;  %v2900_v5 = vpack.c.bf16 %v472_v61, %v464_v60  ;;  %v2918_v55 = vpack.c.bf16 %v553_v50, %v545_v49  ;;  %v544_v56 = vld [vmem:[#allocation5 + $0xf20] sm:$0xff]  ;;  %v561_v61 = vld [vmem:[#allocation5 + $0xfa8] sm:$0xff] }
 0x189   :  { %3135 = vmatprep.subr.bf16.mxu1 %v3134_v3  ;;  %v483_v3 = vld [vmem:[#allocation5 + $0xd38] sm:$0xff]  ;;  %v3156_v6 = vpack.c.bf16 %v474_v0, %v466_v62  ;;  %v554_v60 = vld [vmem:[#allocation5 + $0xf70] sm:$0xff]  ;;  %v569_v62 = vld [vmem:[#allocation5 + $0xfe8] sm:$0xff] }
 0x18a   :  { %v571_v0 = vld [vmem:[#allocation5 + $0xff8] sm:$0xff] }
 0x18b   :  { %2881 = vmatpush1.bf16.msra.mxu0 %v2880_v9  ;;  %v488_v9 = vld [vmem:[#allocation5 + $0xd60] sm:$0xff]  ;;  %v627_v49 = vld [vmem:[#allocation5 + $0x11b8] sm:$0xff] }
 0x18c   :  { %3137 = vmatpush1.bf16.msra.mxu1 %v3136_v10  ;;  %2883 = vmatprep.subr.bf16.mxu0 %v2882_v11  ;;  %v482_v10 = vld [vmem:[#allocation5 + $0xd30] sm:$0xff]  ;;  %v3158_v11 = vpack.c.bf16 %v491_v4, %v483_v3  ;;  %v2904_v17 = vpack.c.bf16 %v488_v9, %v480_v8  ;;  %v2922_v3 = vpack.c.bf16 %v569_v62, %v561_v61  ;;  %v560_v4 = vld [vmem:[#allocation5 + $0xfa0] sm:$0xff]  ;;  %v577_v9 = vld [vmem:[#allocation5 + $0x1028] sm:$0xff] }
 0x18d   :  { %3139 = vmatprep.subr.bf16.mxu1 %v3138_v15  ;;  %v499_v15 = vld [vmem:[#allocation5 + $0xdb8] sm:$0xff]  ;;  %v3160_v18 = vpack.c.bf16 %v490_v12, %v482_v10  ;;  %v570_v8 = vld [vmem:[#allocation5 + $0xff0] sm:$0xff]  ;;  %v585_v10 = vld [vmem:[#allocation5 + $0x1068] sm:$0xff] }
 0x18e   :  { %v587_v12 = vld [vmem:[#allocation5 + $0x1078] sm:$0xff] }
 0x18f   :  { %2885 = vmatpush1.bf16.msra.mxu0 %v2884_v21  ;;  %v504_v21 = vld [vmem:[#allocation5 + $0xde0] sm:$0xff]  ;;  %v635_v50 = vld [vmem:[#allocation5 + $0x11f8] sm:$0xff] }
 0x190   :  { %3141 = vmatpush1.bf16.msra.mxu1 %v3140_v22  ;;  %2887 = vmatprep.subr.bf16.mxu0 %v2886_v23  ;;  %v498_v22 = vld [vmem:[#allocation5 + $0xdb0] sm:$0xff]  ;;  %v3162_v23 = vpack.c.bf16 %v507_v16, %v499_v15  ;;  %v2908_v29 = vpack.c.bf16 %v504_v21, %v496_v20  ;;  %v2926_v15 = vpack.c.bf16 %v585_v10, %v577_v9  ;;  %v576_v16 = vld [vmem:[#allocation5 + $0x1020] sm:$0xff]  ;;  %v593_v21 = vld [vmem:[#allocation5 + $0x10a8] sm:$0xff] }
 0x191   :  { %3143 = vmatprep.subr.bf16.mxu1 %v3142_v27  ;;  %v515_v27 = vld [vmem:[#allocation5 + $0xe38] sm:$0xff]  ;;  %v3164_v30 = vpack.c.bf16 %v506_v24, %v498_v22  ;;  %v586_v20 = vld [vmem:[#allocation5 + $0x1070] sm:$0xff]  ;;  %v601_v22 = vld [vmem:[#allocation5 + $0x10e8] sm:$0xff] }
 0x192   :  { %v603_v24 = vld [vmem:[#allocation5 + $0x10f8] sm:$0xff] }
 0x193   :  { %2889 = vmatpush1.bf16.msra.mxu0 %v2888_v33  ;;  %v520_v33 = vld [vmem:[#allocation5 + $0xe60] sm:$0xff]  ;;  %v643_v61 = vld [vmem:[#allocation5 + $0x1238] sm:$0xff] }
 0x194   :  { %3145 = vmatpush1.bf16.msra.mxu1 %v3144_v34  ;;  %2891 = vmatprep.subr.bf16.mxu0 %v2890_v35  ;;  %v514_v34 = vld [vmem:[#allocation5 + $0xe30] sm:$0xff]  ;;  %v3166_v35 = vpack.c.bf16 %v523_v28, %v515_v27  ;;  %v2912_v41 = vpack.c.bf16 %v520_v33, %v512_v32  ;;  %v2930_v27 = vpack.c.bf16 %v601_v22, %v593_v21  ;;  %v592_v28 = vld [vmem:[#allocation5 + $0x10a0] sm:$0xff]  ;;  %v609_v33 = vld [vmem:[#allocation5 + $0x1128] sm:$0xff] }
 0x195   :  { %3147 = vmatprep.subr.bf16.mxu1 %v3146_v39  ;;  %v531_v39 = vld [vmem:[#allocation5 + $0xeb8] sm:$0xff]  ;;  %v3168_v42 = vpack.c.bf16 %v522_v36, %v514_v34  ;;  %v602_v32 = vld [vmem:[#allocation5 + $0x10f0] sm:$0xff]  ;;  %v617_v34 = vld [vmem:[#allocation5 + $0x1168] sm:$0xff] }
 0x196   :  { %v611_v36 = vld [vmem:[#allocation5 + $0x1138] sm:$0xff] }
 0x197   :  { %2893 = vmatpush1.bf16.msra.mxu0 %v2892_v45  ;;  %v536_v45 = vld [vmem:[#allocation5 + $0xee0] sm:$0xff]  ;;  %v651_v62 = vld [vmem:[#allocation5 + $0x1278] sm:$0xff] }
 0x198   :  { %3149 = vmatpush1.bf16.msra.mxu1 %v3148_v46  ;;  %2895 = vmatprep.subr.bf16.mxu0 %v2894_v47  ;;  %v530_v46 = vld [vmem:[#allocation5 + $0xeb0] sm:$0xff]  ;;  %v3170_v47 = vpack.c.bf16 %v539_v40, %v531_v39  ;;  %v2916_v53 = vpack.c.bf16 %v536_v45, %v528_v44  ;;  %v2934_v40 = vpack.c.bf16 %v617_v34, %v609_v33  ;;  %v659_v9 = vld [vmem:[#allocation5 + $0x12b8] sm:$0xff] }
 0x199   :  { %3151 = vmatprep.subr.bf16.mxu1 %v3150_v51  ;;  %v547_v51 = vld [vmem:[#allocation5 + $0xf38] sm:$0xff]  ;;  %v3172_v54 = vpack.c.bf16 %v538_v48, %v530_v46  ;;  %v3190_v44 = vpack.c.bf16 %v619_v37, %v611_v36  ;;  %v618_v45 = vld [vmem:[#allocation5 + $0x1170] sm:$0xff]  ;;  %v625_v46 = vld [vmem:[#allocation5 + $0x11a8] sm:$0xff] }
 0x19a   :  { %v3352_v48 = vld [vmem:[#allocation2 + $0x28] sm:$0xff]  ;;  %v667_v10 = vld [vmem:[#allocation5 + $0x12f8] sm:$0xff] }
 0x19b   :  { %2897 = vmatpush1.bf16.msra.mxu0 %v2896_v57  ;;  %v552_v57 = vld [vmem:[#allocation5 + $0xf60] sm:$0xff]  ;;  %v675_v21 = vld [vmem:[#allocation5 + $0x1338] sm:$0xff] }
 0x19c   :  { %3153 = vmatpush1.bf16.msra.mxu1 %v3152_v58  ;;  %2899 = vmatprep.subr.bf16.mxu0 %v2898_v59  ;;  %v546_v58 = vld [vmem:[#allocation5 + $0xf30] sm:$0xff]  ;;  %v3174_v59 = vpack.c.bf16 %v555_v52, %v547_v51  ;;  %v2920_v1 = vpack.c.bf16 %v552_v57, %v544_v56  ;;  %v3194_v57 = vpack.c.bf16 %v635_v50, %v627_v49  ;;  %v683_v22 = vld [vmem:[#allocation5 + $0x1378] sm:$0xff]  ;;  %v704_v50 = vld [vmem:[#allocation5 + $0x1420] sm:$0xff] }
 0x19d   :  { %3155 = vmatprep.subr.bf16.mxu1 %v3154_v63  ;;  %v563_v63 = vld [vmem:[#allocation5 + $0xfb8] sm:$0xff]  ;;  %v3176_v2 = vpack.c.bf16 %v554_v60, %v546_v58  ;;  %v626_v56 = vld [vmem:[#allocation5 + $0x11b0] sm:$0xff]  ;;  %v649_v60 = vld [vmem:[#allocation5 + $0x1268] sm:$0xff] }
 0x19e   :  { %v634_v58 = vld [vmem:[#allocation5 + $0x11f0] sm:$0xff]  ;;  %v691_v33 = vld [vmem:[#allocation5 + $0x13b8] sm:$0xff] }
 0x19f   :  { %2901 = vmatpush1.bf16.msra.mxu0 %v2900_v5  ;;  %v568_v5 = vld [vmem:[#allocation5 + $0xfe0] sm:$0xff]  ;;  %v699_v34 = vld [vmem:[#allocation5 + $0x13f8] sm:$0xff] }
 0x1a0   :  { %3157 = vmatpush1.bf16.msra.mxu1 %v3156_v6  ;;  %2903 = vmatprep.subr.bf16.mxu0 %v2902_v7  ;;  %v562_v6 = vld [vmem:[#allocation5 + $0xfb0] sm:$0xff]  ;;  %v3178_v7 = vpack.c.bf16 %v571_v0, %v563_v63  ;;  %v2924_v13 = vpack.c.bf16 %v568_v5, %v560_v4  ;;  %v3196_v0 = vpack.c.bf16 %v634_v58, %v626_v56  ;;  %v729_v56 = vld [vmem:[#allocation5 + $0x14e8] sm:$0xff]  ;;  %v731_v58 = vld [vmem:[#allocation5 + $0x14f8] sm:$0xff] }
 0x1a1   :  { %3159 = vmatprep.subr.bf16.mxu1 %v3158_v11  ;;  %v579_v11 = vld [vmem:[#allocation5 + $0x1038] sm:$0xff]  ;;  %v3180_v14 = vpack.c.bf16 %v570_v8, %v562_v6  ;;  %v642_v4 = vld [vmem:[#allocation5 + $0x1230] sm:$0xff]  ;;  %v3198_v5 = vpack.c.bf16 %v651_v62, %v643_v61  ;;  %v665_v8 = vld [vmem:[#allocation5 + $0x12e8] sm:$0xff] }
 0x1a2   :  { %v650_v6 = vld [vmem:[#allocation5 + $0x1270] sm:$0xff]  ;;  %v720_v62 = vld [vmem:[#allocation5 + $0x14a0] sm:$0xff] }
 0x1a3   :  { %2905 = vmatpush1.bf16.msra.mxu0 %v2904_v17  ;;  %v584_v17 = vld [vmem:[#allocation5 + $0x1060] sm:$0xff] }
 0x1a4   :  { %3161 = vmatpush1.bf16.msra.mxu1 %v3160_v18  ;;  %2907 = vmatprep.subr.bf16.mxu0 %v2906_v19  ;;  %v578_v18 = vld [vmem:[#allocation5 + $0x1030] sm:$0xff]  ;;  %v3182_v19 = vpack.c.bf16 %v587_v12, %v579_v11  ;;  %v2928_v25 = vpack.c.bf16 %v584_v17, %v576_v16  ;;  %v3200_v12 = vpack.c.bf16 %v650_v6, %v642_v4  ;;  %v745_v4 = vld [vmem:[#allocation5 + $0x1568] sm:$0xff]  ;;  %v747_v6 = vld [vmem:[#allocation5 + $0x1578] sm:$0xff] }
 0x1a5   :  { %3163 = vmatprep.subr.bf16.mxu1 %v3162_v23  ;;  %v595_v23 = vld [vmem:[#allocation5 + $0x10b8] sm:$0xff]  ;;  %v3184_v26 = vpack.c.bf16 %v586_v20, %v578_v18  ;;  %v658_v16 = vld [vmem:[#allocation5 + $0x12b0] sm:$0xff]  ;;  %v3202_v17 = vpack.c.bf16 %v667_v10, %v659_v9  ;;  %v681_v20 = vld [vmem:[#allocation5 + $0x1368] sm:$0xff] }
 0x1a6   :  { %v666_v18 = vld [vmem:[#allocation5 + $0x12f0] sm:$0xff]  ;;  %v736_v10 = vld [vmem:[#allocation5 + $0x1520] sm:$0xff] }
 0x1a7   :  { %2909 = vmatpush1.bf16.msra.mxu0 %v2908_v29  ;;  %v600_v29 = vld [vmem:[#allocation5 + $0x10e0] sm:$0xff] }
 0x1a8   :  { %3165 = vmatpush1.bf16.msra.mxu1 %v3164_v30  ;;  %2911 = vmatprep.subr.bf16.mxu0 %v2910_v31  ;;  %v594_v30 = vld [vmem:[#allocation5 + $0x10b0] sm:$0xff]  ;;  %v3186_v31 = vpack.c.bf16 %v603_v24, %v595_v23  ;;  %v2932_v38 = vpack.c.bf16 %v600_v29, %v592_v28  ;;  %v3204_v24 = vpack.c.bf16 %v666_v18, %v658_v16  ;;  %v761_v16 = vld [vmem:[#allocation5 + $0x15e8] sm:$0xff]  ;;  %v763_v18 = vld [vmem:[#allocation5 + $0x15f8] sm:$0xff] }
 0x1a9   :  { %3167 = vmatprep.subr.bf16.mxu1 %v3166_v35  ;;  %v3351_v35 = vld [vmem:[#allocation2 + $0x10] sm:$0xff]  ;;  %v3188_v39 = vpack.c.bf16 %v602_v32, %v594_v30  ;;  %v3206_v29 = vpack.c.bf16 %v683_v22, %v675_v21  ;;  %v697_v32 = vld [vmem:[#allocation5 + $0x13e8] sm:$0xff]  ;;  %v752_v22 = vld [vmem:[#allocation5 + $0x15a0] sm:$0xff] }
 0x1aa   :  { %v674_v28 = vld [vmem:[#allocation5 + $0x1330] sm:$0xff] }
 0x1ab   :  { %2913 = vmatpush1.bf16.msra.mxu0 %v2912_v41  ;;  %v608_v41 = vld [vmem:[#allocation5 + $0x1120] sm:$0xff]  ;;  %v682_v30 = vld [vmem:[#allocation5 + $0x1370] sm:$0xff] }
 0x1ac   :  { %3169 = vmatpush1.bf16.msra.mxu1 %v3168_v42  ;;  %2915 = vmatprep.subr.bf16.mxu0 %v2914_v43  ;;  %v616_v42 = vld [vmem:[#allocation5 + $0x1160] sm:$0xff]  ;;  %v610_v43 = vld [vmem:[#allocation5 + $0x1130] sm:$0xff]  ;;  %v3208_v36 = vpack.c.bf16 %v682_v30, %v674_v28  ;;  %v777_v28 = vld [vmem:[#allocation5 + $0x1668] sm:$0xff] }
 0x1ad   :  { %3171 = vmatprep.subr.bf16.mxu1 %v3170_v47  ;;  %v633_v47 = vld [vmem:[#allocation5 + $0x11e8] sm:$0xff]  ;;  %v2936_v51 = vpack.c.bf16 %v616_v42, %v608_v41  ;;  %v3192_v52 = vpack.c.bf16 %v618_v45, %v610_v43  ;;  %v3210_v41 = vpack.c.bf16 %v699_v34, %v691_v33  ;;  %v698_v42 = vld [vmem:[#allocation5 + $0x13f0] sm:$0xff]  ;;  %v707_v45 = vld [vmem:[#allocation5 + $0x1438] sm:$0xff] }
 0x1ae   :  { %v705_v43 = vld [vmem:[#allocation5 + $0x1428] sm:$0xff]  ;;  %v779_v30 = vld [vmem:[#allocation5 + $0x1678] sm:$0xff]  ;;  %v768_v34 = vld [vmem:[#allocation5 + $0x1620] sm:$0xff] }
 0x1af   :  { %2917 = vmatpush1.bf16.msra.mxu0 %v2916_v53  ;;  %v2938_v53 = vpack.c.bf16 %v633_v47, %v625_v46  ;;  %v715_v46 = vld [vmem:[#allocation5 + $0x1478] sm:$0xff] }
 0x1b0   :  { %3173 = vmatpush1.bf16.msra.mxu1 %v3172_v54  ;;  %2919 = vmatprep.subr.bf16.mxu0 %v2918_v55  ;;  %v624_v54 = vld [vmem:[#allocation5 + $0x11a0] sm:$0xff] }
 0x1b1   :  { %3175 = vmatprep.subr.bf16.mxu1 %v3174_v59  ;;  %v632_v55 = vld [vmem:[#allocation5 + $0x11e0] sm:$0xff]  ;;  %v641_v59 = vld [vmem:[#allocation5 + $0x1228] sm:$0xff] }
 0x1b2   :  { %v2940_v63 = vpack.c.bf16 %v632_v55, %v624_v54  ;;  %v714_v54 = vld [vmem:[#allocation5 + $0x1470] sm:$0xff]  ;;  %v721_v55 = vld [vmem:[#allocation5 + $0x14a8] sm:$0xff] }
 0x1b3   :  { %2921 = vmatpush1.bf16.msra.mxu0 %v2920_v1  ;;  %v2942_v1 = vpack.c.bf16 %v649_v60, %v641_v59  ;;  %v2962_v61 = vpack.c.bf16 %v729_v56, %v721_v55 }
 0x1b4   :  { %3177 = vmatpush1.bf16.msra.mxu1 %v3176_v2  ;;  %2923 = vmatprep.subr.bf16.mxu0 %v2922_v3  ;;  %v640_v2 = vld [vmem:[#allocation5 + $0x1220] sm:$0xff] }
 0x1b5   :  { %3179 = vmatprep.subr.bf16.mxu1 %v3178_v7  ;;  %v648_v3 = vld [vmem:[#allocation5 + $0x1260] sm:$0xff]  ;;  %v657_v7 = vld [vmem:[#allocation5 + $0x12a8] sm:$0xff] }
 0x1b6   :  { %v2944_v11 = vpack.c.bf16 %v648_v3, %v640_v2  ;;  %v730_v2 = vld [vmem:[#allocation5 + $0x14f0] sm:$0xff]  ;;  %v737_v3 = vld [vmem:[#allocation5 + $0x1528] sm:$0xff] }
 0x1b7   :  { %2925 = vmatpush1.bf16.msra.mxu0 %v2924_v13  ;;  %v2946_v13 = vpack.c.bf16 %v665_v8, %v657_v7  ;;  %v2966_v9 = vpack.c.bf16 %v745_v4, %v737_v3 }
 0x1b8   :  { %3181 = vmatpush1.bf16.msra.mxu1 %v3180_v14  ;;  %2927 = vmatprep.subr.bf16.mxu0 %v2926_v15  ;;  %v656_v14 = vld [vmem:[#allocation5 + $0x12a0] sm:$0xff] }
 0x1b9   :  { %3183 = vmatprep.subr.bf16.mxu1 %v3182_v19  ;;  %v664_v15 = vld [vmem:[#allocation5 + $0x12e0] sm:$0xff]  ;;  %v673_v19 = vld [vmem:[#allocation5 + $0x1328] sm:$0xff] }
 0x1ba   :  { %1830 = vmatmul.mubr.f32.vlgmr.msra.gmra.mrb[2].mxu0 %v3351_v35  ;;  %v2948_v23 = vpack.c.bf16 %v664_v15, %v656_v14  ;;  %v746_v14 = vld [vmem:[#allocation5 + $0x1570] sm:$0xff]  ;;  %v753_v15 = vld [vmem:[#allocation5 + $0x15a8] sm:$0xff] }
 0x1bb   :  { %2929 = vmatpush1.bf16.msra.mxu0 %v2928_v25  ;;  %2114 = vmatmul.mubr.f32.vlgmr.msra.gmra.mrb[2].mxu1 %v3351_v35  ;;  %v2950_v25 = vpack.c.bf16 %v681_v20, %v673_v19  ;;  %v2970_v21 = vpack.c.bf16 %v761_v16, %v753_v15 }
 0x1bc   :  { %3185 = vmatpush1.bf16.msra.mxu1 %v3184_v26  ;;  %2931 = vmatprep.subr.bf16.mxu0 %v2930_v27  ;;  %v672_v26 = vld [vmem:[#allocation5 + $0x1320] sm:$0xff] }
 0x1bd   :  { %3187 = vmatprep.subr.bf16.mxu1 %v3186_v31  ;;  %1900 = vmatprep.mubr.f32.mxu0 %v3352_v48  ;;  %v680_v27 = vld [vmem:[#allocation5 + $0x1360] sm:$0xff]  ;;  %v689_v31 = vld [vmem:[#allocation5 + $0x13a8] sm:$0xff] }
 0x1be   :  { %2184 = vmatprep.mubr.f32.mxu1 %v3352_v48  ;;  %v2952_v35 = vpack.c.bf16 %v680_v27, %v672_v26  ;;  %v2954_v37 = vpack.c.bf16 %v697_v32, %v689_v31  ;;  %v762_v26 = vld [vmem:[#allocation5 + $0x15f0] sm:$0xff]  ;;  %v769_v27 = vld [vmem:[#allocation5 + $0x1628] sm:$0xff] }
 0x1bf   :  { %2933 = vmatpush1.bf16.msra.mxu0 %v2932_v38  ;;  %v688_v38 = vld [vmem:[#allocation5 + $0x13a0] sm:$0xff]  ;;  %v2974_v33 = vpack.c.bf16 %v777_v28, %v769_v27 }
 0x1c0   :  { %3189 = vmatpush1.bf16.msra.mxu1 %v3188_v39  ;;  %2935 = vmatprep.subr.bf16.mxu0 %v2934_v40  ;;  %v696_v39 = vld [vmem:[#allocation5 + $0x13e0] sm:$0xff]  ;;  %v690_v40 = vld [vmem:[#allocation5 + $0x13b0] sm:$0xff] }
 0x1c1   :  { %3191 = vmatprep.subr.bf16.mxu1 %v3190_v44  ;;  %v713_v44 = vld [vmem:[#allocation5 + $0x1468] sm:$0xff]  ;;  %v2956_v47 = vpack.c.bf16 %v696_v39, %v688_v38  ;;  %v3212_v48 = vpack.c.bf16 %v698_v42, %v690_v40  ;;  %v778_v38 = vld [vmem:[#allocation5 + $0x1670] sm:$0xff]  ;;  %v795_v42 = vld [vmem:[#allocation5 + $0x16f8] sm:$0xff] }
 0x1c2   :  { %v2958_v49 = vpack.c.bf16 %v713_v44, %v705_v43  ;;  %v785_v39 = vld [vmem:[#allocation5 + $0x16a8] sm:$0xff] }
 0x1c3   :  { %2937 = vmatpush1.bf16.msra.mxu0 %v2936_v51  ;;  %v712_v51 = vld [vmem:[#allocation5 + $0x1460] sm:$0xff]  ;;  %v793_v40 = vld [vmem:[#allocation5 + $0x16e8] sm:$0xff] }
 0x1c4   :  { %3193 = vmatpush1.bf16.msra.mxu1 %v3192_v52  ;;  %2939 = vmatprep.subr.bf16.mxu0 %v2938_v53  ;;  %v706_v52 = vld [vmem:[#allocation5 + $0x1430] sm:$0xff]  ;;  %v3214_v53 = vpack.c.bf16 %v715_v46, %v707_v45  ;;  %v2960_v59 = vpack.c.bf16 %v712_v51, %v704_v50  ;;  %v2978_v45 = vpack.c.bf16 %v793_v40, %v785_v39  ;;  %v784_v46 = vld [vmem:[#allocation5 + $0x16a0] sm:$0xff]  ;;  %v801_v51 = vld [vmem:[#allocation5 + $0x1728] sm:$0xff] }
 0x1c5   :  { %3195 = vmatprep.subr.bf16.mxu1 %v3194_v57  ;;  %v723_v57 = vld [vmem:[#allocation5 + $0x14b8] sm:$0xff]  ;;  %v3216_v60 = vpack.c.bf16 %v714_v54, %v706_v52  ;;  %v794_v50 = vld [vmem:[#allocation5 + $0x16f0] sm:$0xff]  ;;  %v809_v52 = vld [vmem:[#allocation5 + $0x1768] sm:$0xff] }
 0x1c6   :  { %v811_v54 = vld [vmem:[#allocation5 + $0x1778] sm:$0xff] }
 0x1c7   :  { %2941 = vmatpush1.bf16.msra.mxu0 %v2940_v63  ;;  %v728_v63 = vld [vmem:[#allocation5 + $0x14e0] sm:$0xff]  ;;  %v875_v39 = vld [vmem:[#allocation5 + $0x1978] sm:$0xff] }
 0x1c8   :  { %3197 = vmatpush1.bf16.msra.mxu1 %v3196_v0  ;;  %2943 = vmatprep.subr.bf16.mxu0 %v2942_v1  ;;  %v722_v0 = vld [vmem:[#allocation5 + $0x14b0] sm:$0xff]  ;;  %v3218_v1 = vpack.c.bf16 %v731_v58, %v723_v57  ;;  %v2964_v7 = vpack.c.bf16 %v728_v63, %v720_v62  ;;  %v2982_v57 = vpack.c.bf16 %v809_v52, %v801_v51  ;;  %v800_v58 = vld [vmem:[#allocation5 + $0x1720] sm:$0xff]  ;;  %v817_v63 = vld [vmem:[#allocation5 + $0x17a8] sm:$0xff] }
 0x1c9   :  { %3199 = vmatprep.subr.bf16.mxu1 %v3198_v5  ;;  %v739_v5 = vld [vmem:[#allocation5 + $0x1538] sm:$0xff]  ;;  %v3220_v8 = vpack.c.bf16 %v730_v2, %v722_v0  ;;  %v810_v62 = vld [vmem:[#allocation5 + $0x1770] sm:$0xff]  ;;  %v825_v0 = vld [vmem:[#allocation5 + $0x17e8] sm:$0xff] }
 0x1ca   :  { %v827_v2 = vld [vmem:[#allocation5 + $0x17f8] sm:$0xff] }
 0x1cb   :  { %2945 = vmatpush1.bf16.msra.mxu0 %v2944_v11  ;;  %v744_v11 = vld [vmem:[#allocation5 + $0x1560] sm:$0xff]  ;;  %v883_v51 = vld [vmem:[#allocation5 + $0x19b8] sm:$0xff] }
 0x1cc   :  { %3201 = vmatpush1.bf16.msra.mxu1 %v3200_v12  ;;  %2947 = vmatprep.subr.bf16.mxu0 %v2946_v13  ;;  %v738_v12 = vld [vmem:[#allocation5 + $0x1530] sm:$0xff]  ;;  %v3222_v13 = vpack.c.bf16 %v747_v6, %v739_v5  ;;  %v2968_v19 = vpack.c.bf16 %v744_v11, %v736_v10  ;;  %v2986_v5 = vpack.c.bf16 %v825_v0, %v817_v63  ;;  %v816_v6 = vld [vmem:[#allocation5 + $0x17a0] sm:$0xff]  ;;  %v833_v11 = vld [vmem:[#allocation5 + $0x1828] sm:$0xff] }
 0x1cd   :  { %3203 = vmatprep.subr.bf16.mxu1 %v3202_v17  ;;  %v755_v17 = vld [vmem:[#allocation5 + $0x15b8] sm:$0xff]  ;;  %v3224_v20 = vpack.c.bf16 %v746_v14, %v738_v12  ;;  %v826_v10 = vld [vmem:[#allocation5 + $0x17f0] sm:$0xff]  ;;  %v841_v12 = vld [vmem:[#allocation5 + $0x1868] sm:$0xff] }
 0x1ce   :  { %v843_v14 = vld [vmem:[#allocation5 + $0x1878] sm:$0xff]  ;;  %v905_v63 = vld [vmem:[#allocation5 + $0x1a68] sm:$0xff] }
 0x1cf   :  { %2949 = vmatpush1.bf16.msra.mxu0 %v2948_v23  ;;  %v760_v23 = vld [vmem:[#allocation5 + $0x15e0] sm:$0xff]  ;;  %v891_v52 = vld [vmem:[#allocation5 + $0x19f8] sm:$0xff] }
 0x1d0   :  { %3205 = vmatpush1.bf16.msra.mxu1 %v3204_v24  ;;  %2951 = vmatprep.subr.bf16.mxu0 %v2950_v25  ;;  %v754_v24 = vld [vmem:[#allocation5 + $0x15b0] sm:$0xff]  ;;  %v3226_v25 = vpack.c.bf16 %v763_v18, %v755_v17  ;;  %v2972_v31 = vpack.c.bf16 %v760_v23, %v752_v22  ;;  %v2990_v17 = vpack.c.bf16 %v841_v12, %v833_v11  ;;  %v832_v18 = vld [vmem:[#allocation5 + $0x1820] sm:$0xff]  ;;  %v849_v23 = vld [vmem:[#allocation5 + $0x18a8] sm:$0xff] }
 0x1d1   :  { %3207 = vmatprep.subr.bf16.mxu1 %v3206_v29  ;;  %v771_v29 = vld [vmem:[#allocation5 + $0x1638] sm:$0xff]  ;;  %v3228_v32 = vpack.c.bf16 %v762_v26, %v754_v24  ;;  %v842_v22 = vld [vmem:[#allocation5 + $0x1870] sm:$0xff]  ;;  %v857_v24 = vld [vmem:[#allocation5 + $0x18e8] sm:$0xff] }
 0x1d2   :  { %v859_v26 = vld [vmem:[#allocation5 + $0x18f8] sm:$0xff]  ;;  %v913_v11 = vld [vmem:[#allocation5 + $0x1aa8] sm:$0xff] }
 0x1d3   :  { %2953 = vmatpush1.bf16.msra.mxu0 %v2952_v35  ;;  %v776_v35 = vld [vmem:[#allocation5 + $0x1660] sm:$0xff]  ;;  %v899_v0 = vld [vmem:[#allocation5 + $0x1a38] sm:$0xff]  ;;  %v921_v12 = vld [vmem:[#allocation5 + $0x1ae8] sm:$0xff] }
 0x1d4   :  { %3209 = vmatpush1.bf16.msra.mxu1 %v3208_v36  ;;  %2955 = vmatprep.subr.bf16.mxu0 %v2954_v37  ;;  %v770_v36 = vld [vmem:[#allocation5 + $0x1630] sm:$0xff]  ;;  %v3230_v37 = vpack.c.bf16 %v779_v30, %v771_v29  ;;  %v2976_v43 = vpack.c.bf16 %v776_v35, %v768_v34  ;;  %v2994_v29 = vpack.c.bf16 %v857_v24, %v849_v23  ;;  %v848_v30 = vld [vmem:[#allocation5 + $0x18a0] sm:$0xff]  ;;  %v865_v35 = vld [vmem:[#allocation5 + $0x1928] sm:$0xff] }
 0x1d5   :  { %3211 = vmatprep.subr.bf16.mxu1 %v3210_v41  ;;  %v787_v41 = vld [vmem:[#allocation5 + $0x16b8] sm:$0xff]  ;;  %v3232_v44 = vpack.c.bf16 %v778_v38, %v770_v36  ;;  %v858_v34 = vld [vmem:[#allocation5 + $0x18f0] sm:$0xff]  ;;  %v873_v36 = vld [vmem:[#allocation5 + $0x1968] sm:$0xff] }
 0x1d6   :  { %v867_v38 = vld [vmem:[#allocation5 + $0x1938] sm:$0xff]  ;;  %v912_v23 = vld [vmem:[#allocation5 + $0x1aa0] sm:$0xff] }
 0x1d7   :  { %2957 = vmatpush1.bf16.msra.mxu0 %v2956_v47  ;;  %v792_v47 = vld [vmem:[#allocation5 + $0x16e0] sm:$0xff] }
 0x1d8   :  { %3213 = vmatpush1.bf16.msra.mxu1 %v3212_v48  ;;  %2959 = vmatprep.subr.bf16.mxu0 %v2958_v49  ;;  %v786_v48 = vld [vmem:[#allocation5 + $0x16b0] sm:$0xff]  ;;  %v3234_v49 = vpack.c.bf16 %v795_v42, %v787_v41  ;;  %v2980_v55 = vpack.c.bf16 %v792_v47, %v784_v46  ;;  %v2998_v42 = vpack.c.bf16 %v873_v36, %v865_v35  ;;  %v920_v24 = vld [vmem:[#allocation5 + $0x1ae0] sm:$0xff] }
 0x1d9   :  { %3215 = vmatprep.subr.bf16.mxu1 %v3214_v53  ;;  %v803_v53 = vld [vmem:[#allocation5 + $0x1738] sm:$0xff]  ;;  %v3236_v56 = vpack.c.bf16 %v794_v50, %v786_v48  ;;  %v3254_v46 = vpack.c.bf16 %v875_v39, %v867_v38  ;;  %v874_v47 = vld [vmem:[#allocation5 + $0x1970] sm:$0xff]  ;;  %v881_v48 = vld [vmem:[#allocation5 + $0x19a8] sm:$0xff]  ;;  %v3012_v35 = vpack.c.bf16 %v920_v24, %v912_v23 }
 0x1da   :  { %v3354_v50 = vld [vmem:[#allocation2 + $0x38] sm:$0xff]  ;;  %v928_v39 = vld [vmem:[#allocation5 + $0x1b20] sm:$0xff]  ;;  %v978_v23 = vld [vmem:[#allocation5 + $0x1cb0] sm:$0xff] }
 0x1db   :  { %2961 = vmatpush1.bf16.msra.mxu0 %v2960_v59  ;;  %v808_v59 = vld [vmem:[#allocation5 + $0x1760] sm:$0xff] }
 0x1dc   :  { %3217 = vmatpush1.bf16.msra.mxu1 %v3216_v60  ;;  %2963 = vmatprep.subr.bf16.mxu0 %v2962_v61  ;;  %v802_v60 = vld [vmem:[#allocation5 + $0x1730] sm:$0xff]  ;;  %v3238_v61 = vpack.c.bf16 %v811_v54, %v803_v53  ;;  %v2984_v3 = vpack.c.bf16 %v808_v59, %v800_v58  ;;  %v1086_v53 = vlaneseq  ;;  %v888_v58 = vld [vmem:[#allocation5 + $0x19e0] sm:$0xff] }
 0x1dd   :  { %3219 = vmatprep.subr.bf16.mxu1 %v3218_v1  ;;  %v819_v1 = vld [vmem:[#allocation5 + $0x17b8] sm:$0xff]  ;;  %v3240_v4 = vpack.c.bf16 %v810_v62, %v802_v60  ;;  %v882_v59 = vld [vmem:[#allocation5 + $0x19b0] sm:$0xff]  ;;  %v3258_v60 = vpack.c.bf16 %v891_v52, %v883_v51  ;;  %v897_v62 = vld [vmem:[#allocation5 + $0x1a28] sm:$0xff] }
 0x1de   :  { %v955_v51 = vld [vmem:[#allocation5 + $0x1bf8] sm:$0xff] }
 0x1df   :  { %2965 = vmatpush1.bf16.msra.mxu0 %v2964_v7  ;;  %v824_v7 = vld [vmem:[#allocation5 + $0x17e0] sm:$0xff] }
 0x1e0   :  { %3221 = vmatpush1.bf16.msra.mxu1 %v3220_v8  ;;  %2967 = vmatprep.subr.bf16.mxu0 %v2966_v9  ;;  %v818_v8 = vld [vmem:[#allocation5 + $0x17b0] sm:$0xff]  ;;  %v3242_v9 = vpack.c.bf16 %v827_v2, %v819_v1  ;;  %v2988_v15 = vpack.c.bf16 %v824_v7, %v816_v6  ;;  %v907_v1 = vld [vmem:[#allocation5 + $0x1a78] sm:$0xff]  ;;  %v3512_v2 = vshrl.u32 %v1086_v53, 7  ;;  %v896_v6 = vld [vmem:[#allocation5 + $0x1a20] sm:$0xff] }
 0x1e1   :  { %3223 = vmatprep.subr.bf16.mxu1 %v3222_v13  ;;  %v835_v13 = vld [vmem:[#allocation5 + $0x1838] sm:$0xff]  ;;  %v3244_v16 = vpack.c.bf16 %v826_v10, %v818_v8  ;;  %v904_v7 = vld [vmem:[#allocation5 + $0x1a60] sm:$0xff]  ;;  %v898_v8 = vld [vmem:[#allocation5 + $0x1a30] sm:$0xff] }
 0x1e2   :  { %v906_v10 = vld [vmem:[#allocation5 + $0x1a70] sm:$0xff] }
 0x1e3   :  { %2969 = vmatpush1.bf16.msra.mxu0 %v2968_v19  ;;  %v840_v19 = vld [vmem:[#allocation5 + $0x1860] sm:$0xff] }
 0x1e4   :  { %3225 = vmatpush1.bf16.msra.mxu1 %v3224_v20  ;;  %2971 = vmatprep.subr.bf16.mxu0 %v2970_v21  ;;  %v834_v20 = vld [vmem:[#allocation5 + $0x1830] sm:$0xff]  ;;  %v3246_v21 = vpack.c.bf16 %v843_v14, %v835_v13  ;;  %v2992_v27 = vpack.c.bf16 %v840_v19, %v832_v18  ;;  %v1088_v13 = vsub.s32 0, %v3512_v2  ;;  %v915_v14 = vld [vmem:[#allocation5 + $0x1ab8] sm:$0xff]  ;;  %v1096_v18 = vsub.s32 2, %v3512_v2 }
 0x1e5   :  { %3227 = vmatprep.subr.bf16.mxu1 %v3226_v25  ;;  %v851_v25 = vld [vmem:[#allocation5 + $0x18b8] sm:$0xff]  ;;  %v3248_v28 = vpack.c.bf16 %v842_v22, %v834_v20  ;;  %v1092_v19 = vsub.s32 1, %v3512_v2  ;;  %v3264_v20 = vpack.c.bf16 %v906_v10, %v898_v8  ;;  %v3010_v22 = vpack.c.bf16 %v921_v12, %v913_v11  ;;  %v960_v8 = vld [vmem:[#allocation5 + $0x1c20] sm:$0xff]  ;;  %v962_v10 = vld [vmem:[#allocation5 + $0x1c30] sm:$0xff] }
 0x1e6   :  { %v970_v12 = vld [vmem:[#allocation5 + $0x1c70] sm:$0xff] }
 0x1e7   :  { %2973 = vmatpush1.bf16.msra.mxu0 %v2972_v31  ;;  %v856_v31 = vld [vmem:[#allocation5 + $0x18e0] sm:$0xff] }
 0x1e8   :  { %3229 = vmatpush1.bf16.msra.mxu1 %v3228_v32  ;;  %2975 = vmatprep.subr.bf16.mxu0 %v2974_v33  ;;  %v850_v32 = vld [vmem:[#allocation5 + $0x18b0] sm:$0xff]  ;;  %v3250_v33 = vpack.c.bf16 %v859_v26, %v851_v25  ;;  %v2996_v40 = vpack.c.bf16 %v856_v31, %v848_v30  ;;  %v931_v31 = vld [vmem:[#allocation5 + $0x1b38] sm:$0xff] }
 0x1e9   :  { %3231 = vmatprep.subr.bf16.mxu1 %v3230_v37  ;;  %v3353_v37 = vld [vmem:[#allocation2 + $0x20] sm:$0xff]  ;;  %v3252_v41 = vpack.c.bf16 %v858_v34, %v850_v32  ;;  %v914_v25 = vld [vmem:[#allocation5 + $0x1ab0] sm:$0xff]  ;;  %v939_v32 = vld [vmem:[#allocation5 + $0x1b78] sm:$0xff] }
 0x1eb   :  { %2977 = vmatpush1.bf16.msra.mxu0 %v2976_v43  ;;  %v864_v43 = vld [vmem:[#allocation5 + $0x1920] sm:$0xff] }
 0x1ec   :  { %3233 = vmatpush1.bf16.msra.mxu1 %v3232_v44  ;;  %2979 = vmatprep.subr.bf16.mxu0 %v2978_v45  ;;  %v872_v44 = vld [vmem:[#allocation5 + $0x1960] sm:$0xff]  ;;  %v866_v45 = vld [vmem:[#allocation5 + $0x1930] sm:$0xff] }
 0x1ed   :  { %3235 = vmatprep.subr.bf16.mxu1 %v3234_v49  ;;  %v889_v49 = vld [vmem:[#allocation5 + $0x19e8] sm:$0xff]  ;;  %v3000_v54 = vpack.c.bf16 %v872_v44, %v864_v43  ;;  %v3270_v43 = vpack.c.bf16 %v939_v32, %v931_v31  ;;  %v938_v44 = vld [vmem:[#allocation5 + $0x1b70] sm:$0xff] }
 0x1ef   :  { %2981 = vmatpush1.bf16.msra.mxu0 %v2980_v55  ;;  %v3256_v55 = vpack.c.bf16 %v874_v47, %v866_v45  ;;  %v945_v45 = vld [vmem:[#allocation5 + $0x1ba8] sm:$0xff] }
 0x1f0   :  { %3237 = vmatpush1.bf16.msra.mxu1 %v3236_v56  ;;  %2983 = vmatprep.subr.bf16.mxu0 %v2982_v57  ;;  %v3002_v56 = vpack.c.bf16 %v889_v49, %v881_v48  ;;  %v880_v57 = vld [vmem:[#allocation5 + $0x19a0] sm:$0xff] }
 0x1f1   :  { %3239 = vmatprep.subr.bf16.mxu1 %v3238_v61  ;;  %v890_v61 = vld [vmem:[#allocation5 + $0x19f0] sm:$0xff] }
 0x1f3   :  { %2985 = vmatpush1.bf16.msra.mxu0 %v2984_v3  ;;  %v3004_v3 = vpack.c.bf16 %v888_v58, %v880_v57 }
 0x1f4   :  { %3241 = vmatpush1.bf16.msra.mxu1 %v3240_v4  ;;  %2987 = vmatprep.subr.bf16.mxu0 %v2986_v5  ;;  %v3260_v4 = vpack.c.bf16 %v890_v61, %v882_v59  ;;  %v3006_v5 = vpack.c.bf16 %v905_v63, %v897_v62  ;;  %v944_v59 = vld [vmem:[#allocation5 + $0x1ba0] sm:$0xff]  ;;  %v946_v61 = vld [vmem:[#allocation5 + $0x1bb0] sm:$0xff] }
 0x1f5   :  { %3243 = vmatprep.subr.bf16.mxu1 %v3242_v9  ;;  %v3262_v9 = vpack.c.bf16 %v907_v1, %v899_v0  ;;  %v954_v63 = vld [vmem:[#allocation5 + $0x1bf0] sm:$0xff]  ;;  %v961_v0 = vld [vmem:[#allocation5 + $0x1c28] sm:$0xff] }
 0x1f6   :  { %v969_v1 = vld [vmem:[#allocation5 + $0x1c68] sm:$0xff] }
 0x1f7   :  { %2989 = vmatpush1.bf16.msra.mxu0 %v2988_v15  ;;  %v923_v15 = vld [vmem:[#allocation5 + $0x1af8] sm:$0xff] }
 0x1f8   :  { %3245 = vmatpush1.bf16.msra.mxu1 %v3244_v16  ;;  %2991 = vmatprep.subr.bf16.mxu0 %v2990_v17  ;;  %v3008_v16 = vpack.c.bf16 %v904_v7, %v896_v6  ;;  %v3515_v17 = vld [vmem:[#allocation7] sm:$0xff]  ;;  %v3266_v26 = vpack.c.bf16 %v923_v15, %v915_v14  ;;  %v3276_v6 = vpack.c.bf16 %v954_v63, %v946_v61  ;;  %v985_v14 = vld [vmem:[#allocation5 + $0x1ce8] sm:$0xff]  ;;  %v979_v15 = vld [vmem:[#allocation5 + $0x1cb8] sm:$0xff] }
 0x1f9   :  { %3247 = vmatprep.subr.bf16.mxu1 %v3246_v21  ;;  %v1100_v21 = vsub.s32 3, %v3512_v2  ;;  %v1089_v30 = vrot.slane %v3515_v17, %v1088_v13  ;;  %v1093_v34 = vrot.slane %v3515_v17, %v1092_v19  ;;  %v3022_v7 = vpack.c.bf16 %v969_v1, %v961_v0  ;;  %v977_v13 = vld [vmem:[#allocation5 + $0x1ca8] sm:$0xff]  ;;  %v1034_v61 = vld [vmem:[#allocation5 + $0x1e70] sm:$0xff]  ;;  %v1043_v0 = vld [vmem:[#allocation5 + $0x1eb8] sm:$0xff] }
 0x1fa   :  { %1901 = vmatmul.mubr.f32.vlgmr.msra.gmra.mrb[2].mxu0 %v3353_v37  ;;  %v3280_v19 = vpack.c.bf16 %v970_v12, %v962_v10  ;;  %v1049_v63 = vld [vmem:[#allocation5 + $0x1ee8] sm:$0xff]  ;;  %v1051_v1 = vld [vmem:[#allocation5 + $0x1ef8] sm:$0xff]  ;;  %v1050_v10 = vld [vmem:[#allocation5 + $0x1ef0] sm:$0xff] }
 0x1fb   :  { %2993 = vmatpush1.bf16.msra.mxu0 %v2992_v27  ;;  %2185 = vmatmul.mubr.f32.vlgmr.msra.gmra.mrb[2].mxu1 %v3353_v37  ;;  %v922_v27 = vld [vmem:[#allocation5 + $0x1af0] sm:$0xff]  ;;  %v1101_v36 = vrot.slane %v3515_v17, %v1100_v21  ;;  %v976_v21 = vld [vmem:[#allocation5 + $0x1ca0] sm:$0xff]  ;;  %v1065_v12 = vld [vmem:[#allocation5 + $0x1f68] sm:$0xff] }
 0x1fc   :  { %3249 = vmatpush1.bf16.msra.mxu1 %v3248_v28  ;;  %2995 = vmatprep.subr.bf16.mxu0 %v2994_v29  ;;  %v929_v28 = vld [vmem:[#allocation5 + $0x1b28] sm:$0xff]  ;;  %v3268_v37 = vpack.c.bf16 %v922_v27, %v914_v25  ;;  %v986_v25 = vld [vmem:[#allocation5 + $0x1cf0] sm:$0xff] }
 0x1fd   :  { %3251 = vmatprep.subr.bf16.mxu1 %v3250_v33  ;;  %1971 = vmatprep.mubr.f32.mxu0 %v3354_v50  ;;  %v937_v29 = vld [vmem:[#allocation5 + $0x1b68] sm:$0xff]  ;;  %v1097_v33 = vrot.slane %v3515_v17, %v1096_v18  ;;  %v3284_v31 = vpack.c.bf16 %v986_v25, %v978_v23  ;;  %v1066_v23 = vld [vmem:[#allocation5 + $0x1f70] sm:$0xff] }
 0x1fe   :  { %2255 = vmatprep.mubr.f32.mxu1 %v3354_v50  ;;  %v3014_v38 = vpack.c.bf16 %v937_v29, %v929_v28  ;;  %v947_v50 = vld [vmem:[#allocation5 + $0x1bb8] sm:$0xff]  ;;  %v1001_v27 = vld [vmem:[#allocation5 + $0x1d68] sm:$0xff] }
 0x1ff   :  { %2997 = vmatpush1.bf16.msra.mxu0 %v2996_v40  ;;  %v936_v40 = vld [vmem:[#allocation5 + $0x1b60] sm:$0xff]  ;;  %v3274_v62 = vpack.c.bf16 %v955_v51, %v947_v50  ;;  %v995_v28 = vld [vmem:[#allocation5 + $0x1d38] sm:$0xff]  ;;  %v1025_v50 = vld [vmem:[#allocation5 + $0x1e28] sm:$0xff] }
 0x200   :  { %3253 = vmatpush1.bf16.msra.mxu1 %v3252_v41  ;;  %2999 = vmatprep.subr.bf16.mxu0 %v2998_v42  ;;  %v930_v41 = vld [vmem:[#allocation5 + $0x1b30] sm:$0xff]  ;;  %v1003_v29 = vld [vmem:[#allocation5 + $0x1d78] sm:$0xff]  ;;  %v1033_v51 = vld [vmem:[#allocation5 + $0x1e68] sm:$0xff] }
 0x201   :  { %3255 = vmatprep.subr.bf16.mxu1 %v3254_v46  ;;  %v953_v46 = vld [vmem:[#allocation5 + $0x1be8] sm:$0xff]  ;;  %v3272_v57 = vpack.c.bf16 %v938_v44, %v930_v41  ;;  %v1019_v41 = vld [vmem:[#allocation5 + $0x1df8] sm:$0xff] }
 0x202   :  { %v3018_v58 = vpack.c.bf16 %v953_v46, %v945_v45  ;;  %v1008_v45 = vld [vmem:[#allocation5 + $0x1da0] sm:$0xff]  ;;  %v1081_v25 = vld [vmem:[#allocation5 + $0x1fe8] sm:$0xff] }
 0x203   :  { %3001 = vmatpush1.bf16.msra.mxu0 %v3000_v54  ;;  %v1016_v46 = vld [vmem:[#allocation5 + $0x1de0] sm:$0xff] }
 0x204   :  { %3257 = vmatpush1.bf16.msra.mxu1 %v3256_v55  ;;  %3003 = vmatprep.subr.bf16.mxu0 %v3002_v56  ;;  %v3016_v55 = vpack.c.bf16 %v936_v40, %v928_v39  ;;  %v1017_v39 = vld [vmem:[#allocation5 + $0x1de8] sm:$0xff]  ;;  %v1011_v40 = vld [vmem:[#allocation5 + $0x1db8] sm:$0xff] }
 0x205   :  { %3259 = vmatprep.subr.bf16.mxu1 %v3258_v60  ;;  %v952_v60 = vld [vmem:[#allocation5 + $0x1be0] sm:$0xff] }
 0x207   :  { %3005 = vmatpush1.bf16.msra.mxu0 %v3004_v3  ;;  %v963_v3 = vld [vmem:[#allocation5 + $0x1c38] sm:$0xff] }
 0x208   :  { %3261 = vmatpush1.bf16.msra.mxu1 %v3260_v4  ;;  %3007 = vmatprep.subr.bf16.mxu0 %v3006_v5  ;;  %v971_v4 = vld [vmem:[#allocation5 + $0x1c78] sm:$0xff]  ;;  %v3020_v5 = vpack.c.bf16 %v952_v60, %v944_v59  ;;  %v1026_v59 = vld [vmem:[#allocation5 + $0x1e30] sm:$0xff] }
 0x209   :  { %3263 = vmatprep.subr.bf16.mxu1 %v3262_v9  ;;  %v968_v9 = vld [vmem:[#allocation5 + $0x1c60] sm:$0xff]  ;;  %v3278_v11 = vpack.c.bf16 %v971_v4, %v963_v3  ;;  %v3296_v4 = vpack.c.bf16 %v1034_v61, %v1026_v59 }
 0x20a   :  { %v3024_v18 = vpack.c.bf16 %v968_v9, %v960_v8  ;;  %v1042_v8 = vld [vmem:[#allocation5 + $0x1eb0] sm:$0xff]  ;;  %v3298_v9 = vpack.c.bf16 %v1051_v1, %v1043_v0 }
 0x20b   :  { %3009 = vmatpush1.bf16.msra.mxu0 %v3008_v16  ;;  %v987_v16 = vld [vmem:[#allocation5 + $0x1cf8] sm:$0xff] }
 0x20c   :  { %3265 = vmatpush1.bf16.msra.mxu1 %v3264_v20  ;;  %3011 = vmatprep.subr.bf16.mxu0 %v3010_v22  ;;  %v3026_v20 = vpack.c.bf16 %v985_v14, %v977_v13  ;;  %v984_v22 = vld [vmem:[#allocation5 + $0x1ce0] sm:$0xff]  ;;  %v3282_v24 = vpack.c.bf16 %v987_v16, %v979_v15  ;;  %v1059_v13 = vld [vmem:[#allocation5 + $0x1f38] sm:$0xff]  ;;  %v3300_v16 = vpack.c.bf16 %v1050_v10, %v1042_v8 }
 0x20d   :  { %v1405_v42 = vpop.f32.mrb[0].mxu0  ;;  %3267 = vmatprep.subr.bf16.mxu1 %v3266_v26  ;;  %v993_v26 = vld [vmem:[#allocation5 + $0x1d28] sm:$0xff]  ;;  %v1067_v14 = vld [vmem:[#allocation5 + $0x1f78] sm:$0xff] }
 0x20e   :  { %v3310_v47 = vadd.f32 %v1405_v42, %v1089_v30  ;;  %v1689_v48 = vpop.f32.mrb[0].mxu1  ;;  %v1407_v49 = vpop.f32.mrb[1].mxu0  ;;  %v3028_v30 = vpack.c.bf16 %v984_v22, %v976_v21  ;;  %v3030_v32 = vpack.c.bf16 %v1001_v27, %v993_v26  ;;  %v1058_v21 = vld [vmem:[#allocation5 + $0x1f30] sm:$0xff]  ;;  %v3302_v22 = vpack.c.bf16 %v1067_v14, %v1059_v13  ;;  %v1075_v26 = vld [vmem:[#allocation5 + $0x1fb8] sm:$0xff] }
 0x20f   :  { %v3312_v52 = vadd.f32 %v1689_v48, %v1097_v33  ;;  %v3311_v53 = vadd.f32 %v1407_v49, %v1093_v34  ;;  %v1691_v54 = vpop.f32.mrb[1].mxu1  ;;  %3013 = vmatpush1.bf16.msra.mxu0 %v3012_v35  ;;  %v992_v33 = vld [vmem:[#allocation5 + $0x1d20] sm:$0xff]  ;;  %v994_v35 = vld [vmem:[#allocation5 + $0x1d30] sm:$0xff]  ;;  %v3290_v48 = vpack.c.bf16 %v1019_v41, %v1011_v40  ;;  %v1083_v27 = vld [vmem:[#allocation5 + $0x1ff8] sm:$0xff]  ;;  %v1112_v40 = vsub.s32 6, %v3512_v2 }
 0x210   :  { %2262 = vst [vmem:[#allocation8] sm:$0xff] %v3310_v47  ;;  %v3313_v56 = vadd.f32 %v1691_v54, %v1101_v36  ;;  %3269 = vmatpush1.bf16.msra.mxu1 %v3268_v37  ;;  %3015 = vmatprep.subr.bf16.mxu0 %v3014_v38  ;;  %v1000_v34 = vld [vmem:[#allocation5 + $0x1d60] sm:$0xff]  ;;  %v3286_v36 = vpack.c.bf16 %v1003_v29, %v995_v28  ;;  %v1002_v37 = vld [vmem:[#allocation5 + $0x1d70] sm:$0xff]  ;;  %v1009_v38 = vld [vmem:[#allocation5 + $0x1da8] sm:$0xff]  ;;  %v1108_v41 = vsub.s32 5, %v3512_v2 }
 0x211   :  { %2264 = vst [vmem:[#allocation8 + $0x10] sm:$0xff] %v3312_v52  ;;  %2263 = vst [vmem:[#allocation8 + $0x8] sm:$0xff] %v3311_v53  ;;  %3271 = vmatprep.subr.bf16.mxu1 %v3270_v43  ;;  %v3032_v42 = vpack.c.bf16 %v1000_v34, %v992_v33  ;;  %v3288_v43 = vpack.c.bf16 %v1002_v37, %v994_v35  ;;  %v3034_v44 = vpack.c.bf16 %v1017_v39, %v1009_v38  ;;  %v1010_v47 = vld [vmem:[#allocation5 + $0x1db0] sm:$0xff]  ;;  %v1027_v52 = vld [vmem:[#allocation5 + $0x1e38] sm:$0xff] }
 0x212   :  { %2265 = vst [vmem:[#allocation8 + $0x18] sm:$0xff] %v3313_v56  ;;  %v1018_v49 = vld [vmem:[#allocation5 + $0x1df0] sm:$0xff]  ;;  %v1035_v53 = vld [vmem:[#allocation5 + $0x1e78] sm:$0xff]  ;;  %v3036_v54 = vpack.c.bf16 %v1016_v46, %v1008_v45  ;;  %v3038_v56 = vpack.c.bf16 %v1033_v51, %v1025_v50  ;;  %v3304_v29 = vpack.c.bf16 %v1066_v23, %v1058_v21  ;;  %v3306_v33 = vpack.c.bf16 %v1083_v27, %v1075_v26 }
 0x213   :  { %3017 = vmatpush1.bf16.msra.mxu0 %v3016_v55  ;;  %v3292_v55 = vpack.c.bf16 %v1018_v49, %v1010_v47  ;;  %v3294_v60 = vpack.c.bf16 %v1035_v53, %v1027_v52  ;;  %v1074_v34 = vld [vmem:[#allocation5 + $0x1fb0] sm:$0xff]  ;;  %v1104_v39 = vsub.s32 4, %v3512_v2  ;;  %v1109_v45 = vrot.slane %v3515_v17, %v1108_v41 }
 0x214   :  { %3273 = vmatpush1.bf16.msra.mxu1 %v3272_v57  ;;  %3019 = vmatprep.subr.bf16.mxu0 %v3018_v58  ;;  %v1024_v57 = vld [vmem:[#allocation5 + $0x1e20] sm:$0xff]  ;;  %v1082_v35 = vld [vmem:[#allocation5 + $0x1ff0] sm:$0xff] }
 0x215   :  { %3275 = vmatprep.subr.bf16.mxu1 %v3274_v62  ;;  %v1032_v58 = vld [vmem:[#allocation5 + $0x1e60] sm:$0xff]  ;;  %v1041_v62 = vld [vmem:[#allocation5 + $0x1ea8] sm:$0xff]  ;;  %v3308_v37 = vpack.c.bf16 %v1082_v35, %v1074_v34  ;;  %v3355_v38 = vld [vmem:[#allocation2 + $0x30] sm:$0xff] }
 0x216   :  { %v3040_v3 = vpack.c.bf16 %v1032_v58, %v1024_v57 }
 0x217   :  { %3021 = vmatpush1.bf16.msra.mxu0 %v3020_v5  ;;  %v3042_v5 = vpack.c.bf16 %v1049_v63, %v1041_v62 }
 0x218   :  { %3277 = vmatpush1.bf16.msra.mxu1 %v3276_v6  ;;  %3023 = vmatprep.subr.bf16.mxu0 %v3022_v7  ;;  %v1040_v6 = vld [vmem:[#allocation5 + $0x1ea0] sm:$0xff] }
 0x219   :  { %3279 = vmatprep.subr.bf16.mxu1 %v3278_v11  ;;  %v1048_v7 = vld [vmem:[#allocation5 + $0x1ee0] sm:$0xff]  ;;  %v1057_v11 = vld [vmem:[#allocation5 + $0x1f28] sm:$0xff] }
 0x21a   :  { %v3044_v15 = vpack.c.bf16 %v1048_v7, %v1040_v6 }
 0x21b   :  { %3025 = vmatpush1.bf16.msra.mxu0 %v3024_v18  ;;  %v3046_v18 = vpack.c.bf16 %v1065_v12, %v1057_v11 }
 0x21c   :  { %3281 = vmatpush1.bf16.msra.mxu1 %v3280_v19  ;;  %3027 = vmatprep.subr.bf16.mxu0 %v3026_v20  ;;  %v1056_v19 = vld [vmem:[#allocation5 + $0x1f20] sm:$0xff] }
 0x21d   :  { %3283 = vmatprep.subr.bf16.mxu1 %v3282_v24  ;;  %v1064_v20 = vld [vmem:[#allocation5 + $0x1f60] sm:$0xff]  ;;  %v1073_v24 = vld [vmem:[#allocation5 + $0x1fa8] sm:$0xff] }
 0x21e   :  { %v3048_v28 = vpack.c.bf16 %v1064_v20, %v1056_v19 }
 0x21f   :  { %3029 = vmatpush1.bf16.msra.mxu0 %v3028_v30  ;;  %v3050_v30 = vpack.c.bf16 %v1081_v25, %v1073_v24 }
 0x220   :  { %3285 = vmatpush1.bf16.msra.mxu1 %v3284_v31  ;;  %3031 = vmatprep.subr.bf16.mxu0 %v3030_v32  ;;  %v1072_v31 = vld [vmem:[#allocation5 + $0x1fa0] sm:$0xff] }
 0x221   :  { %3287 = vmatprep.subr.bf16.mxu1 %v3286_v36  ;;  %v1080_v32 = vld [vmem:[#allocation5 + $0x1fe0] sm:$0xff] }
 0x222   :  { %v3052_v36 = vpack.c.bf16 %v1080_v32, %v1072_v31 }
 0x223   :  { %3033 = vmatpush1.bf16.msra.mxu0 %v3032_v42  ;;  %v1116_v42 = vsub.s32 7, %v3512_v2 }
 0x224   :  { %3289 = vmatpush1.bf16.msra.mxu1 %v3288_v43  ;;  %3035 = vmatprep.subr.bf16.mxu0 %v3034_v44  ;;  %v1105_v43 = vrot.slane %v3515_v17, %v1104_v39  ;;  %v1113_v44 = vrot.slane %v3515_v17, %v1112_v40 }
 0x225   :  { %3291 = vmatprep.subr.bf16.mxu1 %v3290_v48  ;;  %v1117_v46 = vrot.slane %v3515_v17, %v1116_v42 }
 0x227   :  { %3037 = vmatpush1.bf16.msra.mxu0 %v3036_v54 }
 0x228   :  { %3293 = vmatpush1.bf16.msra.mxu1 %v3292_v55  ;;  %3039 = vmatprep.subr.bf16.mxu0 %v3038_v56 }
 0x229   :  { %3295 = vmatprep.subr.bf16.mxu1 %v3294_v60 }
 0x22b   :  { %3041 = vmatpush1.bf16.msra.mxu0 %v3040_v3 }
 0x22c   :  { %3297 = vmatpush1.bf16.msra.mxu1 %v3296_v4  ;;  %3043 = vmatprep.subr.bf16.mxu0 %v3042_v5 }
 0x22d   :  { %3299 = vmatprep.subr.bf16.mxu1 %v3298_v9 }
 0x22f   :  { %3045 = vmatpush1.bf16.msra.mxu0 %v3044_v15 }
 0x230   :  { %3301 = vmatpush1.bf16.msra.mxu1 %v3300_v16  ;;  %3047 = vmatprep.subr.bf16.mxu0 %v3046_v18 }
 0x231   :  { %3303 = vmatprep.subr.bf16.mxu1 %v3302_v22 }
 0x233   :  { %3049 = vmatpush1.bf16.msra.mxu0 %v3048_v28 }
 0x234   :  { %3305 = vmatpush1.bf16.msra.mxu1 %v3304_v29  ;;  %3051 = vmatprep.subr.bf16.mxu0 %v3050_v30 }
 0x235   :  { %3307 = vmatprep.subr.bf16.mxu1 %v3306_v33 }
 0x237   :  { %3053 = vmatpush1.bf16.msra.mxu0 %v3052_v36 }
 0x238   :  { %3309 = vmatpush1.bf16.msra.mxu1 %v3308_v37 }
 0x23a   :  { %1972 = vmatmul.mubr.f32.vlgmr.msra.gmra.mrb[2].mxu0 %v3355_v38 }
 0x23b   :  { %2256 = vmatmul.mubr.f32.vlgmr.msra.gmra.mrb[2].mxu1 %v3355_v38 }
 0x30d   :  { %v1973_v47 = vpop.f32.mrb[2].mxu0 }
 0x30e   :  { %v3314_v48 = vadd.f32 %v1973_v47, %v1105_v43  ;;  %v2257_v49 = vpop.f32.mrb[2].mxu1  ;;  %v1975_v50 = vpop.f32.mrb[3].mxu0 }
 0x30f   :  { %v3316_v51 = vadd.f32 %v2257_v49, %v1113_v44  ;;  %v3315_v52 = vadd.f32 %v1975_v50, %v1109_v45  ;;  %v2259_v53 = vpop.f32.mrb[3].mxu1 }
 0x310   :  { %2266 = vst [vmem:[#allocation8 + $0x20] sm:$0xff] %v3314_v48  ;;  %v3317_v54 = vadd.f32 %v2259_v53, %v1117_v46 }
 0x311   :  { %2268 = vst [vmem:[#allocation8 + $0x30] sm:$0xff] %v3316_v51  ;;  %2267 = vst [vmem:[#allocation8 + $0x28] sm:$0xff] %v3315_v52 }
 0x312   :  { %2269 = vst [vmem:[#allocation8 + $0x38] sm:$0xff] %v3317_v54 }
 0x313   :  { %3433 = shalt.err (!%p3430_p0)
}
 0x314   :  { %s3434_s25 = scalar_lea.hbm %s3547_s3, 1024 }
 0x315   :  { %p3435_p1 = scmp.ne.s32.totalorder %s3547_s3, %s3434_s25  ;;  %p3438_p2 = scmp.lt.u32.totalorder %s3434_s25, %s3547_s3 }
 0x317   :  { %p3440_p3 = pnand %p3438_p2, %p3435_p1 }
 0x319   :  { %3443 = shalt.err (!%p3440_p3)
}
 0x31a   :  { %2279 = dma.vmem_to_hbm [thread:$0]  %s2277_s21, 1024, %s3547_s3, [#allocation4]  }
 0x31b   :  { %3448 = dma.done.wait [#allocation4], 1024  }
 0x31c   :  { %3449 = vsyncadd [#allocation4], 4294966272 }
 0x31d   :  { %2283 = vsyncpa [#allocation3], 1 }
 0x31e   :  { %2284 = vsyncpa [#allocation6], 1 }
 0x31f   :  { %2285 = vsyncpa [#allocation4], 1 }

</bundles_post_ra>
